<compile_context>
chip_gen: v5e
topology: v5e:2x2
jax: 0.10.0
libtpu: 0.0.40
codegen_flags: <defaults>
</compile_context>

<pallas_src>
import functools

import jax
import jax.numpy as jnp
from jax.experimental import pallas as pl
from jax.experimental.pallas import tpu as pltpu

# MXU operand dtype (accumulation is always f32).  bf16 halves HBM/VMEM
# traffic and runs at native MXU rate on v6e/v7x; jnp.float32 = exact.
COMPUTE_DTYPE = jnp.bfloat16

HIDDEN_DIM = 128
CONV3_COUT = 64
CONV3_SPATIAL = 7 * 7
FLAT_SIZE = CONV3_SPATIAL * CONV3_COUT          # 3136 == PyTorch self.size
N_HEAD_PAD = 128                                # actor(2)+critic(1) padded lane-dense


def _vmem_spec():
    return pl.BlockSpec(memory_space=pltpu.MemorySpace.VMEM)


# ----------------------------- Pallas kernels ------------------------------ #
def _gemm_bias_relu_kernel(a_ref, w_ref, b_ref, o_ref, *, apply_relu):
    """o = (relu)(a @ w + b); f32 accumulation on the MXU."""
    acc = jnp.dot(a_ref[...], w_ref[...], preferred_element_type=jnp.float32)
    acc = acc + b_ref[...]                       # (1, N) broadcast over M
    if apply_relu:
        acc = jnp.maximum(acc, 0.0)
    o_ref[...] = acc.astype(o_ref.dtype)


def gemm_bias_relu(a, w, b, *, apply_relu, out_dtype):
    """Single whole-array VMEM block (relu)(a @ w + b). a:(M,K) w:(K,N) b:(1,N)."""
    M, K = a.shape
    K2, N = w.shape
    assert K == K2, (K, K2)
    in_bytes = jnp.dtype(a.dtype).itemsize
    cost = pl.CostEstimate(
        flops=2 * M * K * N,
        transcendentals=0,
        bytes_accessed=(M * K + K * N) * in_bytes + N * 4
        + M * N * jnp.dtype(out_dtype).itemsize,
    )
    return pl.pallas_call(
        functools.partial(_gemm_bias_relu_kernel, apply_relu=apply_relu),
        out_shape=jax.ShapeDtypeStruct((M, N), out_dtype),
        in_specs=[_vmem_spec(), _vmem_spec(), _vmem_spec()],
        out_specs=_vmem_spec(),
        cost_estimate=cost,
    )(a, w, b)


def _conv3_fc_heads_kernel(p3_ref, w3_ref, b3_ref, fcw_ref, fcb_ref,
                           hw_ref, hb_ref, out_ref, a3_ref, flat_ref,
                           *, batch, n_spatial, c_out, compute_dtype):
    """Fused conv3 (im2col GEMM) + flatten + fc + padded actor/critic heads."""
    # conv3 as one GEMM; p3 rows are ordered (spatial, batch).
    a3 = jnp.dot(p3_ref[...], w3_ref[...], preferred_element_type=jnp.float32)
    a3_ref[...] = jnp.maximum(a3 + b3_ref[...], 0.0)

    # Per-sample flatten: (spatial*batch, C) -> (batch, spatial*C) via static
    # VMEM block copies.  This realizes x.view(-1, 64*7*7); the fc weight's
    # K-dim was pre-reordered to (h, w, c) at pack time to match.
    for s in range(n_spatial):
        flat_ref[:, s * c_out:(s + 1) * c_out] = a3_ref[s * batch:(s + 1) * batch, :]

    feats = jnp.dot(flat_ref[...].astype(compute_dtype), fcw_ref[...],
                    preferred_element_type=jnp.float32)
    feats = jnp.maximum(feats + fcb_ref[...], 0.0)

    # Fused actor+critic heads, zero-padded to a lane-dense 128-wide output.
    heads = jnp.dot(feats.astype(compute_dtype), hw_ref[...],
                    preferred_element_type=jnp.float32)
    out_ref[...] = (heads + hb_ref[...]).astype(out_ref.dtype)


def conv3_fc_heads(p3, packed, *, batch, n_spatial, c_out):
    k3 = packed["w3"].shape[0]
    hidden = packed["fcw"].shape[1]
    in_bytes = jnp.dtype(p3.dtype).itemsize
    cost = pl.CostEstimate(
        flops=2 * (n_spatial * batch * k3 * c_out
                   + batch * n_spatial * c_out * hidden
                   + batch * hidden * N_HEAD_PAD),
        transcendentals=0,
        bytes_accessed=(p3.size + packed["w3"].size + packed["fcw"].size
                        + packed["hw"].size) * in_bytes + batch * N_HEAD_PAD * 4,
    )
    kernel = functools.partial(
        _conv3_fc_heads_kernel, batch=batch, n_spatial=n_spatial, c_out=c_out,
        compute_dtype=p3.dtype)
    return pl.pallas_call(
        kernel,
        out_shape=jax.ShapeDtypeStruct((batch, N_HEAD_PAD), jnp.float32),
        in_specs=[_vmem_spec()] * 7,
        out_specs=_vmem_spec(),
        scratch_shapes=[
            pltpu.VMEM((n_spatial * batch, c_out), jnp.float32),   # conv3 act
            pltpu.VMEM((batch, n_spatial * c_out), jnp.float32),   # flatten
        ],
        cost_estimate=cost,
    )(p3, packed["w3"], packed["b3"], packed["fcw"], packed["fcb"],
      packed["hw"], packed["hb"])


# ------------------------------ XLA-side glue ------------------------------- #
def _im2col_nhwc(x, k, s):
    """x: (B, H, W, C) -> (B, OH, OW, k*k*C); K-dim ordered (kh, kw, cin)."""
    B, H, W, C = x.shape
    OH = (H - k) // s + 1
    OW = (W - k) // s + 1
    slabs = [x[:, i:i + s * (OH - 1) + 1:s, j:j + s * (OW - 1) + 1:s, :]
             for i in range(k) for j in range(k)]
    return jnp.concatenate(slabs, axis=-1), OH, OW


# ------------------------------- parameters --------------------------------- #
def init_params(key, hidden_dim=HIDDEN_DIM):
    """PyTorch-default-style (uniform +-1/sqrt(fan_in)) init, torch layouts."""
    ks = jax.random.split(key, 12)

    def u(k, shape, fan_in):
        bound = 1.0 / float(fan_in) ** 0.5
        return jax.random.uniform(k, shape, jnp.float32, -bound, bound)

    return {
        "conv1_w": u(ks[0], (32, 2, 4, 4), 2 * 4 * 4),
        "conv1_b": u(ks[1], (32,), 2 * 4 * 4),
        "conv2_w": u(ks[2], (64, 32, 4, 4), 32 * 4 * 4),
        "conv2_b": u(ks[3], (64,), 32 * 4 * 4),
        "conv3_w": u(ks[4], (64, 64, 3, 3), 64 * 3 * 3),
        "conv3_b": u(ks[5], (64,), 64 * 3 * 3),
        "fc_w":    u(ks[6], (hidden_dim, FLAT_SIZE), FLAT_SIZE),
        "fc_b":    u(ks[7], (hidden_dim,), FLAT_SIZE),
        "actor_w": u(ks[8], (2, hidden_dim), hidden_dim),
        "actor_b": u(ks[9], (2,), hidden_dim),
        "critic_w": u(ks[10], (1, hidden_dim), hidden_dim),
        "critic_b": u(ks[11], (1,), hidden_dim),
    }


def pack_params(params, compute_dtype=COMPUTE_DTYPE):
    """One-time repack of torch-layout params into kernel-ready layouts."""
    def conv_w(w):  # (Cout, Cin, kh, kw) -> (kh*kw*Cin, Cout): matches im2col K
        co, ci, kh, kw = w.shape
        return w.transpose(2, 3, 1, 0).reshape(kh * kw * ci, co).astype(compute_dtype)

    def bias_row(b):
        return b.reshape(1, -1).astype(jnp.float32)

    hidden = params["fc_w"].shape[0]
    # fc weight: torch K-order (c, h, w) -> NHWC flatten order (h, w, c), then (K, N).
    fcw = (params["fc_w"].reshape(hidden, CONV3_COUT, 7, 7)
           .transpose(0, 2, 3, 1).reshape(hidden, FLAT_SIZE).T)
    # actor + critic heads concatenated and zero-padded to a lane-dense width.
    hw = jnp.zeros((hidden, N_HEAD_PAD), jnp.float32)
    hw = hw.at[:, 0:2].set(params["actor_w"].T)
    hw = hw.at[:, 2:3].set(params["critic_w"].T)
    hb = jnp.zeros((1, N_HEAD_PAD), jnp.float32)
    hb = hb.at[0, 0:2].set(params["actor_b"])
    hb = hb.at[0, 2:3].set(params["critic_b"])
    return {
        "w1": conv_w(params["conv1_w"]), "b1": bias_row(params["conv1_b"]),
        "w2": conv_w(params["conv2_w"]), "b2": bias_row(params["conv2_b"]),
        "w3": conv_w(params["conv3_w"]), "b3": bias_row(params["conv3_b"]),
        "fcw": fcw.astype(compute_dtype), "fcb": bias_row(params["fc_b"]),
        "hw": hw.astype(compute_dtype), "hb": hb,
    }


# --------------------------------- forward ---------------------------------- #
@jax.jit
def actor_critic_forward(packed, x):
    """x: (B, 2, 84, 84) NCHW f32 -> (logits (B, 2) f32, value (B, 1) f32)."""
    B = x.shape[0]
    cd = packed["w1"].dtype
    h = x.transpose(0, 2, 3, 1).astype(cd)                     # NHWC, once
    # conv1 (k=4, s=4)
    p1, oh, ow = _im2col_nhwc(h, 4, 4)                         # (B,21,21,32)
    a1 = gemm_bias_relu(p1.reshape(B * oh * ow, -1), packed["w1"], packed["b1"],
                        apply_relu=True, out_dtype=cd)
    a1 = a1.reshape(B, oh, ow, -1)
    # conv2 (k=4, s=2)
    p2, oh, ow = _im2col_nhwc(a1, 4, 2)                        # (B,9,9,512)
    a2 = gemm_bias_relu(p2.reshape(B * oh * ow, -1), packed["w2"], packed["b2"],
                        apply_relu=True, out_dtype=cd)
    a2 = a2.reshape(B, oh, ow, -1)
    # conv3 (k=3, s=1) + flatten + fc + actor/critic heads: one fused kernel.
    p3, oh, ow = _im2col_nhwc(a2, 3, 1)                        # (B,7,7,576)
    n_spatial = oh * ow
    p3 = p3.transpose(1, 2, 0, 3).reshape(n_spatial * B, -1)   # rows = (spatial, batch)
    heads = conv3_fc_heads(p3, packed, batch=B, n_spatial=n_spatial,
                           c_out=CONV3_COUT)
    return heads[:, 0:2], heads[:, 2:3]


# ----------------------------- pure-XLA reference --------------------------- #
def reference_forward(params, x):
    """f32 XLA reference (lax.conv + dense), PyTorch semantics."""
    dn = ("NCHW", "OIHW", "NCHW")
    hp = jax.lax.Precision.HIGHEST

    def conv(h, w, b, s):
        h = jax.lax.conv_general_dilated(h, w, (s, s), "VALID",
                                         dimension_numbers=dn, precision=hp)
        return jax.nn.relu(h + b.reshape(1, -1, 1, 1))

    h = conv(x, params["conv1_w"], params["conv1_b"], 4)
    h = conv(h, params["conv2_w"], params["conv2_b"], 2)
    h = conv(h, params["conv3_w"], params["conv3_b"], 1)
    h = h.reshape(x.shape[0], -1)
    feats = jax.nn.relu(jnp.dot(h, params["fc_w"].T, precision=hp) + params["fc_b"])
    logits = jnp.dot(feats, params["actor_w"].T, precision=hp) + params["actor_b"]
    value = jnp.dot(feats, params["critic_w"].T, precision=hp) + params["critic_b"]
    return logits, value


def _max_abs_diff(a, b):
    return float(jnp.max(jnp.abs(a.astype(jnp.float32) - b.astype(jnp.float32))))


# ----------------------------------- main ------------------------------------ #
if __name__ == "__main__":
    key = jax.random.PRNGKey(0)
    k_param, k_input = jax.random.split(key)

    params = init_params(k_param)
    # Module geometry forces 84x84 inputs with 2 channels; batch = 2.
    x = jax.random.normal(k_input, (2, 2, 84, 84), dtype=jnp.float32)

    ref_logits, ref_value = reference_forward(params, x)

    # Exact-f32 path: validates kernel / im2col / layout logic bit-for-bit-ish.
    packed_f32 = pack_params(params, jnp.float32)
    logits32, value32 = actor_critic_forward(packed_f32, x)
    jax.block_until_ready((logits32, value32, ref_logits, ref_value))
    assert _max_abs_diff(logits32, ref_logits) < 1e-3
    assert _max_abs_diff(value32, ref_value) < 1e-3

    # Production path: bf16 MXU operands, f32 accumulation.
    packed = pack_params(params, COMPUTE_DTYPE)
    logits, value = actor_critic_forward(packed, x)
    jax.block_until_ready((logits, value))

    assert logits.shape == (2, 2) and logits.dtype == jnp.float32
    assert value.shape == (2, 1) and value.dtype == jnp.float32
    assert _max_abs_diff(logits, ref_logits) < 5e-2
    assert _max_abs_diff(value, ref_value) < 5e-2
    print("KERNEL_OK")
</pallas_src>

<mosaic_0001>
module attributes {stable_mosaic.version = 11 : i64} {
  func.func @_gemm_bias_relu_kernel(%arg0: memref<882x32xf32, #tpu.memory_space<vmem>>, %arg1: memref<32x32xf32, #tpu.memory_space<vmem>>, %arg2: memref<1x32xf32, #tpu.memory_space<vmem>>, %arg3: memref<882x32xf32, #tpu.memory_space<vmem>>) attributes {dimension_semantics = [], scalar_prefetch = 0 : i64, scratch_operands = 0 : i64, tpu.core_type = #tpu.core_type<tc>} {
    %c0 = arith.constant 0 : index
    %c0_0 = arith.constant 0 : index
    %0 = vector.load %arg0[%c0, %c0_0] : memref<882x32xf32, #tpu.memory_space<vmem>>, vector<882x32xf32>
    %c0_1 = arith.constant 0 : index
    %c0_2 = arith.constant 0 : index
    %1 = vector.load %arg1[%c0_1, %c0_2] : memref<32x32xf32, #tpu.memory_space<vmem>>, vector<32x32xf32>
    %cst = arith.constant dense<0.000000e+00> : vector<882x32xf32>
    %2 = tpu.matmul %0, %1, %cst {dimension_numbers = #tpu.dot_dimension_numbers<[1], [0], [0], [1], [0, 0, 1, 1], [], []>} : vector<882x32xf32>, vector<32x32xf32>, vector<882x32xf32> -> vector<882x32xf32>
    %c0_3 = arith.constant 0 : index
    %c0_4 = arith.constant 0 : index
    %3 = vector.load %arg2[%c0_3, %c0_4] : memref<1x32xf32, #tpu.memory_space<vmem>>, vector<1x32xf32>
    %4 = vector.broadcast %3 : vector<1x32xf32> to vector<882x32xf32>
    %5 = arith.addf %2, %4 : vector<882x32xf32>
    %cst_5 = arith.constant 0.000000e+00 : f32
    %6 = vector.broadcast %cst_5 : f32 to vector<882x32xf32>
    %7 = arith.maximumf %5, %6 : vector<882x32xf32>
    %c0_6 = arith.constant 0 : index
    %c0_7 = arith.constant 0 : index
    %8 = vector.load %arg3[%c0_6, %c0_7] : memref<882x32xf32, #tpu.memory_space<vmem>>, vector<882x32xf32>
    tpu.vector_store %arg3[%c0_6, %c0_7], %7 {strides = array<i32>} : memref<882x32xf32, #tpu.memory_space<vmem>>, vector<882x32xf32>,
    return
  }
}

module attributes {stable_mosaic.version = 11 : i64} {
  func.func @_gemm_bias_relu_kernel(%arg0: memref<162x512xf32, #tpu.memory_space<vmem>>, %arg1: memref<512x64xf32, #tpu.memory_space<vmem>>, %arg2: memref<1x64xf32, #tpu.memory_space<vmem>>, %arg3: memref<162x64xf32, #tpu.memory_space<vmem>>) attributes {dimension_semantics = [], scalar_prefetch = 0 : i64, scratch_operands = 0 : i64, tpu.core_type = #tpu.core_type<tc>} {
    %c0 = arith.constant 0 : index
    %c0_0 = arith.constant 0 : index
    %0 = vector.load %arg0[%c0, %c0_0] : memref<162x512xf32, #tpu.memory_space<vmem>>, vector<162x512xf32>
    %c0_1 = arith.constant 0 : index
    %c0_2 = arith.constant 0 : index
    %1 = vector.load %arg1[%c0_1, %c0_2] : memref<512x64xf32, #tpu.memory_space<vmem>>, vector<512x64xf32>
    %cst = arith.constant dense<0.000000e+00> : vector<162x64xf32>
    %2 = tpu.matmul %0, %1, %cst {dimension_numbers = #tpu.dot_dimension_numbers<[1], [0], [0], [1], [0, 0, 1, 1], [], []>} : vector<162x512xf32>, vector<512x64xf32>, vector<162x64xf32> -> vector<162x64xf32>
    %c0_3 = arith.constant 0 : index
    %c0_4 = arith.constant 0 : index
    %3 = vector.load %arg2[%c0_3, %c0_4] : memref<1x64xf32, #tpu.memory_space<vmem>>, vector<1x64xf32>
    %4 = vector.broadcast %3 : vector<1x64xf32> to vector<162x64xf32>
    %5 = arith.addf %2, %4 : vector<162x64xf32>
    %cst_5 = arith.constant 0.000000e+00 : f32
    %6 = vector.broadcast %cst_5 : f32 to vector<162x64xf32>
    %7 = arith.maximumf %5, %6 : vector<162x64xf32>
    %c0_6 = arith.constant 0 : index
    %c0_7 = arith.constant 0 : index
    %8 = vector.load %arg3[%c0_6, %c0_7] : memref<162x64xf32, #tpu.memory_space<vmem>>, vector<162x64xf32>
    tpu.vector_store %arg3[%c0_6, %c0_7], %7 {strides = array<i32>} : memref<162x64xf32, #tpu.memory_space<vmem>>, vector<162x64xf32>,
    return
  }
}

module attributes {stable_mosaic.version = 11 : i64} {
  func.func @_conv3_fc_heads_kernel(%arg0: memref<98x576xf32, #tpu.memory_space<vmem>>, %arg1: memref<576x64xf32, #tpu.memory_space<vmem>>, %arg2: memref<1x64xf32, #tpu.memory_space<vmem>>, %arg3: memref<3136x128xf32, #tpu.memory_space<vmem>>, %arg4: memref<1x128xf32, #tpu.memory_space<vmem>>, %arg5: memref<128x128xf32, #tpu.memory_space<vmem>>, %arg6: memref<1x128xf32, #tpu.memory_space<vmem>>, %arg7: memref<2x128xf32, #tpu.memory_space<vmem>>, %arg8: memref<98x64xf32, #tpu.memory_space<vmem>>, %arg9: memref<2x3136xf32, #tpu.memory_space<vmem>>) attributes {dimension_semantics = [], scalar_prefetch = 0 : i64, scratch_operands = 2 : i64, tpu.core_type = #tpu.core_type<tc>} {
    %c0 = arith.constant 0 : index
    %c0_0 = arith.constant 0 : index
    %0 = vector.load %arg0[%c0, %c0_0] : memref<98x576xf32, #tpu.memory_space<vmem>>, vector<98x576xf32>
    %c0_1 = arith.constant 0 : index
    %c0_2 = arith.constant 0 : index
    %1 = vector.load %arg1[%c0_1, %c0_2] : memref<576x64xf32, #tpu.memory_space<vmem>>, vector<576x64xf32>
    %cst = arith.constant dense<0.000000e+00> : vector<98x64xf32>
    %2 = tpu.matmul %0, %1, %cst {dimension_numbers = #tpu.dot_dimension_numbers<[1], [0], [0], [1], [0, 0, 1, 1], [], []>} : vector<98x576xf32>, vector<576x64xf32>, vector<98x64xf32> -> vector<98x64xf32>
    %c0_3 = arith.constant 0 : index
    %c0_4 = arith.constant 0 : index
    %3 = vector.load %arg2[%c0_3, %c0_4] : memref<1x64xf32, #tpu.memory_space<vmem>>, vector<1x64xf32>
    %4 = vector.broadcast %3 : vector<1x64xf32> to vector<98x64xf32>
    %5 = arith.addf %2, %4 : vector<98x64xf32>
    %cst_5 = arith.constant 0.000000e+00 : f32
    %6 = vector.broadcast %cst_5 : f32 to vector<98x64xf32>
    %7 = arith.maximumf %5, %6 : vector<98x64xf32>
    %c0_6 = arith.constant 0 : index
    %c0_7 = arith.constant 0 : index
    %8 = vector.load %arg8[%c0_6, %c0_7] : memref<98x64xf32, #tpu.memory_space<vmem>>, vector<98x64xf32>
    tpu.vector_store %arg8[%c0_6, %c0_7], %7 {strides = array<i32>} : memref<98x64xf32, #tpu.memory_space<vmem>>, vector<98x64xf32>,
    %c0_8 = arith.constant 0 : index
    %c0_9 = arith.constant 0 : index
    %9 = vector.load %arg8[%c0_8, %c0_9] : memref<98x64xf32, #tpu.memory_space<vmem>>, vector<2x64xf32>
    %c0_10 = arith.constant 0 : index
    %c0_11 = arith.constant 0 : index
    %10 = vector.load %arg9[%c0_10, %c0_11] : memref<2x3136xf32, #tpu.memory_space<vmem>>, vector<2x64xf32>
    tpu.vector_store %arg9[%c0_10, %c0_11], %9 {strides = array<i32>} : memref<2x3136xf32, #tpu.memory_space<vmem>>, vector<2x64xf32>,
    %c2 = arith.constant 2 : index
    %c0_12 = arith.constant 0 : index
    %11 = vector.load %arg8[%c2, %c0_12] : memref<98x64xf32, #tpu.memory_space<vmem>>, vector<2x64xf32>
    %c0_13 = arith.constant 0 : index
    %c64 = arith.constant 64 : index
    %12 = vector.load %arg9[%c0_13, %c64] : memref<2x3136xf32, #tpu.memory_space<vmem>>, vector<2x64xf32>
    tpu.vector_store %arg9[%c0_13, %c64], %11 {strides = array<i32>} : memref<2x3136xf32, #tpu.memory_space<vmem>>, vector<2x64xf32>,
    %c4 = arith.constant 4 : index
    %c0_14 = arith.constant 0 : index
    %13 = vector.load %arg8[%c4, %c0_14] : memref<98x64xf32, #tpu.memory_space<vmem>>, vector<2x64xf32>
    %c0_15 = arith.constant 0 : index
    %c128 = arith.constant 128 : index
    %14 = vector.load %arg9[%c0_15, %c128] : memref<2x3136xf32, #tpu.memory_space<vmem>>, vector<2x64xf32>
    tpu.vector_store %arg9[%c0_15, %c128], %13 {strides = array<i32>} : memref<2x3136xf32, #tpu.memory_space<vmem>>, vector<2x64xf32>,
    %c6 = arith.constant 6 : index
    %c0_16 = arith.constant 0 : index
    %15 = vector.load %arg8[%c6, %c0_16] : memref<98x64xf32, #tpu.memory_space<vmem>>, vector<2x64xf32>
    %c0_17 = arith.constant 0 : index
    %c192 = arith.constant 192 : index
    %16 = vector.load %arg9[%c0_17, %c192] : memref<2x3136xf32, #tpu.memory_space<vmem>>, vector<2x64xf32>
    tpu.vector_store %arg9[%c0_17, %c192], %15 {strides = array<i32>} : memref<2x3136xf32, #tpu.memory_space<vmem>>, vector<2x64xf32>,
    %c8 = arith.constant 8 : index
    %c0_18 = arith.constant 0 : index
    %17 = vector.load %arg8[%c8, %c0_18] : memref<98x64xf32, #tpu.memory_space<vmem>>, vector<2x64xf32>
    %c0_19 = arith.constant 0 : index
    %c256 = arith.constant 256 : index
    %18 = vector.load %arg9[%c0_19, %c256] : memref<2x3136xf32, #tpu.memory_space<vmem>>, vector<2x64xf32>
    tpu.vector_store %arg9[%c0_19, %c256], %17 {strides = array<i32>} : memref<2x3136xf32, #tpu.memory_space<vmem>>, vector<2x64xf32>,
    %c10 = arith.constant 10 : index
    %c0_20 = arith.constant 0 : index
    %19 = vector.load %arg8[%c10, %c0_20] : memref<98x64xf32, #tpu.memory_space<vmem>>, vector<2x64xf32>
    %c0_21 = arith.constant 0 : index
    %c320 = arith.constant 320 : index
    %20 = vector.load %arg9[%c0_21, %c320] : memref<2x3136xf32, #tpu.memory_space<vmem>>, vector<2x64xf32>
    tpu.vector_store %arg9[%c0_21, %c320], %19 {strides = array<i32>} : memref<2x3136xf32, #tpu.memory_space<vmem>>, vector<2x64xf32>,
    %c12 = arith.constant 12 : index
    %c0_22 = arith.constant 0 : index
    %21 = vector.load %arg8[%c12, %c0_22] : memref<98x64xf32, #tpu.memory_space<vmem>>, vector<2x64xf32>
    %c0_23 = arith.constant 0 : index
    %c384 = arith.constant 384 : index
    %22 = vector.load %arg9[%c0_23, %c384] : memref<2x3136xf32, #tpu.memory_space<vmem>>, vector<2x64xf32>
    tpu.vector_store %arg9[%c0_23, %c384], %21 {strides = array<i32>} : memref<2x3136xf32, #tpu.memory_space<vmem>>, vector<2x64xf32>,
    %c14 = arith.constant 14 : index
    %c0_24 = arith.constant 0 : index
    %23 = vector.load %arg8[%c14, %c0_24] : memref<98x64xf32, #tpu.memory_space<vmem>>, vector<2x64xf32>
    %c0_25 = arith.constant 0 : index
    %c448 = arith.constant 448 : index
    %24 = vector.load %arg9[%c0_25, %c448] : memref<2x3136xf32, #tpu.memory_space<vmem>>, vector<2x64xf32>
    tpu.vector_store %arg9[%c0_25, %c448], %23 {strides = array<i32>} : memref<2x3136xf32, #tpu.memory_space<vmem>>, vector<2x64xf32>,
    %c16 = arith.constant 16 : index
    %c0_26 = arith.constant 0 : index
    %25 = vector.load %arg8[%c16, %c0_26] : memref<98x64xf32, #tpu.memory_space<vmem>>, vector<2x64xf32>
    %c0_27 = arith.constant 0 : index
    %c512 = arith.constant 512 : index
    %26 = vector.load %arg9[%c0_27, %c512] : memref<2x3136xf32, #tpu.memory_space<vmem>>, vector<2x64xf32>
    tpu.vector_store %arg9[%c0_27, %c512], %25 {strides = array<i32>} : memref<2x3136xf32, #tpu.memory_space<vmem>>, vector<2x64xf32>,
    %c18 = arith.constant 18 : index
    %c0_28 = arith.constant 0 : index
    %27 = vector.load %arg8[%c18, %c0_28] : memref<98x64xf32, #tpu.memory_space<vmem>>, vector<2x64xf32>
    %c0_29 = arith.constant 0 : index
    %c576 = arith.constant 576 : index
    %28 = vector.load %arg9[%c0_29, %c576] : memref<2x3136xf32, #tpu.memory_space<vmem>>, vector<2x64xf32>
    tpu.vector_store %arg9[%c0_29, %c576], %27 {strides = array<i32>} : memref<2x3136xf32, #tpu.memory_space<vmem>>, vector<2x64xf32>,
    %c20 = arith.constant 20 : index
    %c0_30 = arith.constant 0 : index
    %29 = vector.load %arg8[%c20, %c0_30] : memref<98x64xf32, #tpu.memory_space<vmem>>, vector<2x64xf32>
    %c0_31 = arith.constant 0 : index
    %c640 = arith.constant 640 : index
    %30 = vector.load %arg9[%c0_31, %c640] : memref<2x3136xf32, #tpu.memory_space<vmem>>, vector<2x64xf32>
    tpu.vector_store %arg9[%c0_31, %c640], %29 {strides = array<i32>} : memref<2x3136xf32, #tpu.memory_space<vmem>>, vector<2x64xf32>,
    %c22 = arith.constant 22 : index
    %c0_32 = arith.constant 0 : index
    %31 = vector.load %arg8[%c22, %c0_32] : memref<98x64xf32, #tpu.memory_space<vmem>>, vector<2x64xf32>
    %c0_33 = arith.constant 0 : index
    %c704 = arith.constant 704 : index
    %32 = vector.load %arg9[%c0_33, %c704] : memref<2x3136xf32, #tpu.memory_space<vmem>>, vector<2x64xf32>
    tpu.vector_store %arg9[%c0_33, %c704], %31 {strides = array<i32>} : memref<2x3136xf32, #tpu.memory_space<vmem>>, vector<2x64xf32>,
    %c24 = arith.constant 24 : index
    %c0_34 = arith.constant 0 : index
    %33 = vector.load %arg8[%c24, %c0_34] : memref<98x64xf32, #tpu.memory_space<vmem>>, vector<2x64xf32>
    %c0_35 = arith.constant 0 : index
    %c768 = arith.constant 768 : index
    %34 = vector.load %arg9[%c0_35, %c768] : memref<2x3136xf32, #tpu.memory_space<vmem>>, vector<2x64xf32>
    tpu.vector_store %arg9[%c0_35, %c768], %33 {strides = array<i32>} : memref<2x3136xf32, #tpu.memory_space<vmem>>, vector<2x64xf32>,
    %c26 = arith.constant 26 : index
    %c0_36 = arith.constant 0 : index
    %35 = vector.load %arg8[%c26, %c0_36] : memref<98x64xf32, #tpu.memory_space<vmem>>, vector<2x64xf32>
    %c0_37 = arith.constant 0 : index
    %c832 = arith.constant 832 : index
    %36 = vector.load %arg9[%c0_37, %c832] : memref<2x3136xf32, #tpu.memory_space<vmem>>, vector<2x64xf32>
    tpu.vector_store %arg9[%c0_37, %c832], %35 {strides = array<i32>} : memref<2x3136xf32, #tpu.memory_space<vmem>>, vector<2x64xf32>,
    %c28 = arith.constant 28 : index
    %c0_38 = arith.constant 0 : index
    %37 = vector.load %arg8[%c28, %c0_38] : memref<98x64xf32, #tpu.memory_space<vmem>>, vector<2x64xf32>
    %c0_39 = arith.constant 0 : index
    %c896 = arith.constant 896 : index
    %38 = vector.load %arg9[%c0_39, %c896] : memref<2x3136xf32, #tpu.memory_space<vmem>>, vector<2x64xf32>
    tpu.vector_store %arg9[%c0_39, %c896], %37 {strides = array<i32>} : memref<2x3136xf32, #tpu.memory_space<vmem>>, vector<2x64xf32>,
    %c30 = arith.constant 30 : index
    %c0_40 = arith.constant 0 : index
    %39 = vector.load %arg8[%c30, %c0_40] : memref<98x64xf32, #tpu.memory_space<vmem>>, vector<2x64xf32>
    %c0_41 = arith.constant 0 : index
    %c960 = arith.constant 960 : index
    %40 = vector.load %arg9[%c0_41, %c960] : memref<2x3136xf32, #tpu.memory_space<vmem>>, vector<2x64xf32>
    tpu.vector_store %arg9[%c0_41, %c960], %39 {strides = array<i32>} : memref<2x3136xf32, #tpu.memory_space<vmem>>, vector<2x64xf32>,
    %c32 = arith.constant 32 : index
    %c0_42 = arith.constant 0 : index
    %41 = vector.load %arg8[%c32, %c0_42] : memref<98x64xf32, #tpu.memory_space<vmem>>, vector<2x64xf32>
    %c0_43 = arith.constant 0 : index
    %c1024 = arith.constant 1024 : index
    %42 = vector.load %arg9[%c0_43, %c1024] : memref<2x3136xf32, #tpu.memory_space<vmem>>, vector<2x64xf32>
    tpu.vector_store %arg9[%c0_43, %c1024], %41 {strides = array<i32>} : memref<2x3136xf32, #tpu.memory_space<vmem>>, vector<2x64xf32>,
    %c34 = arith.constant 34 : index
    %c0_44 = arith.constant 0 : index
    %43 = vector.load %arg8[%c34, %c0_44] : memref<98x64xf32, #tpu.memory_space<vmem>>, vector<2x64xf32>
    %c0_45 = arith.constant 0 : index
    %c1088 = arith.constant 1088 : index
    %44 = vector.load %arg9[%c0_45, %c1088] : memref<2x3136xf32, #tpu.memory_space<vmem>>, vector<2x64xf32>
    tpu.vector_store %arg9[%c0_45, %c1088], %43 {strides = array<i32>} : memref<2x3136xf32, #tpu.memory_space<vmem>>, vector<2x64xf32>,
    %c36 = arith.constant 36 : index
    %c0_46 = arith.constant 0 : index
    %45 = vector.load %arg8[%c36, %c0_46] : memref<98x64xf32, #tpu.memory_space<vmem>>, vector<2x64xf32>
    %c0_47 = arith.constant 0 : index
    %c1152 = arith.constant 1152 : index
    %46 = vector.load %arg9[%c0_47, %c1152] : memref<2x3136xf32, #tpu.memory_space<vmem>>, vector<2x64xf32>
    tpu.vector_store %arg9[%c0_47, %c1152], %45 {strides = array<i32>} : memref<2x3136xf32, #tpu.memory_space<vmem>>, vector<2x64xf32>,
    %c38 = arith.constant 38 : index
    %c0_48 = arith.constant 0 : index
    %47 = vector.load %arg8[%c38, %c0_48] : memref<98x64xf32, #tpu.memory_space<vmem>>, vector<2x64xf32>
    %c0_49 = arith.constant 0 : index
    %c1216 = arith.constant 1216 : index
    %48 = vector.load %arg9[%c0_49, %c1216] : memref<2x3136xf32, #tpu.memory_space<vmem>>, vector<2x64xf32>
    tpu.vector_store %arg9[%c0_49, %c1216], %47 {strides = array<i32>} : memref<2x3136xf32, #tpu.memory_space<vmem>>, vector<2x64xf32>,
    %c40 = arith.constant 40 : index
    %c0_50 = arith.constant 0 : index
    %49 = vector.load %arg8[%c40, %c0_50] : memref<98x64xf32, #tpu.memory_space<vmem>>, vector<2x64xf32>
    %c0_51 = arith.constant 0 : index
    %c1280 = arith.constant 1280 : index
    %50 = vector.load %arg9[%c0_51, %c1280] : memref<2x3136xf32, #tpu.memory_space<vmem>>, vector<2x64xf32>
    tpu.vector_store %arg9[%c0_51, %c1280], %49 {strides = array<i32>} : memref<2x3136xf32, #tpu.memory_space<vmem>>, vector<2x64xf32>,
    %c42 = arith.constant 42 : index
    %c0_52 = arith.constant 0 : index
    %51 = vector.load %arg8[%c42, %c0_52] : memref<98x64xf32, #tpu.memory_space<vmem>>, vector<2x64xf32>
    %c0_53 = arith.constant 0 : index
    %c1344 = arith.constant 1344 : index
    %52 = vector.load %arg9[%c0_53, %c1344] : memref<2x3136xf32, #tpu.memory_space<vmem>>, vector<2x64xf32>
    tpu.vector_store %arg9[%c0_53, %c1344], %51 {strides = array<i32>} : memref<2x3136xf32, #tpu.memory_space<vmem>>, vector<2x64xf32>,
    %c44 = arith.constant 44 : index
    %c0_54 = arith.constant 0 : index
    %53 = vector.load %arg8[%c44, %c0_54] : memref<98x64xf32, #tpu.memory_space<vmem>>, vector<2x64xf32>
    %c0_55 = arith.constant 0 : index
    %c1408 = arith.constant 1408 : index
    %54 = vector.load %arg9[%c0_55, %c1408] : memref<2x3136xf32, #tpu.memory_space<vmem>>, vector<2x64xf32>
    tpu.vector_store %arg9[%c0_55, %c1408], %53 {strides = array<i32>} : memref<2x3136xf32, #tpu.memory_space<vmem>>, vector<2x64xf32>,
    %c46 = arith.constant 46 : index
    %c0_56 = arith.constant 0 : index
    %55 = vector.load %arg8[%c46, %c0_56] : memref<98x64xf32, #tpu.memory_space<vmem>>, vector<2x64xf32>
    %c0_57 = arith.constant 0 : index
    %c1472 = arith.constant 1472 : index
    %56 = vector.load %arg9[%c0_57, %c1472] : memref<2x3136xf32, #tpu.memory_space<vmem>>, vector<2x64xf32>
    tpu.vector_store %arg9[%c0_57, %c1472], %55 {strides = array<i32>} : memref<2x3136xf32, #tpu.memory_space<vmem>>, vector<2x64xf32>,
    %c48 = arith.constant 48 : index
    %c0_58 = arith.constant 0 : index
    %57 = vector.load %arg8[%c48, %c0_58] : memref<98x64xf32, #tpu.memory_space<vmem>>, vector<2x64xf32>
    %c0_59 = arith.constant 0 : index
    %c1536 = arith.constant 1536 : index
    %58 = vector.load %arg9[%c0_59, %c1536] : memref<2x3136xf32, #tpu.memory_space<vmem>>, vector<2x64xf32>
    tpu.vector_store %arg9[%c0_59, %c1536], %57 {strides = array<i32>} : memref<2x3136xf32, #tpu.memory_space<vmem>>, vector<2x64xf32>,
    %c50 = arith.constant 50 : index
    %c0_60 = arith.constant 0 : index
    %59 = vector.load %arg8[%c50, %c0_60] : memref<98x64xf32, #tpu.memory_space<vmem>>, vector<2x64xf32>
    %c0_61 = arith.constant 0 : index
    %c1600 = arith.constant 1600 : index
    %60 = vector.load %arg9[%c0_61, %c1600] : memref<2x3136xf32, #tpu.memory_space<vmem>>, vector<2x64xf32>
    tpu.vector_store %arg9[%c0_61, %c1600], %59 {strides = array<i32>} : memref<2x3136xf32, #tpu.memory_space<vmem>>, vector<2x64xf32>,
    %c52 = arith.constant 52 : index
    %c0_62 = arith.constant 0 : index
    %61 = vector.load %arg8[%c52, %c0_62] : memref<98x64xf32, #tpu.memory_space<vmem>>, vector<2x64xf32>
    %c0_63 = arith.constant 0 : index
    %c1664 = arith.constant 1664 : index
    %62 = vector.load %arg9[%c0_63, %c1664] : memref<2x3136xf32, #tpu.memory_space<vmem>>, vector<2x64xf32>
    tpu.vector_store %arg9[%c0_63, %c1664], %61 {strides = array<i32>} : memref<2x3136xf32, #tpu.memory_space<vmem>>, vector<2x64xf32>,
    %c54 = arith.constant 54 : index
    %c0_64 = arith.constant 0 : index
    %63 = vector.load %arg8[%c54, %c0_64] : memref<98x64xf32, #tpu.memory_space<vmem>>, vector<2x64xf32>
    %c0_65 = arith.constant 0 : index
    %c1728 = arith.constant 1728 : index
    %64 = vector.load %arg9[%c0_65, %c1728] : memref<2x3136xf32, #tpu.memory_space<vmem>>, vector<2x64xf32>
    tpu.vector_store %arg9[%c0_65, %c1728], %63 {strides = array<i32>} : memref<2x3136xf32, #tpu.memory_space<vmem>>, vector<2x64xf32>,
    %c56 = arith.constant 56 : index
    %c0_66 = arith.constant 0 : index
    %65 = vector.load %arg8[%c56, %c0_66] : memref<98x64xf32, #tpu.memory_space<vmem>>, vector<2x64xf32>
    %c0_67 = arith.constant 0 : index
    %c1792 = arith.constant 1792 : index
    %66 = vector.load %arg9[%c0_67, %c1792] : memref<2x3136xf32, #tpu.memory_space<vmem>>, vector<2x64xf32>
    tpu.vector_store %arg9[%c0_67, %c1792], %65 {strides = array<i32>} : memref<2x3136xf32, #tpu.memory_space<vmem>>, vector<2x64xf32>,
    %c58 = arith.constant 58 : index
    %c0_68 = arith.constant 0 : index
    %67 = vector.load %arg8[%c58, %c0_68] : memref<98x64xf32, #tpu.memory_space<vmem>>, vector<2x64xf32>
    %c0_69 = arith.constant 0 : index
    %c1856 = arith.constant 1856 : index
    %68 = vector.load %arg9[%c0_69, %c1856] : memref<2x3136xf32, #tpu.memory_space<vmem>>, vector<2x64xf32>
    tpu.vector_store %arg9[%c0_69, %c1856], %67 {strides = array<i32>} : memref<2x3136xf32, #tpu.memory_space<vmem>>, vector<2x64xf32>,
    %c60 = arith.constant 60 : index
    %c0_70 = arith.constant 0 : index
    %69 = vector.load %arg8[%c60, %c0_70] : memref<98x64xf32, #tpu.memory_space<vmem>>, vector<2x64xf32>
    %c0_71 = arith.constant 0 : index
    %c1920 = arith.constant 1920 : index
    %70 = vector.load %arg9[%c0_71, %c1920] : memref<2x3136xf32, #tpu.memory_space<vmem>>, vector<2x64xf32>
    tpu.vector_store %arg9[%c0_71, %c1920], %69 {strides = array<i32>} : memref<2x3136xf32, #tpu.memory_space<vmem>>, vector<2x64xf32>,
    %c62 = arith.constant 62 : index
    %c0_72 = arith.constant 0 : index
    %71 = vector.load %arg8[%c62, %c0_72] : memref<98x64xf32, #tpu.memory_space<vmem>>, vector<2x64xf32>
    %c0_73 = arith.constant 0 : index
    %c1984 = arith.constant 1984 : index
    %72 = vector.load %arg9[%c0_73, %c1984] : memref<2x3136xf32, #tpu.memory_space<vmem>>, vector<2x64xf32>
    tpu.vector_store %arg9[%c0_73, %c1984], %71 {strides = array<i32>} : memref<2x3136xf32, #tpu.memory_space<vmem>>, vector<2x64xf32>,
    %c64_74 = arith.constant 64 : index
    %c0_75 = arith.constant 0 : index
    %73 = vector.load %arg8[%c64_74, %c0_75] : memref<98x64xf32, #tpu.memory_space<vmem>>, vector<2x64xf32>
    %c0_76 = arith.constant 0 : index
    %c2048 = arith.constant 2048 : index
    %74 = vector.load %arg9[%c0_76, %c2048] : memref<2x3136xf32, #tpu.memory_space<vmem>>, vector<2x64xf32>
    tpu.vector_store %arg9[%c0_76, %c2048], %73 {strides = array<i32>} : memref<2x3136xf32, #tpu.memory_space<vmem>>, vector<2x64xf32>,
    %c66 = arith.constant 66 : index
    %c0_77 = arith.constant 0 : index
    %75 = vector.load %arg8[%c66, %c0_77] : memref<98x64xf32, #tpu.memory_space<vmem>>, vector<2x64xf32>
    %c0_78 = arith.constant 0 : index
    %c2112 = arith.constant 2112 : index
    %76 = vector.load %arg9[%c0_78, %c2112] : memref<2x3136xf32, #tpu.memory_space<vmem>>, vector<2x64xf32>
    tpu.vector_store %arg9[%c0_78, %c2112], %75 {strides = array<i32>} : memref<2x3136xf32, #tpu.memory_space<vmem>>, vector<2x64xf32>,
    %c68 = arith.constant 68 : index
    %c0_79 = arith.constant 0 : index
    %77 = vector.load %arg8[%c68, %c0_79] : memref<98x64xf32, #tpu.memory_space<vmem>>, vector<2x64xf32>
    %c0_80 = arith.constant 0 : index
    %c2176 = arith.constant 2176 : index
    %78 = vector.load %arg9[%c0_80, %c2176] : memref<2x3136xf32, #tpu.memory_space<vmem>>, vector<2x64xf32>
    tpu.vector_store %arg9[%c0_80, %c2176], %77 {strides = array<i32>} : memref<2x3136xf32, #tpu.memory_space<vmem>>, vector<2x64xf32>,
    %c70 = arith.constant 70 : index
    %c0_81 = arith.constant 0 : index
    %79 = vector.load %arg8[%c70, %c0_81] : memref<98x64xf32, #tpu.memory_space<vmem>>, vector<2x64xf32>
    %c0_82 = arith.constant 0 : index
    %c2240 = arith.constant 2240 : index
    %80 = vector.load %arg9[%c0_82, %c2240] : memref<2x3136xf32, #tpu.memory_space<vmem>>, vector<2x64xf32>
    tpu.vector_store %arg9[%c0_82, %c2240], %79 {strides = array<i32>} : memref<2x3136xf32, #tpu.memory_space<vmem>>, vector<2x64xf32>,
    %c72 = arith.constant 72 : index
    %c0_83 = arith.constant 0 : index
    %81 = vector.load %arg8[%c72, %c0_83] : memref<98x64xf32, #tpu.memory_space<vmem>>, vector<2x64xf32>
    %c0_84 = arith.constant 0 : index
    %c2304 = arith.constant 2304 : index
    %82 = vector.load %arg9[%c0_84, %c2304] : memref<2x3136xf32, #tpu.memory_space<vmem>>, vector<2x64xf32>
    tpu.vector_store %arg9[%c0_84, %c2304], %81 {strides = array<i32>} : memref<2x3136xf32, #tpu.memory_space<vmem>>, vector<2x64xf32>,
    %c74 = arith.constant 74 : index
    %c0_85 = arith.constant 0 : index
    %83 = vector.load %arg8[%c74, %c0_85] : memref<98x64xf32, #tpu.memory_space<vmem>>, vector<2x64xf32>
    %c0_86 = arith.constant 0 : index
    %c2368 = arith.constant 2368 : index
    %84 = vector.load %arg9[%c0_86, %c2368] : memref<2x3136xf32, #tpu.memory_space<vmem>>, vector<2x64xf32>
    tpu.vector_store %arg9[%c0_86, %c2368], %83 {strides = array<i32>} : memref<2x3136xf32, #tpu.memory_space<vmem>>, vector<2x64xf32>,
    %c76 = arith.constant 76 : index
    %c0_87 = arith.constant 0 : index
    %85 = vector.load %arg8[%c76, %c0_87] : memref<98x64xf32, #tpu.memory_space<vmem>>, vector<2x64xf32>
    %c0_88 = arith.constant 0 : index
    %c2432 = arith.constant 2432 : index
    %86 = vector.load %arg9[%c0_88, %c2432] : memref<2x3136xf32, #tpu.memory_space<vmem>>, vector<2x64xf32>
    tpu.vector_store %arg9[%c0_88, %c2432], %85 {strides = array<i32>} : memref<2x3136xf32, #tpu.memory_space<vmem>>, vector<2x64xf32>,
    %c78 = arith.constant 78 : index
    %c0_89 = arith.constant 0 : index
    %87 = vector.load %arg8[%c78, %c0_89] : memref<98x64xf32, #tpu.memory_space<vmem>>, vector<2x64xf32>
    %c0_90 = arith.constant 0 : index
    %c2496 = arith.constant 2496 : index
    %88 = vector.load %arg9[%c0_90, %c2496] : memref<2x3136xf32, #tpu.memory_space<vmem>>, vector<2x64xf32>
    tpu.vector_store %arg9[%c0_90, %c2496], %87 {strides = array<i32>} : memref<2x3136xf32, #tpu.memory_space<vmem>>, vector<2x64xf32>,
    %c80 = arith.constant 80 : index
    %c0_91 = arith.constant 0 : index
    %89 = vector.load %arg8[%c80, %c0_91] : memref<98x64xf32, #tpu.memory_space<vmem>>, vector<2x64xf32>
    %c0_92 = arith.constant 0 : index
    %c2560 = arith.constant 2560 : index
    %90 = vector.load %arg9[%c0_92, %c2560] : memref<2x3136xf32, #tpu.memory_space<vmem>>, vector<2x64xf32>
    tpu.vector_store %arg9[%c0_92, %c2560], %89 {strides = array<i32>} : memref<2x3136xf32, #tpu.memory_space<vmem>>, vector<2x64xf32>,
    %c82 = arith.constant 82 : index
    %c0_93 = arith.constant 0 : index
    %91 = vector.load %arg8[%c82, %c0_93] : memref<98x64xf32, #tpu.memory_space<vmem>>, vector<2x64xf32>
    %c0_94 = arith.constant 0 : index
    %c2624 = arith.constant 2624 : index
    %92 = vector.load %arg9[%c0_94, %c2624] : memref<2x3136xf32, #tpu.memory_space<vmem>>, vector<2x64xf32>
    tpu.vector_store %arg9[%c0_94, %c2624], %91 {strides = array<i32>} : memref<2x3136xf32, #tpu.memory_space<vmem>>, vector<2x64xf32>,
    %c84 = arith.constant 84 : index
    %c0_95 = arith.constant 0 : index
    %93 = vector.load %arg8[%c84, %c0_95] : memref<98x64xf32, #tpu.memory_space<vmem>>, vector<2x64xf32>
    %c0_96 = arith.constant 0 : index
    %c2688 = arith.constant 2688 : index
    %94 = vector.load %arg9[%c0_96, %c2688] : memref<2x3136xf32, #tpu.memory_space<vmem>>, vector<2x64xf32>
    tpu.vector_store %arg9[%c0_96, %c2688], %93 {strides = array<i32>} : memref<2x3136xf32, #tpu.memory_space<vmem>>, vector<2x64xf32>,
    %c86 = arith.constant 86 : index
    %c0_97 = arith.constant 0 : index
    %95 = vector.load %arg8[%c86, %c0_97] : memref<98x64xf32, #tpu.memory_space<vmem>>, vector<2x64xf32>
    %c0_98 = arith.constant 0 : index
    %c2752 = arith.constant 2752 : index
    %96 = vector.load %arg9[%c0_98, %c2752] : memref<2x3136xf32, #tpu.memory_space<vmem>>, vector<2x64xf32>
    tpu.vector_store %arg9[%c0_98, %c2752], %95 {strides = array<i32>} : memref<2x3136xf32, #tpu.memory_space<vmem>>, vector<2x64xf32>,
    %c88 = arith.constant 88 : index
    %c0_99 = arith.constant 0 : index
    %97 = vector.load %arg8[%c88, %c0_99] : memref<98x64xf32, #tpu.memory_space<vmem>>, vector<2x64xf32>
    %c0_100 = arith.constant 0 : index
    %c2816 = arith.constant 2816 : index
    %98 = vector.load %arg9[%c0_100, %c2816] : memref<2x3136xf32, #tpu.memory_space<vmem>>, vector<2x64xf32>
    tpu.vector_store %arg9[%c0_100, %c2816], %97 {strides = array<i32>} : memref<2x3136xf32, #tpu.memory_space<vmem>>, vector<2x64xf32>,
    %c90 = arith.constant 90 : index
    %c0_101 = arith.constant 0 : index
    %99 = vector.load %arg8[%c90, %c0_101] : memref<98x64xf32, #tpu.memory_space<vmem>>, vector<2x64xf32>
    %c0_102 = arith.constant 0 : index
    %c2880 = arith.constant 2880 : index
    %100 = vector.load %arg9[%c0_102, %c2880] : memref<2x3136xf32, #tpu.memory_space<vmem>>, vector<2x64xf32>
    tpu.vector_store %arg9[%c0_102, %c2880], %99 {strides = array<i32>} : memref<2x3136xf32, #tpu.memory_space<vmem>>, vector<2x64xf32>,
    %c92 = arith.constant 92 : index
    %c0_103 = arith.constant 0 : index
    %101 = vector.load %arg8[%c92, %c0_103] : memref<98x64xf32, #tpu.memory_space<vmem>>, vector<2x64xf32>
    %c0_104 = arith.constant 0 : index
    %c2944 = arith.constant 2944 : index
    %102 = vector.load %arg9[%c0_104, %c2944] : memref<2x3136xf32, #tpu.memory_space<vmem>>, vector<2x64xf32>
    tpu.vector_store %arg9[%c0_104, %c2944], %101 {strides = array<i32>} : memref<2x3136xf32, #tpu.memory_space<vmem>>, vector<2x64xf32>,
    %c94 = arith.constant 94 : index
    %c0_105 = arith.constant 0 : index
    %103 = vector.load %arg8[%c94, %c0_105] : memref<98x64xf32, #tpu.memory_space<vmem>>, vector<2x64xf32>
    %c0_106 = arith.constant 0 : index
    %c3008 = arith.constant 3008 : index
    %104 = vector.load %arg9[%c0_106, %c3008] : memref<2x3136xf32, #tpu.memory_space<vmem>>, vector<2x64xf32>
    tpu.vector_store %arg9[%c0_106, %c3008], %103 {strides = array<i32>} : memref<2x3136xf32, #tpu.memory_space<vmem>>, vector<2x64xf32>,
    %c96 = arith.constant 96 : index
    %c0_107 = arith.constant 0 : index
    %105 = vector.load %arg8[%c96, %c0_107] : memref<98x64xf32, #tpu.memory_space<vmem>>, vector<2x64xf32>
    %c0_108 = arith.constant 0 : index
    %c3072 = arith.constant 3072 : index
    %106 = vector.load %arg9[%c0_108, %c3072] : memref<2x3136xf32, #tpu.memory_space<vmem>>, vector<2x64xf32>
    tpu.vector_store %arg9[%c0_108, %c3072], %105 {strides = array<i32>} : memref<2x3136xf32, #tpu.memory_space<vmem>>, vector<2x64xf32>,
    %c0_109 = arith.constant 0 : index
    %c0_110 = arith.constant 0 : index
    %107 = vector.load %arg9[%c0_109, %c0_110] : memref<2x3136xf32, #tpu.memory_space<vmem>>, vector<2x3136xf32>
    %c0_111 = arith.constant 0 : index
    %c0_112 = arith.constant 0 : index
    %108 = vector.load %arg3[%c0_111, %c0_112] : memref<3136x128xf32, #tpu.memory_space<vmem>>, vector<3136x128xf32>
    %cst_113 = arith.constant dense<0.000000e+00> : vector<2x128xf32>
    %109 = tpu.matmul %107, %108, %cst_113 {dimension_numbers = #tpu.dot_dimension_numbers<[1], [0], [0], [1], [0, 0, 1, 1], [], []>} : vector<2x3136xf32>, vector<3136x128xf32>, vector<2x128xf32> -> vector<2x128xf32>
    %c0_114 = arith.constant 0 : index
    %c0_115 = arith.constant 0 : index
    %110 = vector.load %arg4[%c0_114, %c0_115] : memref<1x128xf32, #tpu.memory_space<vmem>>, vector<1x128xf32>
    %111 = vector.broadcast %110 : vector<1x128xf32> to vector<2x128xf32>
    %112 = arith.addf %109, %111 : vector<2x128xf32>
    %cst_116 = arith.constant 0.000000e+00 : f32
    %113 = vector.broadcast %cst_116 : f32 to vector<2x128xf32>
    %114 = arith.maximumf %112, %113 : vector<2x128xf32>
    %c0_117 = arith.constant 0 : index
    %c0_118 = arith.constant 0 : index
    %115 = vector.load %arg5[%c0_117, %c0_118] : memref<128x128xf32, #tpu.memory_space<vmem>>, vector<128x128xf32>
    %cst_119 = arith.constant dense<0.000000e+00> : vector<2x128xf32>
    %116 = tpu.matmul %114, %115, %cst_119 {dimension_numbers = #tpu.dot_dimension_numbers<[1], [0], [0], [1], [0, 0, 1, 1], [], []>} : vector<2x128xf32>, vector<128x128xf32>, vector<2x128xf32> -> vector<2x128xf32>
    %c0_120 = arith.constant 0 : index
    %c0_121 = arith.constant 0 : index
    %117 = vector.load %arg6[%c0_120, %c0_121] : memref<1x128xf32, #tpu.memory_space<vmem>>, vector<1x128xf32>
    %118 = vector.broadcast %117 : vector<1x128xf32> to vector<2x128xf32>
    %119 = arith.addf %116, %118 : vector<2x128xf32>
    %c0_122 = arith.constant 0 : index
    %c0_123 = arith.constant 0 : index
    %120 = vector.load %arg7[%c0_122, %c0_123] : memref<2x128xf32, #tpu.memory_space<vmem>>, vector<2x128xf32>
    tpu.vector_store %arg7[%c0_122, %c0_123], %119 {strides = array<i32>} : memref<2x128xf32, #tpu.memory_space<vmem>>, vector<2x128xf32>,
    return
  }
}

</mosaic_0001>

<bundles_post_ra>
// kernel: actor_critic_forward.3
= control target key start
LH: loop header
LB: loop body
LE: loop exit
PB: predicated region body
PF: predicated region fallthrough
CT: control target
= control target key end

     0   :  { %8 = vsyncpa [#allocation3], 0  ;;  %s2281_s0 = inlined_call_operand.vmem [shape: f32[882,32], index: 0, kind: input, shape index: {}]   ;;  %s2282_s1 = inlined_call_operand.hbm [shape: f32[32,32], index: 1, kind: input, shape index: {}]   ;;  %s2283_s2 = inlined_call_operand.hbm [shape: f32[1,32], index: 2, kind: input, shape index: {}]   ;;  %s2284_s3 = inlined_call_operand.vmem [shape: f32[882,32], index: 3, kind: output, shape index: {}]  }
   0x1   :  { %s16_s14 = sshll.u32 %s2282_s1, 4  ;;  %s17_s14 = int_to_ptr.hbm [resolvable:$true] %s16_s14 }
   0x2   :  { %9 = vsyncpa [#allocation5], 0  ;;  %s1257_s15 = smov [#allocation2]   ;;  %s30_s19 = sshll.u32 %s2283_s2, 4  ;;  %s31_s19 = int_to_ptr.hbm [resolvable:$true] %s30_s19 }
   0x3   :  { %s18_s16 = sshll.u32 %s1257_s15, 4  ;;  %s1258_s20 = smov 128   ;;  %s19_s16 = int_to_ptr.vmem [resolvable:$true] %s18_s16 }
   0x4   :  { %s1259_s21 = smov 8   ;;  %s1260_s22 = smov [#allocation4]  }
   0x5   :  { %24 = dma.hbm_to_vmem [thread:$0]  %s17_s14, 512, %s19_s16, [#allocation3], %s1258_s20, %s1258_s20, %s1259_s21  }
   0x6   :  { %s32_s23 = sshll.u32 %s1260_s22, 4  ;;  %s33_s23 = int_to_ptr.vmem [resolvable:$true] %s32_s23 }
   0x7   :  { %35 = dma.hbm_to_vmem [thread:$0]  %s31_s19, 16, %s33_s23, [#allocation5]  }
   0x8   :  { %1253 = dma.done.wait [#allocation3], 512  }
   0x9   :  { %1254 = vsyncadd [#allocation3], 4294966784 }
   0xa   :  { %1255 = dma.done.wait [#allocation5], 16  }
   0xb   :  { %1256 = vsyncadd [#allocation5], 4294967280  ;;  %v158_v0 = vld [vmem:[#allocation2 + $0x18] sm:$0xff]  ;;  %v157_v1 = vld [vmem:[#allocation2 + $0x10] sm:$0xff]  ;;  %vm163_vm0 = vcmask 261120   ;;  %vm1068_vm1 = vcmask 254976  }
   0xc   :  { %1188 = vmatpush.msra.mxu2 %v158_v0  ;;  %509 = vmatpush.msra.mxu0 %v158_v0  ;;  %v156_v2 = vld [vmem:[#allocation2 + $0x8] sm:$0xff]  ;;  %v155_v3 = vld [vmem:[#allocation2] sm:$0xff]  ;;  %v102_v12 = vld [vmem:[%s2281_s0 + $0x1d0] sm:$0xff] }
   0xd   :  { %1187 = vmatpush.msra.mxu1 %v158_v0  ;;  %1189 = vmatpush.msra.mxu3 %v158_v0  ;;  %v100_v4 = vld [vmem:[%s2281_s0 + $0x1c0] sm:$0xff]  ;;  %v101_v8 = vld [vmem:[%s2281_s0 + $0x1c8] sm:$0xff]  ;;  %v46_v13 = vld [vmem:[%s2281_s0 + $0x10] sm:$0xff] }
   0xe   :  { %1191 = vmatpush.msra.mxu2 %v157_v1  ;;  %510 = vmatpush.msra.mxu0 %v157_v1  ;;  %v44_v5 = vld [vmem:[%s2281_s0] sm:$0xff]  ;;  %v45_v9 = vld [vmem:[%s2281_s0 + $0x8] sm:$0xff]  ;;  %v74_v14 = vld [vmem:[%s2281_s0 + $0xf0] sm:$0xff] }
   0xf   :  { %1190 = vmatpush.msra.mxu1 %v157_v1  ;;  %1192 = vmatpush.msra.mxu3 %v157_v1  ;;  %v72_v6 = vld [vmem:[%s2281_s0 + $0xe0] sm:$0xff]  ;;  %v73_v10 = vld [vmem:[%s2281_s0 + $0xe8] sm:$0xff]  ;;  %v130_v15 = vld [vmem:[%s2281_s0 + $0x2b0] sm:$0xff] }
  0x10   :  { %1194 = vmatpush.msra.mxu2 %v156_v2  ;;  %511 = vmatpush.msra.mxu0 %v156_v2  ;;  %v128_v7 = vld [vmem:[%s2281_s0 + $0x2a0] sm:$0xff]  ;;  %v129_v11 = vld [vmem:[%s2281_s0 + $0x2a8] sm:$0xff]  ;;  %v103_v16 = vld [vmem:[%s2281_s0 + $0x1d8] sm:$0xff] }
  0x11   :  { %1193 = vmatpush.msra.mxu1 %v156_v2  ;;  %1195 = vmatpush.msra.mxu3 %v156_v2  ;;  %v47_v17 = vld [vmem:[%s2281_s0 + $0x18] sm:$0xff]  ;;  %v104_v20 = vld [vmem:[%s2281_s0 + $0x1e0] sm:$0xff]  ;;  %v105_v24 = vld [vmem:[%s2281_s0 + $0x1e8] sm:$0xff] }
  0x12   :  { %1197 = vmatpush.msra.mxu2 %v155_v3  ;;  %512 = vmatpush.msra.mxu0 %v155_v3  ;;  %v75_v18 = vld [vmem:[%s2281_s0 + $0xf8] sm:$0xff]  ;;  %v48_v21 = vld [vmem:[%s2281_s0 + $0x20] sm:$0xff]  ;;  %v49_v25 = vld [vmem:[%s2281_s0 + $0x28] sm:$0xff] }
  0x13   :  { %1132 = vmatmul.msk.f32.vlgmr.msra.gmra.mxu2 %vm163_vm0, %v100_v4  ;;  %1196 = vmatpush.msra.mxu1 %v155_v3  ;;  %v131_v19 = vld [vmem:[%s2281_s0 + $0x2b8] sm:$0xff]  ;;  %v76_v22 = vld [vmem:[%s2281_s0 + $0x100] sm:$0xff]  ;;  %v77_v26 = vld [vmem:[%s2281_s0 + $0x108] sm:$0xff] }
  0x14   :  { %1076 = vmatmul.msk.f32.vlgmr.msra.gmra.mxu0 %vm163_vm0, %v44_v5  ;;  %1104 = vmatmul.msk.f32.vlgmr.msra.gmra.mxu1 %vm163_vm0, %v72_v6  ;;  %v132_v23 = vld [vmem:[%s2281_s0 + $0x2c0] sm:$0xff]  ;;  %v133_v27 = vld [vmem:[%s2281_s0 + $0x2c8] sm:$0xff]  ;;  %v106_v28 = vld [vmem:[%s2281_s0 + $0x1f0] sm:$0xff] }
  0x15   :  { %1198 = vmatpush.msra.mxu3 %v155_v3  ;;  %v50_v29 = vld [vmem:[%s2281_s0 + $0x30] sm:$0xff]  ;;  %v107_v32 = vld [vmem:[%s2281_s0 + $0x1f8] sm:$0xff]  ;;  %v108_v36 = vld [vmem:[%s2281_s0 + $0x200] sm:$0xff] }
  0x16   :  { %1160 = vmatmul.msk.f32.vlgmr.msra.gmra.mxu3 %vm163_vm0, %v128_v7  ;;  %v78_v30 = vld [vmem:[%s2281_s0 + $0x110] sm:$0xff]  ;;  %v51_v33 = vld [vmem:[%s2281_s0 + $0x38] sm:$0xff]  ;;  %v52_v37 = vld [vmem:[%s2281_s0 + $0x40] sm:$0xff] }
  0x17   :  { %v134_v31 = vld [vmem:[%s2281_s0 + $0x2d0] sm:$0xff]  ;;  %v79_v34 = vld [vmem:[%s2281_s0 + $0x118] sm:$0xff]  ;;  %v80_v38 = vld [vmem:[%s2281_s0 + $0x120] sm:$0xff] }
  0x18   :  { %v135_v35 = vld [vmem:[%s2281_s0 + $0x2d8] sm:$0xff]  ;;  %v136_v39 = vld [vmem:[%s2281_s0 + $0x2e0] sm:$0xff]  ;;  %v109_v40 = vld [vmem:[%s2281_s0 + $0x208] sm:$0xff] }
  0x19   :  { %v53_v41 = vld [vmem:[%s2281_s0 + $0x48] sm:$0xff]  ;;  %v110_v44 = vld [vmem:[%s2281_s0 + $0x210] sm:$0xff]  ;;  %v111_v48 = vld [vmem:[%s2281_s0 + $0x218] sm:$0xff] }
  0x1a   :  { %v81_v42 = vld [vmem:[%s2281_s0 + $0x128] sm:$0xff]  ;;  %v54_v45 = vld [vmem:[%s2281_s0 + $0x50] sm:$0xff]  ;;  %v55_v49 = vld [vmem:[%s2281_s0 + $0x58] sm:$0xff] }
  0x1b   :  { %1133 = vmatmul.msk.f32.gmra.mxu2 %vm163_vm0, %v101_v8  ;;  %v137_v43 = vld [vmem:[%s2281_s0 + $0x2e8] sm:$0xff]  ;;  %v82_v46 = vld [vmem:[%s2281_s0 + $0x130] sm:$0xff]  ;;  %v83_v50 = vld [vmem:[%s2281_s0 + $0x138] sm:$0xff] }
  0x1c   :  { %1077 = vmatmul.msk.f32.gmra.mxu0 %vm163_vm0, %v45_v9  ;;  %1105 = vmatmul.msk.f32.gmra.mxu1 %vm163_vm0, %v73_v10  ;;  %v138_v47 = vld [vmem:[%s2281_s0 + $0x2f0] sm:$0xff]  ;;  %v139_v51 = vld [vmem:[%s2281_s0 + $0x2f8] sm:$0xff]  ;;  %v112_v52 = vld [vmem:[%s2281_s0 + $0x220] sm:$0xff] }
  0x1d   :  { %v56_v53 = vld [vmem:[%s2281_s0 + $0x60] sm:$0xff]  ;;  %v113_v56 = vld [vmem:[%s2281_s0 + $0x228] sm:$0xff]  ;;  %v114_v60 = vld [vmem:[%s2281_s0 + $0x230] sm:$0xff] }
  0x1e   :  { %1161 = vmatmul.msk.f32.gmra.mxu3 %vm163_vm0, %v129_v11  ;;  %v84_v54 = vld [vmem:[%s2281_s0 + $0x140] sm:$0xff]  ;;  %v57_v57 = vld [vmem:[%s2281_s0 + $0x68] sm:$0xff]  ;;  %v58_v61 = vld [vmem:[%s2281_s0 + $0x70] sm:$0xff] }
  0x1f   :  { %v140_v55 = vld [vmem:[%s2281_s0 + $0x300] sm:$0xff]  ;;  %v85_v58 = vld [vmem:[%s2281_s0 + $0x148] sm:$0xff]  ;;  %v86_v62 = vld [vmem:[%s2281_s0 + $0x150] sm:$0xff] }
  0x20   :  { %v141_v59 = vld [vmem:[%s2281_s0 + $0x308] sm:$0xff]  ;;  %v142_v63 = vld [vmem:[%s2281_s0 + $0x310] sm:$0xff]  ;;  %v115_v0 = vld [vmem:[%s2281_s0 + $0x238] sm:$0xff] }
  0x21   :  { %v59_v1 = vld [vmem:[%s2281_s0 + $0x78] sm:$0xff]  ;;  %v1543_v4 = vld [vmem:[#allocation4] ss:$0 sm:$0xff] }
  0x22   :  { %v87_v2 = vld [vmem:[%s2281_s0 + $0x158] sm:$0xff]  ;;  %v116_v5 = vld [vmem:[%s2281_s0 + $0x240] sm:$0xff] }
  0x23   :  { %1134 = vmatmul.msk.f32.gmra.mxu2 %vm163_vm0, %v102_v12  ;;  %v143_v3 = vld [vmem:[%s2281_s0 + $0x318] sm:$0xff]  ;;  %v60_v8 = vld [vmem:[%s2281_s0 + $0x80] sm:$0xff] }
  0x24   :  { %1078 = vmatmul.msk.f32.gmra.mxu0 %vm163_vm0, %v46_v13  ;;  %1106 = vmatmul.msk.f32.gmra.mxu1 %vm163_vm0, %v74_v14  ;;  %v88_v9 = vld [vmem:[%s2281_s0 + $0x160] sm:$0xff] }
  0x25   :  { %v144_v12 = vld [vmem:[%s2281_s0 + $0x320] sm:$0xff] }
  0x26   :  { %1162 = vmatmul.msk.f32.gmra.mxu3 %vm163_vm0, %v130_v15 }
  0x2b   :  { %1135 = vmatmul.msk.f32.gmra.mxu2 %vm163_vm0, %v103_v16 }
  0x2c   :  { %1079 = vmatmul.msk.f32.gmra.mxu0 %vm163_vm0, %v47_v17  ;;  %1107 = vmatmul.msk.f32.gmra.mxu1 %vm163_vm0, %v75_v18  ;;  %v117_v17 = vld [vmem:[%s2281_s0 + $0x248] sm:$0xff] }
  0x2e   :  { %1163 = vmatmul.msk.f32.gmra.mxu3 %vm163_vm0, %v131_v19 }
  0x33   :  { %1136 = vmatmul.msk.f32.gmra.mxu2 %vm163_vm0, %v104_v20 }
  0x34   :  { %1080 = vmatmul.msk.f32.gmra.mxu0 %vm163_vm0, %v48_v21  ;;  %1108 = vmatmul.msk.f32.gmra.mxu1 %vm163_vm0, %v76_v22  ;;  %v61_v21 = vld [vmem:[%s2281_s0 + $0x88] sm:$0xff] }
  0x35   :  { %v89_v22 = vld [vmem:[%s2281_s0 + $0x168] sm:$0xff] }
  0x36   :  { %1164 = vmatmul.msk.f32.gmra.mxu3 %vm163_vm0, %v132_v23 }
  0x3b   :  { %1137 = vmatmul.msk.f32.gmra.mxu2 %vm163_vm0, %v105_v24 }
  0x3c   :  { %1081 = vmatmul.msk.f32.gmra.mxu0 %vm163_vm0, %v49_v25  ;;  %1109 = vmatmul.msk.f32.gmra.mxu1 %vm163_vm0, %v77_v26 }
  0x3e   :  { %1165 = vmatmul.msk.f32.gmra.mxu3 %vm163_vm0, %v133_v27  ;;  %v145_v27 = vld [vmem:[%s2281_s0 + $0x328] sm:$0xff] }
  0x43   :  { %1138 = vmatmul.msk.f32.gmra.mxu2 %vm163_vm0, %v106_v28 }
  0x44   :  { %1082 = vmatmul.msk.f32.gmra.mxu0 %vm163_vm0, %v50_v29  ;;  %1110 = vmatmul.msk.f32.gmra.mxu1 %vm163_vm0, %v78_v30 }
  0x46   :  { %1166 = vmatmul.msk.f32.gmra.mxu3 %vm163_vm0, %v134_v31 }
  0x4b   :  { %1139 = vmatmul.msk.f32.gmra.mxu2 %vm163_vm0, %v107_v32 }
  0x4c   :  { %1083 = vmatmul.msk.f32.gmra.mxu0 %vm163_vm0, %v51_v33  ;;  %1111 = vmatmul.msk.f32.gmra.mxu1 %vm163_vm0, %v79_v34  ;;  %v118_v33 = vld [vmem:[%s2281_s0 + $0x250] sm:$0xff] }
  0x4e   :  { %1167 = vmatmul.msk.f32.gmra.mxu3 %vm163_vm0, %v135_v35 }
  0x53   :  { %1140 = vmatmul.msk.f32.gmra.mxu2 %vm163_vm0, %v108_v36 }
  0x54   :  { %1084 = vmatmul.msk.f32.gmra.mxu0 %vm163_vm0, %v52_v37  ;;  %1112 = vmatmul.msk.f32.gmra.mxu1 %vm163_vm0, %v80_v38  ;;  %v62_v37 = vld [vmem:[%s2281_s0 + $0x90] sm:$0xff] }
  0x55   :  { %v90_v38 = vld [vmem:[%s2281_s0 + $0x170] sm:$0xff] }
  0x56   :  { %1168 = vmatmul.msk.f32.gmra.mxu3 %vm163_vm0, %v136_v39 }
  0x5b   :  { %1141 = vmatmul.msk.f32.gmra.mxu2 %vm163_vm0, %v109_v40 }
  0x5c   :  { %1085 = vmatmul.msk.f32.gmra.mxu0 %vm163_vm0, %v53_v41  ;;  %1113 = vmatmul.msk.f32.gmra.mxu1 %vm163_vm0, %v81_v42 }
  0x5e   :  { %1169 = vmatmul.msk.f32.gmra.mxu3 %vm163_vm0, %v137_v43  ;;  %v146_v43 = vld [vmem:[%s2281_s0 + $0x330] sm:$0xff] }
  0x63   :  { %1142 = vmatmul.msk.f32.gmra.mxu2 %vm163_vm0, %v110_v44 }
  0x64   :  { %1086 = vmatmul.msk.f32.gmra.mxu0 %vm163_vm0, %v54_v45  ;;  %1114 = vmatmul.msk.f32.gmra.mxu1 %vm163_vm0, %v82_v46 }
  0x66   :  { %1170 = vmatmul.msk.f32.gmra.mxu3 %vm163_vm0, %v138_v47 }
  0x6b   :  { %1143 = vmatmul.msk.f32.gmra.mxu2 %vm163_vm0, %v111_v48 }
  0x6c   :  { %1087 = vmatmul.msk.f32.gmra.mxu0 %vm163_vm0, %v55_v49  ;;  %1115 = vmatmul.msk.f32.gmra.mxu1 %vm163_vm0, %v83_v50  ;;  %v119_v49 = vld [vmem:[%s2281_s0 + $0x258] sm:$0xff] }
  0x6e   :  { %1171 = vmatmul.msk.f32.gmra.mxu3 %vm163_vm0, %v139_v51 }
  0x73   :  { %1144 = vmatmul.msk.f32.gmra.mxu2 %vm163_vm0, %v112_v52 }
  0x74   :  { %1088 = vmatmul.msk.f32.gmra.mxu0 %vm163_vm0, %v56_v53  ;;  %1116 = vmatmul.msk.f32.gmra.mxu1 %vm163_vm0, %v84_v54  ;;  %v63_v53 = vld [vmem:[%s2281_s0 + $0x98] sm:$0xff] }
  0x75   :  { %v91_v54 = vld [vmem:[%s2281_s0 + $0x178] sm:$0xff] }
  0x76   :  { %1172 = vmatmul.msk.f32.gmra.mxu3 %vm163_vm0, %v140_v55 }
  0x7b   :  { %1145 = vmatmul.msk.f32.gmra.mxu2 %vm163_vm0, %v113_v56 }
  0x7c   :  { %1089 = vmatmul.msk.f32.gmra.mxu0 %vm163_vm0, %v57_v57  ;;  %1117 = vmatmul.msk.f32.gmra.mxu1 %vm163_vm0, %v85_v58 }
  0x7e   :  { %1173 = vmatmul.msk.f32.gmra.mxu3 %vm163_vm0, %v141_v59  ;;  %v147_v59 = vld [vmem:[%s2281_s0 + $0x338] sm:$0xff] }
  0x83   :  { %1146 = vmatmul.msk.f32.gmra.mxu2 %vm163_vm0, %v114_v60 }
  0x84   :  { %1090 = vmatmul.msk.f32.gmra.mxu0 %vm163_vm0, %v58_v61  ;;  %1118 = vmatmul.msk.f32.gmra.mxu1 %vm163_vm0, %v86_v62 }
  0x86   :  { %1174 = vmatmul.msk.f32.gmra.mxu3 %vm163_vm0, %v142_v63 }
  0x8b   :  { %1147 = vmatmul.msk.f32.gmra.mxu2 %vm163_vm0, %v115_v0 }
  0x8c   :  { %1091 = vmatmul.msk.f32.gmra.mxu0 %vm163_vm0, %v59_v1  ;;  %1119 = vmatmul.msk.f32.gmra.mxu1 %vm163_vm0, %v87_v2  ;;  %v120_v1 = vld [vmem:[%s2281_s0 + $0x260] sm:$0xff] }
  0x8e   :  { %1175 = vmatmul.msk.f32.gmra.mxu3 %vm163_vm0, %v143_v3 }
  0x91   :  { %v514_v6 = vpop.f32.mrf.mxu0  ;;  %v598_v7 = vpop.f32.mrf.mxu1 }
  0x92   :  { %v515_v10 = vadd.f32 %v1543_v4, %v514_v6  ;;  %v599_v11 = vadd.f32 %v1543_v4, %v598_v7  ;;  %v64_v6 = vld [vmem:[%s2281_s0 + $0xa0] sm:$0xff] }
  0x93   :  { %1148 = vmatmul.msk.f32.gmra.mxu2 %vm163_vm0, %v116_v5  ;;  %v92_v7 = vld [vmem:[%s2281_s0 + $0x180] sm:$0xff] }
  0x94   :  { %v847_v13 = vmax.f32 %v515_v10, 0.0  ;;  %v875_v14 = vmax.f32 %v599_v11, 0.0  ;;  %1092 = vmatmul.msk.f32.gmra.mxu0 %vm163_vm0, %v60_v8  ;;  %1120 = vmatmul.msk.f32.gmra.mxu1 %vm163_vm0, %v88_v9 }
  0x96   :  { %958 = vst.msk [vmem:[%s2284_s3] sm:$0xff] %vm163_vm0, %v847_v13  ;;  %v682_v15 = vpop.f32.mrf.mxu2  ;;  %1176 = vmatmul.msk.f32.gmra.mxu3 %vm163_vm0, %v144_v12  ;;  %v148_v12 = vld [vmem:[%s2281_s0 + $0x340] sm:$0xff] }
  0x97   :  { %986 = vst.msk [vmem:[%s2284_s3 + $0xe0] sm:$0xff] %vm163_vm0, %v875_v14  ;;  %v683_v16 = vadd.f32 %v1543_v4, %v682_v15 }
  0x99   :  { %v903_v18 = vmax.f32 %v683_v16, 0.0  ;;  %v517_v19 = vpop.f32.mrf.mxu0  ;;  %v601_v20 = vpop.f32.mrf.mxu1 }
  0x9a   :  { %v518_v23 = vadd.f32 %v1543_v4, %v517_v19  ;;  %v602_v24 = vadd.f32 %v1543_v4, %v601_v20  ;;  %v766_v25 = vpop.f32.mrf.mxu3 }
  0x9b   :  { %1014 = vst.msk [vmem:[%s2284_s3 + $0x1c0] sm:$0xff] %vm163_vm0, %v903_v18  ;;  %1149 = vmatmul.msk.f32.gmra.mxu2 %vm163_vm0, %v117_v17  ;;  %v767_v26 = vadd.f32 %v1543_v4, %v766_v25  ;;  %v121_v18 = vld [vmem:[%s2281_s0 + $0x268] sm:$0xff] }
  0x9c   :  { %v848_v28 = vmax.f32 %v518_v23, 0.0  ;;  %v876_v29 = vmax.f32 %v602_v24, 0.0  ;;  %1093 = vmatmul.msk.f32.gmra.mxu0 %vm163_vm0, %v61_v21  ;;  %1121 = vmatmul.msk.f32.gmra.mxu1 %vm163_vm0, %v89_v22  ;;  %v65_v22 = vld [vmem:[%s2281_s0 + $0xa8] sm:$0xff] }
  0x9d   :  { %v931_v30 = vmax.f32 %v767_v26, 0.0  ;;  %v93_v23 = vld [vmem:[%s2281_s0 + $0x188] sm:$0xff] }
  0x9e   :  { %959 = vst.msk [vmem:[%s2284_s3 + $0x8] sm:$0xff] %vm163_vm0, %v848_v28  ;;  %v685_v31 = vpop.f32.mrf.mxu2  ;;  %1177 = vmatmul.msk.f32.gmra.mxu3 %vm163_vm0, %v145_v27  ;;  %v149_v28 = vld [vmem:[%s2281_s0 + $0x348] sm:$0xff] }
  0x9f   :  { %987 = vst.msk [vmem:[%s2284_s3 + $0xe8] sm:$0xff] %vm163_vm0, %v876_v29  ;;  %v686_v32 = vadd.f32 %v1543_v4, %v685_v31 }
  0xa0   :  { %1042 = vst.msk [vmem:[%s2284_s3 + $0x2a0] sm:$0xff] %vm163_vm0, %v931_v30 }
  0xa1   :  { %v904_v34 = vmax.f32 %v686_v32, 0.0  ;;  %v520_v35 = vpop.f32.mrf.mxu0  ;;  %v604_v36 = vpop.f32.mrf.mxu1 }
  0xa2   :  { %v521_v39 = vadd.f32 %v1543_v4, %v520_v35  ;;  %v605_v40 = vadd.f32 %v1543_v4, %v604_v36  ;;  %v769_v41 = vpop.f32.mrf.mxu3 }
  0xa3   :  { %1015 = vst.msk [vmem:[%s2284_s3 + $0x1c8] sm:$0xff] %vm163_vm0, %v904_v34  ;;  %1150 = vmatmul.msk.f32.gmra.mxu2 %vm163_vm0, %v118_v33  ;;  %v770_v42 = vadd.f32 %v1543_v4, %v769_v41  ;;  %v122_v34 = vld [vmem:[%s2281_s0 + $0x270] sm:$0xff] }
  0xa4   :  { %v849_v44 = vmax.f32 %v521_v39, 0.0  ;;  %v877_v45 = vmax.f32 %v605_v40, 0.0  ;;  %1094 = vmatmul.msk.f32.gmra.mxu0 %vm163_vm0, %v62_v37  ;;  %1122 = vmatmul.msk.f32.gmra.mxu1 %vm163_vm0, %v90_v38  ;;  %v66_v38 = vld [vmem:[%s2281_s0 + $0xb0] sm:$0xff] }
  0xa5   :  { %v932_v46 = vmax.f32 %v770_v42, 0.0  ;;  %v94_v39 = vld [vmem:[%s2281_s0 + $0x190] sm:$0xff] }
  0xa6   :  { %960 = vst.msk [vmem:[%s2284_s3 + $0x10] sm:$0xff] %vm163_vm0, %v849_v44  ;;  %v688_v47 = vpop.f32.mrf.mxu2  ;;  %1178 = vmatmul.msk.f32.gmra.mxu3 %vm163_vm0, %v146_v43  ;;  %v150_v44 = vld [vmem:[%s2281_s0 + $0x350] sm:$0xff] }
  0xa7   :  { %988 = vst.msk [vmem:[%s2284_s3 + $0xf0] sm:$0xff] %vm163_vm0, %v877_v45  ;;  %v689_v48 = vadd.f32 %v1543_v4, %v688_v47 }
  0xa8   :  { %1043 = vst.msk [vmem:[%s2284_s3 + $0x2a8] sm:$0xff] %vm163_vm0, %v932_v46 }
  0xa9   :  { %v905_v50 = vmax.f32 %v689_v48, 0.0  ;;  %v523_v51 = vpop.f32.mrf.mxu0  ;;  %v607_v52 = vpop.f32.mrf.mxu1 }
  0xaa   :  { %v524_v55 = vadd.f32 %v1543_v4, %v523_v51  ;;  %v608_v56 = vadd.f32 %v1543_v4, %v607_v52  ;;  %v772_v57 = vpop.f32.mrf.mxu3 }
  0xab   :  { %1016 = vst.msk [vmem:[%s2284_s3 + $0x1d0] sm:$0xff] %vm163_vm0, %v905_v50  ;;  %1151 = vmatmul.msk.f32.gmra.mxu2 %vm163_vm0, %v119_v49  ;;  %v773_v58 = vadd.f32 %v1543_v4, %v772_v57  ;;  %v123_v50 = vld [vmem:[%s2281_s0 + $0x278] sm:$0xff] }
  0xac   :  { %v850_v60 = vmax.f32 %v524_v55, 0.0  ;;  %v878_v61 = vmax.f32 %v608_v56, 0.0  ;;  %1095 = vmatmul.msk.f32.gmra.mxu0 %vm163_vm0, %v63_v53  ;;  %1123 = vmatmul.msk.f32.gmra.mxu1 %vm163_vm0, %v91_v54  ;;  %v67_v54 = vld [vmem:[%s2281_s0 + $0xb8] sm:$0xff] }
  0xad   :  { %v933_v62 = vmax.f32 %v773_v58, 0.0  ;;  %v95_v55 = vld [vmem:[%s2281_s0 + $0x198] sm:$0xff] }
  0xae   :  { %961 = vst.msk [vmem:[%s2284_s3 + $0x18] sm:$0xff] %vm163_vm0, %v850_v60  ;;  %v691_v63 = vpop.f32.mrf.mxu2  ;;  %1179 = vmatmul.msk.f32.gmra.mxu3 %vm163_vm0, %v147_v59  ;;  %v151_v60 = vld [vmem:[%s2281_s0 + $0x358] sm:$0xff] }
  0xaf   :  { %989 = vst.msk [vmem:[%s2284_s3 + $0xf8] sm:$0xff] %vm163_vm0, %v878_v61  ;;  %v692_v0 = vadd.f32 %v1543_v4, %v691_v63 }
  0xb0   :  { %1044 = vst.msk [vmem:[%s2284_s3 + $0x2b0] sm:$0xff] %vm163_vm0, %v933_v62 }
  0xb1   :  { %v906_v2 = vmax.f32 %v692_v0, 0.0  ;;  %v526_v3 = vpop.f32.mrf.mxu0  ;;  %v610_v5 = vpop.f32.mrf.mxu1 }
  0xb2   :  { %v527_v8 = vadd.f32 %v1543_v4, %v526_v3  ;;  %v611_v9 = vadd.f32 %v1543_v4, %v610_v5  ;;  %v775_v10 = vpop.f32.mrf.mxu3 }
  0xb3   :  { %1017 = vst.msk [vmem:[%s2284_s3 + $0x1d8] sm:$0xff] %vm163_vm0, %v906_v2  ;;  %1152 = vmatmul.msk.f32.gmra.mxu2 %vm163_vm0, %v120_v1  ;;  %v776_v11 = vadd.f32 %v1543_v4, %v775_v10  ;;  %v124_v2 = vld [vmem:[%s2281_s0 + $0x280] sm:$0xff] }
  0xb4   :  { %v851_v13 = vmax.f32 %v527_v8, 0.0  ;;  %v879_v14 = vmax.f32 %v611_v9, 0.0  ;;  %1096 = vmatmul.msk.f32.gmra.mxu0 %vm163_vm0, %v64_v6  ;;  %1124 = vmatmul.msk.f32.gmra.mxu1 %vm163_vm0, %v92_v7  ;;  %v68_v7 = vld [vmem:[%s2281_s0 + $0xc0] sm:$0xff] }
  0xb5   :  { %v934_v15 = vmax.f32 %v776_v11, 0.0  ;;  %v96_v8 = vld [vmem:[%s2281_s0 + $0x1a0] sm:$0xff] }
  0xb6   :  { %962 = vst.msk [vmem:[%s2284_s3 + $0x20] sm:$0xff] %vm163_vm0, %v851_v13  ;;  %v694_v16 = vpop.f32.mrf.mxu2  ;;  %1180 = vmatmul.msk.f32.gmra.mxu3 %vm163_vm0, %v148_v12  ;;  %v152_v13 = vld [vmem:[%s2281_s0 + $0x360] sm:$0xff] }
  0xb7   :  { %990 = vst.msk [vmem:[%s2284_s3 + $0x100] sm:$0xff] %vm163_vm0, %v879_v14  ;;  %v695_v17 = vadd.f32 %v1543_v4, %v694_v16 }
  0xb8   :  { %1045 = vst.msk [vmem:[%s2284_s3 + $0x2b8] sm:$0xff] %vm163_vm0, %v934_v15 }
  0xb9   :  { %v907_v19 = vmax.f32 %v695_v17, 0.0  ;;  %v529_v20 = vpop.f32.mrf.mxu0  ;;  %v613_v21 = vpop.f32.mrf.mxu1 }
  0xba   :  { %v530_v24 = vadd.f32 %v1543_v4, %v529_v20  ;;  %v614_v25 = vadd.f32 %v1543_v4, %v613_v21  ;;  %v778_v26 = vpop.f32.mrf.mxu3 }
  0xbb   :  { %1018 = vst.msk [vmem:[%s2284_s3 + $0x1e0] sm:$0xff] %vm163_vm0, %v907_v19  ;;  %1153 = vmatmul.msk.f32.gmra.mxu2 %vm163_vm0, %v121_v18  ;;  %v779_v27 = vadd.f32 %v1543_v4, %v778_v26  ;;  %v125_v19 = vld [vmem:[%s2281_s0 + $0x288] sm:$0xff] }
  0xbc   :  { %v852_v29 = vmax.f32 %v530_v24, 0.0  ;;  %v880_v30 = vmax.f32 %v614_v25, 0.0  ;;  %1097 = vmatmul.msk.f32.gmra.mxu0 %vm163_vm0, %v65_v22  ;;  %1125 = vmatmul.msk.f32.gmra.mxu1 %vm163_vm0, %v93_v23  ;;  %v69_v23 = vld [vmem:[%s2281_s0 + $0xc8] sm:$0xff] }
  0xbd   :  { %v935_v31 = vmax.f32 %v779_v27, 0.0  ;;  %v97_v24 = vld [vmem:[%s2281_s0 + $0x1a8] sm:$0xff] }
  0xbe   :  { %963 = vst.msk [vmem:[%s2284_s3 + $0x28] sm:$0xff] %vm163_vm0, %v852_v29  ;;  %v697_v32 = vpop.f32.mrf.mxu2  ;;  %1181 = vmatmul.msk.f32.gmra.mxu3 %vm163_vm0, %v149_v28  ;;  %v153_v29 = vld [vmem:[%s2281_s0 + $0x368] sm:$0xff] }
  0xbf   :  { %991 = vst.msk [vmem:[%s2284_s3 + $0x108] sm:$0xff] %vm163_vm0, %v880_v30  ;;  %v698_v33 = vadd.f32 %v1543_v4, %v697_v32 }
  0xc0   :  { %1046 = vst.msk [vmem:[%s2284_s3 + $0x2c0] sm:$0xff] %vm163_vm0, %v935_v31 }
  0xc1   :  { %v908_v35 = vmax.f32 %v698_v33, 0.0  ;;  %v532_v36 = vpop.f32.mrf.mxu0  ;;  %v616_v37 = vpop.f32.mrf.mxu1 }
  0xc2   :  { %v533_v40 = vadd.f32 %v1543_v4, %v532_v36  ;;  %v617_v41 = vadd.f32 %v1543_v4, %v616_v37  ;;  %v781_v42 = vpop.f32.mrf.mxu3 }
  0xc3   :  { %1019 = vst.msk [vmem:[%s2284_s3 + $0x1e8] sm:$0xff] %vm163_vm0, %v908_v35  ;;  %1154 = vmatmul.msk.f32.gmra.mxu2 %vm163_vm0, %v122_v34  ;;  %v782_v43 = vadd.f32 %v1543_v4, %v781_v42  ;;  %v126_v35 = vld [vmem:[%s2281_s0 + $0x290] sm:$0xff] }
  0xc4   :  { %v853_v45 = vmax.f32 %v533_v40, 0.0  ;;  %v881_v46 = vmax.f32 %v617_v41, 0.0  ;;  %1098 = vmatmul.msk.f32.gmra.mxu0 %vm163_vm0, %v66_v38  ;;  %1126 = vmatmul.msk.f32.gmra.mxu1 %vm163_vm0, %v94_v39  ;;  %v70_v39 = vld [vmem:[%s2281_s0 + $0xd0] sm:$0xff] }
  0xc5   :  { %v936_v47 = vmax.f32 %v782_v43, 0.0  ;;  %v98_v40 = vld [vmem:[%s2281_s0 + $0x1b0] sm:$0xff] }
  0xc6   :  { %964 = vst.msk [vmem:[%s2284_s3 + $0x30] sm:$0xff] %vm163_vm0, %v853_v45  ;;  %v700_v48 = vpop.f32.mrf.mxu2  ;;  %1182 = vmatmul.msk.f32.gmra.mxu3 %vm163_vm0, %v150_v44  ;;  %v154_v45 = vld [vmem:[%s2281_s0 + $0x370] sm:$0x3] }
  0xc7   :  { %992 = vst.msk [vmem:[%s2284_s3 + $0x110] sm:$0xff] %vm163_vm0, %v881_v46  ;;  %v701_v49 = vadd.f32 %v1543_v4, %v700_v48 }
  0xc8   :  { %1047 = vst.msk [vmem:[%s2284_s3 + $0x2c8] sm:$0xff] %vm163_vm0, %v936_v47 }
  0xc9   :  { %v909_v51 = vmax.f32 %v701_v49, 0.0  ;;  %v535_v52 = vpop.f32.mrf.mxu0  ;;  %v619_v53 = vpop.f32.mrf.mxu1 }
  0xca   :  { %v536_v56 = vadd.f32 %v1543_v4, %v535_v52  ;;  %v620_v57 = vadd.f32 %v1543_v4, %v619_v53  ;;  %v784_v58 = vpop.f32.mrf.mxu3 }
  0xcb   :  { %1020 = vst.msk [vmem:[%s2284_s3 + $0x1f0] sm:$0xff] %vm163_vm0, %v909_v51  ;;  %1155 = vmatmul.msk.f32.gmra.mxu2 %vm163_vm0, %v123_v50  ;;  %v785_v59 = vadd.f32 %v1543_v4, %v784_v58  ;;  %v127_v51 = vld [vmem:[%s2281_s0 + $0x298] sm:$0xff] }
  0xcc   :  { %v854_v61 = vmax.f32 %v536_v56, 0.0  ;;  %v882_v62 = vmax.f32 %v620_v57, 0.0  ;;  %1099 = vmatmul.msk.f32.gmra.mxu0 %vm163_vm0, %v67_v54  ;;  %1127 = vmatmul.msk.f32.gmra.mxu1 %vm163_vm0, %v95_v55  ;;  %v71_v55 = vld [vmem:[%s2281_s0 + $0xd8] sm:$0xff] }
  0xcd   :  { %v937_v63 = vmax.f32 %v785_v59, 0.0  ;;  %v99_v56 = vld [vmem:[%s2281_s0 + $0x1b8] sm:$0xff] }
  0xce   :  { %965 = vst.msk [vmem:[%s2284_s3 + $0x38] sm:$0xff] %vm163_vm0, %v854_v61  ;;  %v703_v0 = vpop.f32.mrf.mxu2  ;;  %1183 = vmatmul.msk.f32.gmra.mxu3 %vm163_vm0, %v151_v60 }
  0xcf   :  { %993 = vst.msk [vmem:[%s2284_s3 + $0x118] sm:$0xff] %vm163_vm0, %v882_v62  ;;  %v704_v1 = vadd.f32 %v1543_v4, %v703_v0 }
  0xd0   :  { %1048 = vst.msk [vmem:[%s2284_s3 + $0x2d0] sm:$0xff] %vm163_vm0, %v937_v63 }
  0xd1   :  { %v910_v3 = vmax.f32 %v704_v1, 0.0  ;;  %v538_v5 = vpop.f32.mrf.mxu0  ;;  %v622_v6 = vpop.f32.mrf.mxu1 }
  0xd2   :  { %v539_v9 = vadd.f32 %v1543_v4, %v538_v5  ;;  %v623_v10 = vadd.f32 %v1543_v4, %v622_v6  ;;  %v787_v11 = vpop.f32.mrf.mxu3 }
  0xd3   :  { %1021 = vst.msk [vmem:[%s2284_s3 + $0x1f8] sm:$0xff] %vm163_vm0, %v910_v3  ;;  %1156 = vmatmul.msk.f32.gmra.mxu2 %vm163_vm0, %v124_v2  ;;  %v788_v12 = vadd.f32 %v1543_v4, %v787_v11 }
  0xd4   :  { %v855_v14 = vmax.f32 %v539_v9, 0.0  ;;  %v883_v15 = vmax.f32 %v623_v10, 0.0  ;;  %1100 = vmatmul.msk.f32.gmra.mxu0 %vm163_vm0, %v68_v7  ;;  %1128 = vmatmul.msk.f32.gmra.mxu1 %vm163_vm0, %v96_v8 }
  0xd5   :  { %v938_v16 = vmax.f32 %v788_v12, 0.0 }
  0xd6   :  { %966 = vst.msk [vmem:[%s2284_s3 + $0x40] sm:$0xff] %vm163_vm0, %v855_v14  ;;  %v706_v17 = vpop.f32.mrf.mxu2  ;;  %1184 = vmatmul.msk.f32.gmra.mxu3 %vm163_vm0, %v152_v13 }
  0xd7   :  { %994 = vst.msk [vmem:[%s2284_s3 + $0x120] sm:$0xff] %vm163_vm0, %v883_v15  ;;  %v707_v18 = vadd.f32 %v1543_v4, %v706_v17 }
  0xd8   :  { %1049 = vst.msk [vmem:[%s2284_s3 + $0x2d8] sm:$0xff] %vm163_vm0, %v938_v16 }
  0xd9   :  { %v911_v20 = vmax.f32 %v707_v18, 0.0  ;;  %v541_v21 = vpop.f32.mrf.mxu0  ;;  %v625_v22 = vpop.f32.mrf.mxu1 }
  0xda   :  { %v542_v25 = vadd.f32 %v1543_v4, %v541_v21  ;;  %v626_v26 = vadd.f32 %v1543_v4, %v625_v22  ;;  %v790_v27 = vpop.f32.mrf.mxu3 }
  0xdb   :  { %1022 = vst.msk [vmem:[%s2284_s3 + $0x200] sm:$0xff] %vm163_vm0, %v911_v20  ;;  %1157 = vmatmul.msk.f32.gmra.mxu2 %vm163_vm0, %v125_v19  ;;  %v791_v28 = vadd.f32 %v1543_v4, %v790_v27 }
  0xdc   :  { %v856_v30 = vmax.f32 %v542_v25, 0.0  ;;  %v884_v31 = vmax.f32 %v626_v26, 0.0  ;;  %1101 = vmatmul.msk.f32.gmra.mxu0 %vm163_vm0, %v69_v23  ;;  %1129 = vmatmul.msk.f32.gmra.mxu1 %vm163_vm0, %v97_v24 }
  0xdd   :  { %v939_v32 = vmax.f32 %v791_v28, 0.0 }
  0xde   :  { %967 = vst.msk [vmem:[%s2284_s3 + $0x48] sm:$0xff] %vm163_vm0, %v856_v30  ;;  %v709_v33 = vpop.f32.mrf.mxu2  ;;  %1185 = vmatmul.msk.f32.gmra.mxu3 %vm163_vm0, %v153_v29 }
  0xdf   :  { %995 = vst.msk [vmem:[%s2284_s3 + $0x128] sm:$0xff] %vm163_vm0, %v884_v31  ;;  %v710_v34 = vadd.f32 %v1543_v4, %v709_v33 }
  0xe0   :  { %1050 = vst.msk [vmem:[%s2284_s3 + $0x2e0] sm:$0xff] %vm163_vm0, %v939_v32 }
  0xe1   :  { %v912_v36 = vmax.f32 %v710_v34, 0.0  ;;  %v544_v37 = vpop.f32.mrf.mxu0  ;;  %v628_v38 = vpop.f32.mrf.mxu1 }
  0xe2   :  { %v545_v41 = vadd.f32 %v1543_v4, %v544_v37  ;;  %v629_v42 = vadd.f32 %v1543_v4, %v628_v38  ;;  %v793_v43 = vpop.f32.mrf.mxu3 }
  0xe3   :  { %1023 = vst.msk [vmem:[%s2284_s3 + $0x208] sm:$0xff] %vm163_vm0, %v912_v36  ;;  %1158 = vmatmul.msk.f32.gmra.mxu2 %vm163_vm0, %v126_v35  ;;  %v794_v44 = vadd.f32 %v1543_v4, %v793_v43 }
  0xe4   :  { %v857_v46 = vmax.f32 %v545_v41, 0.0  ;;  %v885_v47 = vmax.f32 %v629_v42, 0.0  ;;  %1102 = vmatmul.msk.f32.gmra.mxu0 %vm163_vm0, %v70_v39  ;;  %1130 = vmatmul.msk.f32.gmra.mxu1 %vm163_vm0, %v98_v40 }
  0xe5   :  { %v940_v48 = vmax.f32 %v794_v44, 0.0 }
  0xe6   :  { %968 = vst.msk [vmem:[%s2284_s3 + $0x50] sm:$0xff] %vm163_vm0, %v857_v46  ;;  %v712_v49 = vpop.f32.mrf.mxu2  ;;  %1186 = vmatmul.msk.f32.gmra.mxu3 %vm163_vm0, %v154_v45 }
  0xe7   :  { %996 = vst.msk [vmem:[%s2284_s3 + $0x130] sm:$0xff] %vm163_vm0, %v885_v47  ;;  %v713_v50 = vadd.f32 %v1543_v4, %v712_v49 }
  0xe8   :  { %1051 = vst.msk [vmem:[%s2284_s3 + $0x2e8] sm:$0xff] %vm163_vm0, %v940_v48 }
  0xe9   :  { %v913_v52 = vmax.f32 %v713_v50, 0.0  ;;  %v547_v53 = vpop.f32.mrf.mxu0  ;;  %v631_v54 = vpop.f32.mrf.mxu1 }
  0xea   :  { %v548_v57 = vadd.f32 %v1543_v4, %v547_v53  ;;  %v632_v58 = vadd.f32 %v1543_v4, %v631_v54  ;;  %v796_v59 = vpop.f32.mrf.mxu3 }
  0xeb   :  { %1024 = vst.msk [vmem:[%s2284_s3 + $0x210] sm:$0xff] %vm163_vm0, %v913_v52  ;;  %1159 = vmatmul.msk.f32.gmra.mxu2 %vm163_vm0, %v127_v51  ;;  %v797_v60 = vadd.f32 %v1543_v4, %v796_v59 }
  0xec   :  { %v858_v61 = vmax.f32 %v548_v57, 0.0  ;;  %v886_v62 = vmax.f32 %v632_v58, 0.0  ;;  %1103 = vmatmul.msk.f32.gmra.mxu0 %vm163_vm0, %v71_v55  ;;  %1131 = vmatmul.msk.f32.gmra.mxu1 %vm163_vm0, %v99_v56 }
  0xed   :  { %v941_v63 = vmax.f32 %v797_v60, 0.0 }
  0xee   :  { %969 = vst.msk [vmem:[%s2284_s3 + $0x58] sm:$0xff] %vm163_vm0, %v858_v61  ;;  %v715_v0 = vpop.f32.mrf.mxu2 }
  0xef   :  { %997 = vst.msk [vmem:[%s2284_s3 + $0x138] sm:$0xff] %vm163_vm0, %v886_v62  ;;  %v716_v1 = vadd.f32 %v1543_v4, %v715_v0 }
  0xf0   :  { %1052 = vst.msk [vmem:[%s2284_s3 + $0x2f0] sm:$0xff] %vm163_vm0, %v941_v63 }
  0xf1   :  { %v914_v2 = vmax.f32 %v716_v1, 0.0  ;;  %v550_v3 = vpop.f32.mrf.mxu0  ;;  %v634_v5 = vpop.f32.mrf.mxu1 }
  0xf2   :  { %v551_v6 = vadd.f32 %v1543_v4, %v550_v3  ;;  %v635_v7 = vadd.f32 %v1543_v4, %v634_v5  ;;  %v799_v8 = vpop.f32.mrf.mxu3 }
  0xf3   :  { %1025 = vst.msk [vmem:[%s2284_s3 + $0x218] sm:$0xff] %vm163_vm0, %v914_v2  ;;  %v800_v9 = vadd.f32 %v1543_v4, %v799_v8 }
  0xf4   :  { %v859_v10 = vmax.f32 %v551_v6, 0.0  ;;  %v887_v11 = vmax.f32 %v635_v7, 0.0 }
  0xf5   :  { %v942_v12 = vmax.f32 %v800_v9, 0.0 }
  0xf6   :  { %970 = vst.msk [vmem:[%s2284_s3 + $0x60] sm:$0xff] %vm163_vm0, %v859_v10  ;;  %v718_v13 = vpop.f32.mrf.mxu2 }
  0xf7   :  { %998 = vst.msk [vmem:[%s2284_s3 + $0x140] sm:$0xff] %vm163_vm0, %v887_v11  ;;  %v719_v14 = vadd.f32 %v1543_v4, %v718_v13 }
  0xf8   :  { %1053 = vst.msk [vmem:[%s2284_s3 + $0x2f8] sm:$0xff] %vm163_vm0, %v942_v12 }
  0xf9   :  { %v915_v15 = vmax.f32 %v719_v14, 0.0  ;;  %v553_v16 = vpop.f32.mrf.mxu0  ;;  %v637_v17 = vpop.f32.mrf.mxu1 }
  0xfa   :  { %v554_v18 = vadd.f32 %v1543_v4, %v553_v16  ;;  %v638_v19 = vadd.f32 %v1543_v4, %v637_v17  ;;  %v802_v20 = vpop.f32.mrf.mxu3 }
  0xfb   :  { %1026 = vst.msk [vmem:[%s2284_s3 + $0x220] sm:$0xff] %vm163_vm0, %v915_v15  ;;  %v803_v21 = vadd.f32 %v1543_v4, %v802_v20 }
  0xfc   :  { %v860_v22 = vmax.f32 %v554_v18, 0.0  ;;  %v888_v23 = vmax.f32 %v638_v19, 0.0 }
  0xfd   :  { %v943_v24 = vmax.f32 %v803_v21, 0.0 }
  0xfe   :  { %971 = vst.msk [vmem:[%s2284_s3 + $0x68] sm:$0xff] %vm163_vm0, %v860_v22  ;;  %v721_v25 = vpop.f32.mrf.mxu2 }
  0xff   :  { %999 = vst.msk [vmem:[%s2284_s3 + $0x148] sm:$0xff] %vm163_vm0, %v888_v23  ;;  %v722_v26 = vadd.f32 %v1543_v4, %v721_v25 }
 0x100   :  { %1054 = vst.msk [vmem:[%s2284_s3 + $0x300] sm:$0xff] %vm163_vm0, %v943_v24 }
 0x101   :  { %v916_v27 = vmax.f32 %v722_v26, 0.0  ;;  %v556_v28 = vpop.f32.mrf.mxu0  ;;  %v640_v29 = vpop.f32.mrf.mxu1 }
 0x102   :  { %v557_v30 = vadd.f32 %v1543_v4, %v556_v28  ;;  %v641_v31 = vadd.f32 %v1543_v4, %v640_v29  ;;  %v805_v32 = vpop.f32.mrf.mxu3 }
 0x103   :  { %1027 = vst.msk [vmem:[%s2284_s3 + $0x228] sm:$0xff] %vm163_vm0, %v916_v27  ;;  %v806_v33 = vadd.f32 %v1543_v4, %v805_v32 }
 0x104   :  { %v861_v34 = vmax.f32 %v557_v30, 0.0  ;;  %v889_v35 = vmax.f32 %v641_v31, 0.0 }
 0x105   :  { %v944_v36 = vmax.f32 %v806_v33, 0.0 }
 0x106   :  { %972 = vst.msk [vmem:[%s2284_s3 + $0x70] sm:$0xff] %vm163_vm0, %v861_v34  ;;  %v724_v37 = vpop.f32.mrf.mxu2 }
 0x107   :  { %1000 = vst.msk [vmem:[%s2284_s3 + $0x150] sm:$0xff] %vm163_vm0, %v889_v35  ;;  %v725_v38 = vadd.f32 %v1543_v4, %v724_v37 }
 0x108   :  { %1055 = vst.msk [vmem:[%s2284_s3 + $0x308] sm:$0xff] %vm163_vm0, %v944_v36 }
 0x109   :  { %v917_v39 = vmax.f32 %v725_v38, 0.0  ;;  %v559_v40 = vpop.f32.mrf.mxu0  ;;  %v643_v41 = vpop.f32.mrf.mxu1 }
 0x10a   :  { %v560_v42 = vadd.f32 %v1543_v4, %v559_v40  ;;  %v644_v43 = vadd.f32 %v1543_v4, %v643_v41  ;;  %v808_v44 = vpop.f32.mrf.mxu3 }
 0x10b   :  { %1028 = vst.msk [vmem:[%s2284_s3 + $0x230] sm:$0xff] %vm163_vm0, %v917_v39  ;;  %v809_v45 = vadd.f32 %v1543_v4, %v808_v44 }
 0x10c   :  { %v862_v46 = vmax.f32 %v560_v42, 0.0  ;;  %v890_v47 = vmax.f32 %v644_v43, 0.0 }
 0x10d   :  { %v945_v48 = vmax.f32 %v809_v45, 0.0 }
 0x10e   :  { %973 = vst.msk [vmem:[%s2284_s3 + $0x78] sm:$0xff] %vm163_vm0, %v862_v46  ;;  %v727_v49 = vpop.f32.mrf.mxu2 }
 0x10f   :  { %1001 = vst.msk [vmem:[%s2284_s3 + $0x158] sm:$0xff] %vm163_vm0, %v890_v47  ;;  %v728_v50 = vadd.f32 %v1543_v4, %v727_v49 }
 0x110   :  { %1056 = vst.msk [vmem:[%s2284_s3 + $0x310] sm:$0xff] %vm163_vm0, %v945_v48 }
 0x111   :  { %v918_v51 = vmax.f32 %v728_v50, 0.0  ;;  %v562_v52 = vpop.f32.mrf.mxu0  ;;  %v646_v53 = vpop.f32.mrf.mxu1 }
 0x112   :  { %v563_v54 = vadd.f32 %v1543_v4, %v562_v52  ;;  %v647_v55 = vadd.f32 %v1543_v4, %v646_v53  ;;  %v811_v56 = vpop.f32.mrf.mxu3 }
 0x113   :  { %1029 = vst.msk [vmem:[%s2284_s3 + $0x238] sm:$0xff] %vm163_vm0, %v918_v51  ;;  %v812_v57 = vadd.f32 %v1543_v4, %v811_v56 }
 0x114   :  { %v863_v58 = vmax.f32 %v563_v54, 0.0  ;;  %v891_v59 = vmax.f32 %v647_v55, 0.0 }
 0x115   :  { %v946_v60 = vmax.f32 %v812_v57, 0.0 }
 0x116   :  { %974 = vst.msk [vmem:[%s2284_s3 + $0x80] sm:$0xff] %vm163_vm0, %v863_v58  ;;  %v730_v61 = vpop.f32.mrf.mxu2 }
 0x117   :  { %1002 = vst.msk [vmem:[%s2284_s3 + $0x160] sm:$0xff] %vm163_vm0, %v891_v59  ;;  %v731_v62 = vadd.f32 %v1543_v4, %v730_v61 }
 0x118   :  { %1057 = vst.msk [vmem:[%s2284_s3 + $0x318] sm:$0xff] %vm163_vm0, %v946_v60 }
 0x119   :  { %v919_v63 = vmax.f32 %v731_v62, 0.0  ;;  %v565_v0 = vpop.f32.mrf.mxu0  ;;  %v649_v1 = vpop.f32.mrf.mxu1 }
 0x11a   :  { %v566_v2 = vadd.f32 %v1543_v4, %v565_v0  ;;  %v650_v3 = vadd.f32 %v1543_v4, %v649_v1  ;;  %v814_v5 = vpop.f32.mrf.mxu3 }
 0x11b   :  { %1030 = vst.msk [vmem:[%s2284_s3 + $0x240] sm:$0xff] %vm163_vm0, %v919_v63  ;;  %v815_v6 = vadd.f32 %v1543_v4, %v814_v5 }
 0x11c   :  { %v864_v7 = vmax.f32 %v566_v2, 0.0  ;;  %v892_v8 = vmax.f32 %v650_v3, 0.0 }
 0x11d   :  { %v947_v9 = vmax.f32 %v815_v6, 0.0 }
 0x11e   :  { %975 = vst.msk [vmem:[%s2284_s3 + $0x88] sm:$0xff] %vm163_vm0, %v864_v7  ;;  %v733_v10 = vpop.f32.mrf.mxu2 }
 0x11f   :  { %1003 = vst.msk [vmem:[%s2284_s3 + $0x168] sm:$0xff] %vm163_vm0, %v892_v8  ;;  %v734_v11 = vadd.f32 %v1543_v4, %v733_v10 }
 0x120   :  { %1058 = vst.msk [vmem:[%s2284_s3 + $0x320] sm:$0xff] %vm163_vm0, %v947_v9 }
 0x121   :  { %v920_v12 = vmax.f32 %v734_v11, 0.0  ;;  %v568_v13 = vpop.f32.mrf.mxu0  ;;  %v652_v14 = vpop.f32.mrf.mxu1 }
 0x122   :  { %v569_v15 = vadd.f32 %v1543_v4, %v568_v13  ;;  %v653_v16 = vadd.f32 %v1543_v4, %v652_v14  ;;  %v817_v17 = vpop.f32.mrf.mxu3 }
 0x123   :  { %1031 = vst.msk [vmem:[%s2284_s3 + $0x248] sm:$0xff] %vm163_vm0, %v920_v12  ;;  %v818_v18 = vadd.f32 %v1543_v4, %v817_v17 }
 0x124   :  { %v865_v19 = vmax.f32 %v569_v15, 0.0  ;;  %v893_v20 = vmax.f32 %v653_v16, 0.0 }
 0x125   :  { %v948_v21 = vmax.f32 %v818_v18, 0.0 }
 0x126   :  { %976 = vst.msk [vmem:[%s2284_s3 + $0x90] sm:$0xff] %vm163_vm0, %v865_v19  ;;  %v736_v22 = vpop.f32.mrf.mxu2 }
 0x127   :  { %1004 = vst.msk [vmem:[%s2284_s3 + $0x170] sm:$0xff] %vm163_vm0, %v893_v20  ;;  %v737_v23 = vadd.f32 %v1543_v4, %v736_v22 }
 0x128   :  { %1059 = vst.msk [vmem:[%s2284_s3 + $0x328] sm:$0xff] %vm163_vm0, %v948_v21 }
 0x129   :  { %v921_v24 = vmax.f32 %v737_v23, 0.0  ;;  %v571_v25 = vpop.f32.mrf.mxu0  ;;  %v655_v26 = vpop.f32.mrf.mxu1 }
 0x12a   :  { %v572_v27 = vadd.f32 %v1543_v4, %v571_v25  ;;  %v656_v28 = vadd.f32 %v1543_v4, %v655_v26  ;;  %v820_v29 = vpop.f32.mrf.mxu3 }
 0x12b   :  { %1032 = vst.msk [vmem:[%s2284_s3 + $0x250] sm:$0xff] %vm163_vm0, %v921_v24  ;;  %v821_v30 = vadd.f32 %v1543_v4, %v820_v29 }
 0x12c   :  { %v866_v31 = vmax.f32 %v572_v27, 0.0  ;;  %v894_v32 = vmax.f32 %v656_v28, 0.0 }
 0x12d   :  { %v949_v33 = vmax.f32 %v821_v30, 0.0 }
 0x12e   :  { %977 = vst.msk [vmem:[%s2284_s3 + $0x98] sm:$0xff] %vm163_vm0, %v866_v31  ;;  %v739_v34 = vpop.f32.mrf.mxu2 }
 0x12f   :  { %1005 = vst.msk [vmem:[%s2284_s3 + $0x178] sm:$0xff] %vm163_vm0, %v894_v32  ;;  %v740_v35 = vadd.f32 %v1543_v4, %v739_v34 }
 0x130   :  { %1060 = vst.msk [vmem:[%s2284_s3 + $0x330] sm:$0xff] %vm163_vm0, %v949_v33 }
 0x131   :  { %v922_v36 = vmax.f32 %v740_v35, 0.0  ;;  %v574_v37 = vpop.f32.mrf.mxu0  ;;  %v658_v38 = vpop.f32.mrf.mxu1 }
 0x132   :  { %v575_v39 = vadd.f32 %v1543_v4, %v574_v37  ;;  %v659_v40 = vadd.f32 %v1543_v4, %v658_v38  ;;  %v823_v41 = vpop.f32.mrf.mxu3 }
 0x133   :  { %1033 = vst.msk [vmem:[%s2284_s3 + $0x258] sm:$0xff] %vm163_vm0, %v922_v36  ;;  %v824_v42 = vadd.f32 %v1543_v4, %v823_v41 }
 0x134   :  { %v867_v43 = vmax.f32 %v575_v39, 0.0  ;;  %v895_v44 = vmax.f32 %v659_v40, 0.0 }
 0x135   :  { %v950_v45 = vmax.f32 %v824_v42, 0.0 }
 0x136   :  { %978 = vst.msk [vmem:[%s2284_s3 + $0xa0] sm:$0xff] %vm163_vm0, %v867_v43  ;;  %v742_v46 = vpop.f32.mrf.mxu2 }
 0x137   :  { %1006 = vst.msk [vmem:[%s2284_s3 + $0x180] sm:$0xff] %vm163_vm0, %v895_v44  ;;  %v743_v47 = vadd.f32 %v1543_v4, %v742_v46 }
 0x138   :  { %1061 = vst.msk [vmem:[%s2284_s3 + $0x338] sm:$0xff] %vm163_vm0, %v950_v45 }
 0x139   :  { %v923_v48 = vmax.f32 %v743_v47, 0.0  ;;  %v577_v49 = vpop.f32.mrf.mxu0  ;;  %v661_v50 = vpop.f32.mrf.mxu1 }
 0x13a   :  { %v578_v51 = vadd.f32 %v1543_v4, %v577_v49  ;;  %v662_v52 = vadd.f32 %v1543_v4, %v661_v50  ;;  %v826_v53 = vpop.f32.mrf.mxu3 }
 0x13b   :  { %1034 = vst.msk [vmem:[%s2284_s3 + $0x260] sm:$0xff] %vm163_vm0, %v923_v48  ;;  %v827_v54 = vadd.f32 %v1543_v4, %v826_v53 }
 0x13c   :  { %v868_v55 = vmax.f32 %v578_v51, 0.0  ;;  %v896_v56 = vmax.f32 %v662_v52, 0.0  ;;  %v1204_v51 = vld [vmem:[#allocation4] ss:$0 sm:$0xff] }
 0x13d   :  { %v951_v57 = vmax.f32 %v827_v54, 0.0 }
 0x13e   :  { %979 = vst.msk [vmem:[%s2284_s3 + $0xa8] sm:$0xff] %vm163_vm0, %v868_v55  ;;  %v745_v58 = vpop.f32.mrf.mxu2 }
 0x13f   :  { %1007 = vst.msk [vmem:[%s2284_s3 + $0x188] sm:$0xff] %vm163_vm0, %v896_v56  ;;  %v746_v59 = vadd.f32 %v1543_v4, %v745_v58 }
 0x140   :  { %1062 = vst.msk [vmem:[%s2284_s3 + $0x340] sm:$0xff] %vm163_vm0, %v951_v57 }
 0x141   :  { %v924_v60 = vmax.f32 %v746_v59, 0.0  ;;  %v580_v61 = vpop.f32.mrf.mxu0  ;;  %v664_v62 = vpop.f32.mrf.mxu1 }
 0x142   :  { %v581_v63 = vadd.f32 %v1543_v4, %v580_v61  ;;  %v665_v0 = vadd.f32 %v1543_v4, %v664_v62  ;;  %v829_v1 = vpop.f32.mrf.mxu3 }
 0x143   :  { %1035 = vst.msk [vmem:[%s2284_s3 + $0x268] sm:$0xff] %vm163_vm0, %v924_v60  ;;  %v830_v2 = vadd.f32 %v1543_v4, %v829_v1 }
 0x144   :  { %v869_v3 = vmax.f32 %v581_v63, 0.0  ;;  %v897_v5 = vmax.f32 %v665_v0, 0.0 }
 0x145   :  { %v952_v6 = vmax.f32 %v830_v2, 0.0 }
 0x146   :  { %980 = vst.msk [vmem:[%s2284_s3 + $0xb0] sm:$0xff] %vm163_vm0, %v869_v3  ;;  %v748_v7 = vpop.f32.mrf.mxu2 }
 0x147   :  { %1008 = vst.msk [vmem:[%s2284_s3 + $0x190] sm:$0xff] %vm163_vm0, %v897_v5  ;;  %v749_v8 = vadd.f32 %v1543_v4, %v748_v7 }
 0x148   :  { %1063 = vst.msk [vmem:[%s2284_s3 + $0x348] sm:$0xff] %vm163_vm0, %v952_v6 }
 0x149   :  { %v925_v9 = vmax.f32 %v749_v8, 0.0  ;;  %v583_v10 = vpop.f32.mrf.mxu0  ;;  %v667_v11 = vpop.f32.mrf.mxu1 }
 0x14a   :  { %v584_v12 = vadd.f32 %v1543_v4, %v583_v10  ;;  %v668_v13 = vadd.f32 %v1543_v4, %v667_v11  ;;  %v832_v14 = vpop.f32.mrf.mxu3 }
 0x14b   :  { %1036 = vst.msk [vmem:[%s2284_s3 + $0x270] sm:$0xff] %vm163_vm0, %v925_v9  ;;  %v833_v15 = vadd.f32 %v1543_v4, %v832_v14 }
 0x14c   :  { %v870_v16 = vmax.f32 %v584_v12, 0.0  ;;  %v898_v17 = vmax.f32 %v668_v13, 0.0 }
 0x14d   :  { %v953_v18 = vmax.f32 %v833_v15, 0.0 }
 0x14e   :  { %981 = vst.msk [vmem:[%s2284_s3 + $0xb8] sm:$0xff] %vm163_vm0, %v870_v16  ;;  %v751_v19 = vpop.f32.mrf.mxu2 }
 0x14f   :  { %1009 = vst.msk [vmem:[%s2284_s3 + $0x198] sm:$0xff] %vm163_vm0, %v898_v17  ;;  %v752_v20 = vadd.f32 %v1543_v4, %v751_v19 }
 0x150   :  { %1064 = vst.msk [vmem:[%s2284_s3 + $0x350] sm:$0xff] %vm163_vm0, %v953_v18 }
 0x151   :  { %v926_v21 = vmax.f32 %v752_v20, 0.0  ;;  %v586_v22 = vpop.f32.mrf.mxu0  ;;  %v670_v23 = vpop.f32.mrf.mxu1 }
 0x152   :  { %v587_v24 = vadd.f32 %v1543_v4, %v586_v22  ;;  %v671_v25 = vadd.f32 %v1543_v4, %v670_v23  ;;  %v835_v26 = vpop.f32.mrf.mxu3 }
 0x153   :  { %1037 = vst.msk [vmem:[%s2284_s3 + $0x278] sm:$0xff] %vm163_vm0, %v926_v21  ;;  %v836_v27 = vadd.f32 %v1543_v4, %v835_v26 }
 0x154   :  { %v871_v28 = vmax.f32 %v587_v24, 0.0  ;;  %v899_v29 = vmax.f32 %v671_v25, 0.0 }
 0x155   :  { %v954_v30 = vmax.f32 %v836_v27, 0.0 }
 0x156   :  { %982 = vst.msk [vmem:[%s2284_s3 + $0xc0] sm:$0xff] %vm163_vm0, %v871_v28  ;;  %v754_v31 = vpop.f32.mrf.mxu2 }
 0x157   :  { %1010 = vst.msk [vmem:[%s2284_s3 + $0x1a0] sm:$0xff] %vm163_vm0, %v899_v29  ;;  %v755_v32 = vadd.f32 %v1543_v4, %v754_v31 }
 0x158   :  { %1065 = vst.msk [vmem:[%s2284_s3 + $0x358] sm:$0xff] %vm163_vm0, %v954_v30 }
 0x159   :  { %v927_v33 = vmax.f32 %v755_v32, 0.0  ;;  %v589_v34 = vpop.f32.mrf.mxu0  ;;  %v673_v35 = vpop.f32.mrf.mxu1 }
 0x15a   :  { %v590_v36 = vadd.f32 %v1543_v4, %v589_v34  ;;  %v674_v37 = vadd.f32 %v1543_v4, %v673_v35  ;;  %v838_v38 = vpop.f32.mrf.mxu3 }
 0x15b   :  { %1038 = vst.msk [vmem:[%s2284_s3 + $0x280] sm:$0xff] %vm163_vm0, %v927_v33  ;;  %v839_v39 = vadd.f32 %v1543_v4, %v838_v38 }
 0x15c   :  { %v872_v40 = vmax.f32 %v590_v36, 0.0  ;;  %v900_v41 = vmax.f32 %v674_v37, 0.0 }
 0x15d   :  { %v955_v42 = vmax.f32 %v839_v39, 0.0 }
 0x15e   :  { %983 = vst.msk [vmem:[%s2284_s3 + $0xc8] sm:$0xff] %vm163_vm0, %v872_v40  ;;  %v757_v43 = vpop.f32.mrf.mxu2 }
 0x15f   :  { %1011 = vst.msk [vmem:[%s2284_s3 + $0x1a8] sm:$0xff] %vm163_vm0, %v900_v41  ;;  %v758_v44 = vadd.f32 %v1543_v4, %v757_v43 }
 0x160   :  { %1066 = vst.msk [vmem:[%s2284_s3 + $0x360] sm:$0xff] %vm163_vm0, %v955_v42 }
 0x161   :  { %v928_v45 = vmax.f32 %v758_v44, 0.0  ;;  %v592_v46 = vpop.f32.mrf.mxu0  ;;  %v676_v47 = vpop.f32.mrf.mxu1 }
 0x162   :  { %v593_v48 = vadd.f32 %v1543_v4, %v592_v46  ;;  %v677_v49 = vadd.f32 %v1543_v4, %v676_v47  ;;  %v841_v50 = vpop.f32.mrf.mxu3 }
 0x163   :  { %1039 = vst.msk [vmem:[%s2284_s3 + $0x288] sm:$0xff] %vm163_vm0, %v928_v45  ;;  %v842_v52 = vadd.f32 %v1204_v51, %v841_v50 }
 0x164   :  { %v873_v53 = vmax.f32 %v593_v48, 0.0  ;;  %v901_v54 = vmax.f32 %v677_v49, 0.0 }
 0x165   :  { %v956_v55 = vmax.f32 %v842_v52, 0.0 }
 0x166   :  { %984 = vst.msk [vmem:[%s2284_s3 + $0xd0] sm:$0xff] %vm163_vm0, %v873_v53  ;;  %v760_v56 = vpop.f32.mrf.mxu2 }
 0x167   :  { %1012 = vst.msk [vmem:[%s2284_s3 + $0x1b0] sm:$0xff] %vm163_vm0, %v901_v54  ;;  %v761_v4 = vadd.f32 %v1204_v51, %v760_v56 }
 0x168   :  { %1067 = vst.msk [vmem:[%s2284_s3 + $0x368] sm:$0xff] %vm163_vm0, %v956_v55 }
 0x169   :  { %v929_v57 = vmax.f32 %v761_v4, 0.0  ;;  %v595_v58 = vpop.f32.mrf.mxu0  ;;  %v679_v59 = vpop.f32.mrf.mxu1 }
 0x16a   :  { %v596_v60 = vadd.f32 %v1204_v51, %v595_v58  ;;  %v680_v61 = vadd.f32 %v1204_v51, %v679_v59  ;;  %v844_v62 = vpop.f32.mrf.mxu3 }
 0x16b   :  { %1040 = vst.msk [vmem:[%s2284_s3 + $0x290] sm:$0xff] %vm163_vm0, %v929_v57  ;;  %v845_v63 = vadd.f32 %v1204_v51, %v844_v62 }
 0x16c   :  { %v874_v0 = vmax.f32 %v596_v60, 0.0  ;;  %v902_v1 = vmax.f32 %v680_v61, 0.0 }
 0x16d   :  { %v957_v2 = vmax.f32 %v845_v63, 0.0 }
 0x16e   :  { %985 = vst.msk [vmem:[%s2284_s3 + $0xd8] sm:$0xff] %vm163_vm0, %v874_v0  ;;  %v763_v3 = vpop.f32.mrf.mxu2 }
 0x16f   :  { %1013 = vst.msk [vmem:[%s2284_s3 + $0x1b8] sm:$0xff] %vm163_vm0, %v902_v1  ;;  %v764_v5 = vadd.f32 %v1204_v51, %v763_v3 }
 0x170   :  { %1069 = vst.msk [vmem:[%s2284_s3 + $0x370] sm:$0x3] %vm1068_vm1, %v957_v2 }
 0x171   :  { %v930_v6 = vmax.f32 %v764_v5, 0.0 }
 0x173   :  { %1041 = vst.msk [vmem:[%s2284_s3 + $0x298] sm:$0xff] %vm163_vm0, %v930_v6 }
 0x174   :  { %1074 = vsyncpa [#allocation3], 1 }
 0x175   :  { %1075 = vsyncpa [#allocation5], 1 }

// kernel: actor_critic_forward.4
= control target key start
LH: loop header
LB: loop body
LE: loop exit
PB: predicated region body
PF: predicated region fallthrough
CT: control target
= control target key end

     0   :  { %vm507_vm0 = vcmask 523264   ;;  %vm528_vm1 = vcmask 517120   ;;  %s1108_s1 = inlined_call_operand.vmem [shape: f32[512,64], index: 1, kind: input, shape index: {}]   ;;  %s1109_s0 = inlined_call_operand.vmem [shape: f32[162,512], index: 0, kind: input, shape index: {}]   ;;  %s1110_s2 = inlined_call_operand.vmem [shape: f32[1,64], index: 2, kind: input, shape index: {}]   ;;  %s1111_s3 = inlined_call_operand.vmem [shape: f32[162,64], index: 3, kind: output, shape index: {}]  }
   0x1   :  { %v145_v0 = vld [vmem:[%s1108_s1 + $0x178] sm:$0xff]  ;;  %v144_v2 = vld [vmem:[%s1108_s1 + $0x170] sm:$0xff]  ;;  %v143_v6 = vld [vmem:[%s1108_s1 + $0x168] sm:$0xff] }
   0x2   :  { %v113_v1 = vld [vmem:[%s1108_s1 + $0x78] sm:$0xff]  ;;  %326 = vmatpush.msra.mxu2 %v145_v0  ;;  %v112_v4 = vld [vmem:[%s1108_s1 + $0x70] sm:$0xff]  ;;  %v111_v8 = vld [vmem:[%s1108_s1 + $0x68] sm:$0xff] }
   0x3   :  { %166 = vmatpush.msra.mxu0 %v113_v1  ;;  %v161_v3 = vld [vmem:[%s1108_s1 + $0x1f8] sm:$0xff]  ;;  %v160_v7 = vld [vmem:[%s1108_s1 + $0x1f0] sm:$0xff]  ;;  %v159_v10 = vld [vmem:[%s1108_s1 + $0x1e8] sm:$0xff] }
   0x4   :  { %v129_v5 = vld [vmem:[%s1108_s1 + $0xf8] sm:$0xff]  ;;  %406 = vmatpush.msra.mxu3 %v161_v3  ;;  %327 = vmatpush.msra.mxu2 %v144_v2  ;;  %v128_v9 = vld [vmem:[%s1108_s1 + $0xf0] sm:$0xff]  ;;  %v142_v11 = vld [vmem:[%s1108_s1 + $0x160] sm:$0xff] }
   0x5   :  { %246 = vmatpush.msra.mxu1 %v129_v5  ;;  %167 = vmatpush.msra.mxu0 %v112_v4  ;;  %v110_v12 = vld [vmem:[%s1108_s1 + $0x60] sm:$0xff]  ;;  %v127_v13 = vld [vmem:[%s1108_s1 + $0xe8] sm:$0xff]  ;;  %v141_v16 = vld [vmem:[%s1108_s1 + $0x158] sm:$0xff] }
   0x6   :  { %407 = vmatpush.msra.mxu3 %v160_v7  ;;  %328 = vmatpush.msra.mxu2 %v143_v6  ;;  %v158_v14 = vld [vmem:[%s1108_s1 + $0x1e0] sm:$0xff]  ;;  %v109_v17 = vld [vmem:[%s1108_s1 + $0x58] sm:$0xff]  ;;  %v140_v20 = vld [vmem:[%s1108_s1 + $0x150] sm:$0xff] }
   0x7   :  { %247 = vmatpush.msra.mxu1 %v128_v9  ;;  %168 = vmatpush.msra.mxu0 %v111_v8  ;;  %v126_v15 = vld [vmem:[%s1108_s1 + $0xe0] sm:$0xff]  ;;  %v157_v18 = vld [vmem:[%s1108_s1 + $0x1d8] sm:$0xff]  ;;  %v108_v21 = vld [vmem:[%s1108_s1 + $0x50] sm:$0xff] }
   0x8   :  { %408 = vmatpush.msra.mxu3 %v159_v10  ;;  %329 = vmatpush.msra.mxu2 %v142_v11  ;;  %v125_v19 = vld [vmem:[%s1108_s1 + $0xd8] sm:$0xff]  ;;  %v156_v22 = vld [vmem:[%s1108_s1 + $0x1d0] sm:$0xff]  ;;  %v139_v24 = vld [vmem:[%s1108_s1 + $0x148] sm:$0xff] }
   0x9   :  { %248 = vmatpush.msra.mxu1 %v127_v13  ;;  %169 = vmatpush.msra.mxu0 %v110_v12  ;;  %v124_v23 = vld [vmem:[%s1108_s1 + $0xd0] sm:$0xff]  ;;  %v107_v25 = vld [vmem:[%s1108_s1 + $0x48] sm:$0xff]  ;;  %v138_v28 = vld [vmem:[%s1108_s1 + $0x140] sm:$0xff] }
   0xa   :  { %409 = vmatpush.msra.mxu3 %v158_v14  ;;  %330 = vmatpush.msra.mxu2 %v141_v16  ;;  %v155_v26 = vld [vmem:[%s1108_s1 + $0x1c8] sm:$0xff]  ;;  %v106_v29 = vld [vmem:[%s1108_s1 + $0x40] sm:$0xff]  ;;  %v137_v32 = vld [vmem:[%s1108_s1 + $0x138] sm:$0xff] }
   0xb   :  { %249 = vmatpush.msra.mxu1 %v126_v15  ;;  %170 = vmatpush.msra.mxu0 %v109_v17  ;;  %v123_v27 = vld [vmem:[%s1108_s1 + $0xc8] sm:$0xff]  ;;  %v154_v30 = vld [vmem:[%s1108_s1 + $0x1c0] sm:$0xff]  ;;  %v105_v33 = vld [vmem:[%s1108_s1 + $0x38] sm:$0xff] }
   0xc   :  { %410 = vmatpush.msra.mxu3 %v157_v18  ;;  %331 = vmatpush.msra.mxu2 %v140_v20  ;;  %v122_v31 = vld [vmem:[%s1108_s1 + $0xc0] sm:$0xff]  ;;  %v153_v34 = vld [vmem:[%s1108_s1 + $0x1b8] sm:$0xff]  ;;  %v136_v36 = vld [vmem:[%s1108_s1 + $0x130] sm:$0xff] }
   0xd   :  { %250 = vmatpush.msra.mxu1 %v125_v19  ;;  %171 = vmatpush.msra.mxu0 %v108_v21  ;;  %v121_v35 = vld [vmem:[%s1108_s1 + $0xb8] sm:$0xff]  ;;  %v104_v37 = vld [vmem:[%s1108_s1 + $0x30] sm:$0xff]  ;;  %v135_v40 = vld [vmem:[%s1108_s1 + $0x128] sm:$0xff] }
   0xe   :  { %411 = vmatpush.msra.mxu3 %v156_v22  ;;  %332 = vmatpush.msra.mxu2 %v139_v24  ;;  %v152_v38 = vld [vmem:[%s1108_s1 + $0x1b0] sm:$0xff]  ;;  %v103_v41 = vld [vmem:[%s1108_s1 + $0x28] sm:$0xff]  ;;  %v134_v44 = vld [vmem:[%s1108_s1 + $0x120] sm:$0xff] }
   0xf   :  { %251 = vmatpush.msra.mxu1 %v124_v23  ;;  %172 = vmatpush.msra.mxu0 %v107_v25  ;;  %v120_v39 = vld [vmem:[%s1108_s1 + $0xb0] sm:$0xff]  ;;  %v151_v42 = vld [vmem:[%s1108_s1 + $0x1a8] sm:$0xff]  ;;  %v102_v45 = vld [vmem:[%s1108_s1 + $0x20] sm:$0xff] }
  0x10   :  { %412 = vmatpush.msra.mxu3 %v155_v26  ;;  %333 = vmatpush.msra.mxu2 %v138_v28  ;;  %v119_v43 = vld [vmem:[%s1108_s1 + $0xa8] sm:$0xff]  ;;  %v150_v46 = vld [vmem:[%s1108_s1 + $0x1a0] sm:$0xff]  ;;  %v133_v48 = vld [vmem:[%s1108_s1 + $0x118] sm:$0xff] }
  0x11   :  { %252 = vmatpush.msra.mxu1 %v123_v27  ;;  %173 = vmatpush.msra.mxu0 %v106_v29  ;;  %v118_v47 = vld [vmem:[%s1108_s1 + $0xa0] sm:$0xff]  ;;  %v101_v49 = vld [vmem:[%s1108_s1 + $0x18] sm:$0xff]  ;;  %v132_v52 = vld [vmem:[%s1108_s1 + $0x110] sm:$0xff] }
  0x12   :  { %413 = vmatpush.msra.mxu3 %v154_v30  ;;  %334 = vmatpush.msra.mxu2 %v137_v32  ;;  %v149_v50 = vld [vmem:[%s1108_s1 + $0x198] sm:$0xff]  ;;  %v100_v53 = vld [vmem:[%s1108_s1 + $0x10] sm:$0xff]  ;;  %v131_v56 = vld [vmem:[%s1108_s1 + $0x108] sm:$0xff] }
  0x13   :  { %253 = vmatpush.msra.mxu1 %v122_v31  ;;  %174 = vmatpush.msra.mxu0 %v105_v33  ;;  %v117_v51 = vld [vmem:[%s1108_s1 + $0x98] sm:$0xff]  ;;  %v148_v54 = vld [vmem:[%s1108_s1 + $0x190] sm:$0xff]  ;;  %v99_v57 = vld [vmem:[%s1108_s1 + $0x8] sm:$0xff] }
  0x14   :  { %414 = vmatpush.msra.mxu3 %v153_v34  ;;  %335 = vmatpush.msra.mxu2 %v136_v36  ;;  %v116_v55 = vld [vmem:[%s1108_s1 + $0x90] sm:$0xff]  ;;  %v147_v58 = vld [vmem:[%s1108_s1 + $0x188] sm:$0xff]  ;;  %v130_v60 = vld [vmem:[%s1108_s1 + $0x100] sm:$0xff] }
  0x15   :  { %254 = vmatpush.msra.mxu1 %v121_v35  ;;  %175 = vmatpush.msra.mxu0 %v104_v37  ;;  %v115_v59 = vld [vmem:[%s1108_s1 + $0x88] sm:$0xff]  ;;  %v98_v61 = vld [vmem:[%s1108_s1] sm:$0xff]  ;;  %v16_v62 = vld [vmem:[%s1109_s0 + $0x10] sm:$0xff] }
  0x16   :  { %415 = vmatpush.msra.mxu3 %v152_v38  ;;  %336 = vmatpush.msra.mxu2 %v135_v40  ;;  %v146_v63 = vld [vmem:[%s1108_s1 + $0x180] sm:$0xff]  ;;  %v17_v1 = vld [vmem:[%s1109_s0 + $0x18] sm:$0xff]  ;;  %v15_v3 = vld [vmem:[%s1109_s0 + $0x8] sm:$0xff] }
  0x17   :  { %255 = vmatpush.msra.mxu1 %v120_v39  ;;  %176 = vmatpush.msra.mxu0 %v103_v41  ;;  %v14_v0 = vld [vmem:[%s1109_s0] sm:$0xff]  ;;  %v20_v4 = vld [vmem:[%s1109_s0 + $0x30] sm:$0xff]  ;;  %v21_v6 = vld [vmem:[%s1109_s0 + $0x38] sm:$0xff] }
  0x18   :  { %416 = vmatpush.msra.mxu3 %v151_v42  ;;  %337 = vmatpush.msra.mxu2 %v134_v44  ;;  %v114_v2 = vld [vmem:[%s1108_s1 + $0x80] sm:$0xff]  ;;  %v19_v7 = vld [vmem:[%s1109_s0 + $0x28] sm:$0xff]  ;;  %v24_v8 = vld [vmem:[%s1109_s0 + $0x50] sm:$0xff] }
  0x19   :  { %256 = vmatpush.msra.mxu1 %v119_v43  ;;  %177 = vmatpush.msra.mxu0 %v102_v45  ;;  %v18_v5 = vld [vmem:[%s1109_s0 + $0x20] sm:$0xff]  ;;  %v25_v10 = vld [vmem:[%s1109_s0 + $0x58] sm:$0xff]  ;;  %v23_v11 = vld [vmem:[%s1109_s0 + $0x48] sm:$0xff] }
  0x1a   :  { %417 = vmatpush.msra.mxu3 %v150_v46  ;;  %338 = vmatpush.msra.mxu2 %v133_v48  ;;  %v22_v9 = vld [vmem:[%s1109_s0 + $0x40] sm:$0xff]  ;;  %v28_v12 = vld [vmem:[%s1109_s0 + $0x70] sm:$0xff]  ;;  %v29_v14 = vld [vmem:[%s1109_s0 + $0x78] sm:$0xff] }
  0x1b   :  { %257 = vmatpush.msra.mxu1 %v118_v47  ;;  %178 = vmatpush.msra.mxu0 %v101_v49  ;;  %v26_v13 = vld [vmem:[%s1109_s0 + $0x60] sm:$0xff]  ;;  %v27_v15 = vld [vmem:[%s1109_s0 + $0x68] sm:$0xff]  ;;  %v32_v16 = vld [vmem:[%s1109_s0 + $0x90] sm:$0xff] }
  0x1c   :  { %418 = vmatpush.msra.mxu3 %v149_v50  ;;  %339 = vmatpush.msra.mxu2 %v132_v52  ;;  %v30_v17 = vld [vmem:[%s1109_s0 + $0x80] sm:$0xff]  ;;  %v33_v18 = vld [vmem:[%s1109_s0 + $0x98] sm:$0xff]  ;;  %v31_v19 = vld [vmem:[%s1109_s0 + $0x88] sm:$0xff] }
  0x1d   :  { %258 = vmatpush.msra.mxu1 %v117_v51  ;;  %179 = vmatpush.msra.mxu0 %v100_v53  ;;  %v36_v20 = vld [vmem:[%s1109_s0 + $0xb0] sm:$0xff]  ;;  %v34_v21 = vld [vmem:[%s1109_s0 + $0xa0] sm:$0xff]  ;;  %v37_v22 = vld [vmem:[%s1109_s0 + $0xb8] sm:$0xff] }
  0x1e   :  { %419 = vmatpush.msra.mxu3 %v148_v54  ;;  %340 = vmatpush.msra.mxu2 %v131_v56  ;;  %v35_v23 = vld [vmem:[%s1109_s0 + $0xa8] sm:$0xff]  ;;  %v40_v24 = vld [vmem:[%s1109_s0 + $0xd0] sm:$0xff]  ;;  %v38_v25 = vld [vmem:[%s1109_s0 + $0xc0] sm:$0xff] }
  0x1f   :  { %259 = vmatpush.msra.mxu1 %v116_v55  ;;  %180 = vmatpush.msra.mxu0 %v99_v57  ;;  %v41_v26 = vld [vmem:[%s1109_s0 + $0xd8] sm:$0xff]  ;;  %v39_v27 = vld [vmem:[%s1109_s0 + $0xc8] sm:$0xff]  ;;  %v44_v28 = vld [vmem:[%s1109_s0 + $0xf0] sm:$0xff] }
  0x20   :  { %420 = vmatpush.msra.mxu3 %v147_v58  ;;  %341 = vmatpush.msra.mxu2 %v130_v60  ;;  %v42_v29 = vld [vmem:[%s1109_s0 + $0xe0] sm:$0xff]  ;;  %v45_v30 = vld [vmem:[%s1109_s0 + $0xf8] sm:$0xff]  ;;  %v43_v31 = vld [vmem:[%s1109_s0 + $0xe8] sm:$0xff] }
  0x21   :  { %260 = vmatpush.msra.mxu1 %v115_v59  ;;  %181 = vmatpush.msra.mxu0 %v98_v61  ;;  %v48_v32 = vld [vmem:[%s1109_s0 + $0x110] sm:$0xff]  ;;  %v46_v33 = vld [vmem:[%s1109_s0 + $0x100] sm:$0xff]  ;;  %v49_v34 = vld [vmem:[%s1109_s0 + $0x118] sm:$0xff] }
  0x22   :  { %342 = vmatmul.f32.vlgmr.msra.gmra.mxu2 %v16_v62  ;;  %421 = vmatpush.msra.mxu3 %v146_v63  ;;  %v47_v35 = vld [vmem:[%s1109_s0 + $0x108] sm:$0xff]  ;;  %v52_v36 = vld [vmem:[%s1109_s0 + $0x130] sm:$0xff]  ;;  %v50_v37 = vld [vmem:[%s1109_s0 + $0x120] sm:$0xff] }
  0x23   :  { %182 = vmatmul.f32.vlgmr.msra.gmra.mxu0 %v14_v0  ;;  %422 = vmatmul.f32.vlgmr.msra.gmra.mxu3 %v17_v1  ;;  %v53_v38 = vld [vmem:[%s1109_s0 + $0x138] sm:$0xff]  ;;  %v51_v39 = vld [vmem:[%s1109_s0 + $0x128] sm:$0xff]  ;;  %v56_v40 = vld [vmem:[%s1109_s0 + $0x150] sm:$0xff] }
  0x24   :  { %261 = vmatpush.msra.mxu1 %v114_v2  ;;  %v54_v41 = vld [vmem:[%s1109_s0 + $0x140] sm:$0xff]  ;;  %v57_v42 = vld [vmem:[%s1109_s0 + $0x158] sm:$0xff]  ;;  %v55_v43 = vld [vmem:[%s1109_s0 + $0x148] sm:$0xff] }
  0x25   :  { %262 = vmatmul.f32.vlgmr.msra.gmra.mxu1 %v15_v3  ;;  %v60_v44 = vld [vmem:[%s1109_s0 + $0x170] sm:$0xff]  ;;  %v58_v45 = vld [vmem:[%s1109_s0 + $0x160] sm:$0xff]  ;;  %v61_v46 = vld [vmem:[%s1109_s0 + $0x178] sm:$0xff] }
  0x26   :  { %v59_v47 = vld [vmem:[%s1109_s0 + $0x168] sm:$0xff]  ;;  %v64_v48 = vld [vmem:[%s1109_s0 + $0x190] sm:$0xff]  ;;  %v62_v49 = vld [vmem:[%s1109_s0 + $0x180] sm:$0xff] }
  0x27   :  { %v65_v50 = vld [vmem:[%s1109_s0 + $0x198] sm:$0xff]  ;;  %v63_v51 = vld [vmem:[%s1109_s0 + $0x188] sm:$0xff]  ;;  %v68_v52 = vld [vmem:[%s1109_s0 + $0x1b0] sm:$0xff] }
  0x28   :  { %v66_v53 = vld [vmem:[%s1109_s0 + $0x1a0] sm:$0xff]  ;;  %v69_v54 = vld [vmem:[%s1109_s0 + $0x1b8] sm:$0xff]  ;;  %v67_v55 = vld [vmem:[%s1109_s0 + $0x1a8] sm:$0xff] }
  0x29   :  { %v72_v56 = vld [vmem:[%s1109_s0 + $0x1d0] sm:$0xff]  ;;  %v70_v57 = vld [vmem:[%s1109_s0 + $0x1c0] sm:$0xff]  ;;  %v73_v58 = vld [vmem:[%s1109_s0 + $0x1d8] sm:$0xff] }
  0x2a   :  { %345 = vmatmul.f32.gmra.mxu2 %v20_v4  ;;  %v71_v59 = vld [vmem:[%s1109_s0 + $0x1c8] sm:$0xff]  ;;  %v76_v60 = vld [vmem:[%s1109_s0 + $0x1f0] sm:$0xff]  ;;  %v74_v61 = vld [vmem:[%s1109_s0 + $0x1e0] sm:$0xff] }
  0x2b   :  { %185 = vmatmul.f32.gmra.mxu0 %v18_v5  ;;  %425 = vmatmul.f32.gmra.mxu3 %v21_v6  ;;  %v77_v62 = vld [vmem:[%s1109_s0 + $0x1f8] sm:$0xff]  ;;  %v75_v63 = vld [vmem:[%s1109_s0 + $0x1e8] sm:$0xff]  ;;  %v942_v0 = vld [vmem:[%s1110_s2] ss:$0 sm:$0xff] }
  0x2c   :  { %v80_v1 = vld [vmem:[%s1109_s0 + $0x210] sm:$0xff]  ;;  %v78_v3 = vld [vmem:[%s1109_s0 + $0x200] sm:$0xff]  ;;  %v81_v4 = vld [vmem:[%s1109_s0 + $0x218] sm:$0xff] }
  0x2d   :  { %265 = vmatmul.f32.gmra.mxu1 %v19_v7  ;;  %v79_v7 = vld [vmem:[%s1109_s0 + $0x208] sm:$0xff] }
  0x32   :  { %348 = vmatmul.f32.gmra.mxu2 %v24_v8 }
  0x33   :  { %188 = vmatmul.f32.gmra.mxu0 %v22_v9  ;;  %428 = vmatmul.f32.gmra.mxu3 %v25_v10 }
  0x35   :  { %268 = vmatmul.f32.gmra.mxu1 %v23_v11 }
  0x3a   :  { %351 = vmatmul.f32.gmra.mxu2 %v28_v12  ;;  %v84_v12 = vld [vmem:[%s1109_s0 + $0x230] sm:$0xff] }
  0x3b   :  { %191 = vmatmul.f32.gmra.mxu0 %v26_v13  ;;  %431 = vmatmul.f32.gmra.mxu3 %v29_v14 }
  0x3d   :  { %271 = vmatmul.f32.gmra.mxu1 %v27_v15  ;;  %v82_v15 = vld [vmem:[%s1109_s0 + $0x220] sm:$0xff] }
  0x42   :  { %354 = vmatmul.f32.gmra.mxu2 %v32_v16  ;;  %v85_v16 = vld [vmem:[%s1109_s0 + $0x238] sm:$0xff] }
  0x43   :  { %194 = vmatmul.f32.gmra.mxu0 %v30_v17  ;;  %434 = vmatmul.f32.gmra.mxu3 %v33_v18 }
  0x45   :  { %274 = vmatmul.f32.gmra.mxu1 %v31_v19 }
  0x4a   :  { %357 = vmatmul.f32.gmra.mxu2 %v36_v20  ;;  %v83_v20 = vld [vmem:[%s1109_s0 + $0x228] sm:$0xff] }
  0x4b   :  { %197 = vmatmul.f32.gmra.mxu0 %v34_v21  ;;  %437 = vmatmul.f32.gmra.mxu3 %v37_v22 }
  0x4d   :  { %277 = vmatmul.f32.gmra.mxu1 %v35_v23 }
  0x52   :  { %360 = vmatmul.f32.gmra.mxu2 %v40_v24 }
  0x53   :  { %200 = vmatmul.f32.gmra.mxu0 %v38_v25  ;;  %440 = vmatmul.f32.gmra.mxu3 %v41_v26  ;;  %v88_v25 = vld [vmem:[%s1109_s0 + $0x250] sm:$0xff] }
  0x55   :  { %280 = vmatmul.f32.gmra.mxu1 %v39_v27 }
  0x5a   :  { %363 = vmatmul.f32.gmra.mxu2 %v44_v28  ;;  %v86_v28 = vld [vmem:[%s1109_s0 + $0x240] sm:$0xff] }
  0x5b   :  { %203 = vmatmul.f32.gmra.mxu0 %v42_v29  ;;  %443 = vmatmul.f32.gmra.mxu3 %v45_v30  ;;  %v89_v29 = vld [vmem:[%s1109_s0 + $0x258] sm:$0xff] }
  0x5d   :  { %283 = vmatmul.f32.gmra.mxu1 %v43_v31 }
  0x62   :  { %366 = vmatmul.f32.gmra.mxu2 %v48_v32 }
  0x63   :  { %206 = vmatmul.f32.gmra.mxu0 %v46_v33  ;;  %446 = vmatmul.f32.gmra.mxu3 %v49_v34  ;;  %v87_v33 = vld [vmem:[%s1109_s0 + $0x248] sm:$0xff] }
  0x65   :  { %286 = vmatmul.f32.gmra.mxu1 %v47_v35 }
  0x6a   :  { %369 = vmatmul.f32.gmra.mxu2 %v52_v36 }
  0x6b   :  { %209 = vmatmul.f32.gmra.mxu0 %v50_v37  ;;  %449 = vmatmul.f32.gmra.mxu3 %v53_v38  ;;  %v92_v38 = vld [vmem:[%s1109_s0 + $0x270] sm:$0xff] }
  0x6d   :  { %289 = vmatmul.f32.gmra.mxu1 %v51_v39 }
  0x72   :  { %372 = vmatmul.f32.gmra.mxu2 %v56_v40 }
  0x73   :  { %212 = vmatmul.f32.gmra.mxu0 %v54_v41  ;;  %452 = vmatmul.f32.gmra.mxu3 %v57_v42  ;;  %v90_v41 = vld [vmem:[%s1109_s0 + $0x260] sm:$0xff]  ;;  %v93_v42 = vld [vmem:[%s1109_s0 + $0x278] sm:$0xff] }
  0x75   :  { %292 = vmatmul.f32.gmra.mxu1 %v55_v43 }
  0x7a   :  { %375 = vmatmul.f32.gmra.mxu2 %v60_v44 }
  0x7b   :  { %215 = vmatmul.f32.gmra.mxu0 %v58_v45  ;;  %455 = vmatmul.f32.gmra.mxu3 %v61_v46  ;;  %v91_v46 = vld [vmem:[%s1109_s0 + $0x268] sm:$0xff] }
  0x7d   :  { %295 = vmatmul.f32.gmra.mxu1 %v59_v47 }
  0x82   :  { %378 = vmatmul.f32.gmra.mxu2 %v64_v48 }
  0x83   :  { %218 = vmatmul.f32.gmra.mxu0 %v62_v49  ;;  %458 = vmatmul.f32.gmra.mxu3 %v65_v50 }
  0x85   :  { %298 = vmatmul.f32.gmra.mxu1 %v63_v51  ;;  %v96_v51 = vld [vmem:[%s1109_s0 + $0x290] sm:$0x3] }
  0x8a   :  { %381 = vmatmul.f32.gmra.mxu2 %v68_v52 }
  0x8b   :  { %221 = vmatmul.f32.gmra.mxu0 %v66_v53  ;;  %461 = vmatmul.f32.gmra.mxu3 %v69_v54  ;;  %v94_v54 = vld [vmem:[%s1109_s0 + $0x280] sm:$0x3] }
  0x8d   :  { %301 = vmatmul.f32.gmra.mxu1 %v67_v55  ;;  %v97_v55 = vld [vmem:[%s1109_s0 + $0x298] sm:$0x3] }
  0x92   :  { %384 = vmatmul.f32.gmra.mxu2 %v72_v56 }
  0x93   :  { %224 = vmatmul.f32.gmra.mxu0 %v70_v57  ;;  %464 = vmatmul.f32.gmra.mxu3 %v73_v58 }
  0x95   :  { %304 = vmatmul.f32.gmra.mxu1 %v71_v59  ;;  %v95_v59 = vld [vmem:[%s1109_s0 + $0x288] sm:$0x3] }
  0x9a   :  { %387 = vmatmul.f32.gmra.mxu2 %v76_v60 }
  0x9b   :  { %227 = vmatmul.f32.gmra.mxu0 %v74_v61  ;;  %467 = vmatmul.f32.gmra.mxu3 %v77_v62 }
  0x9d   :  { %307 = vmatmul.f32.gmra.mxu1 %v75_v63 }
  0xa0   :  { %v183_v2 = vpop.f32.mrf.mxu0 }
  0xa1   :  { %v184_v5 = vadd.f32 %v942_v0, %v183_v2 }
  0xa2   :  { %390 = vmatmul.f32.gmra.mxu2 %v80_v1  ;;  %v263_v6 = vpop.f32.mrf.mxu1 }
  0xa3   :  { %v264_v8 = vadd.f32 %v263_v6, %v184_v5  ;;  %230 = vmatmul.f32.gmra.mxu0 %v78_v3  ;;  %470 = vmatmul.f32.gmra.mxu3 %v81_v4 }
  0xa5   :  { %v343_v9 = vpop.f32.mrf.mxu2  ;;  %310 = vmatmul.f32.gmra.mxu1 %v79_v7 }
  0xa6   :  { %v344_v10 = vadd.f32 %v343_v9, %v264_v8  ;;  %v423_v11 = vpop.f32.mrf.mxu3 }
  0xa8   :  { %v424_v13 = vadd.f32 %v423_v11, %v344_v10  ;;  %v186_v14 = vpop.f32.mrf.mxu0 }
  0xa9   :  { %v187_v17 = vadd.f32 %v942_v0, %v186_v14 }
  0xaa   :  { %v486_v18 = vmax.f32 %v424_v13, 0.0  ;;  %393 = vmatmul.f32.gmra.mxu2 %v84_v12  ;;  %v266_v19 = vpop.f32.mrf.mxu1 }
  0xab   :  { %v267_v21 = vadd.f32 %v266_v19, %v187_v17  ;;  %233 = vmatmul.f32.gmra.mxu0 %v82_v15  ;;  %473 = vmatmul.f32.gmra.mxu3 %v85_v16 }
  0xac   :  { %508 = vst.msk [vmem:[%s1111_s3] sm:$0xff] %vm507_vm0, %v486_v18 }
  0xad   :  { %v346_v22 = vpop.f32.mrf.mxu2  ;;  %313 = vmatmul.f32.gmra.mxu1 %v83_v20 }
  0xae   :  { %v347_v23 = vadd.f32 %v346_v22, %v267_v21  ;;  %v426_v24 = vpop.f32.mrf.mxu3 }
  0xb0   :  { %v427_v26 = vadd.f32 %v426_v24, %v347_v23  ;;  %v189_v27 = vpop.f32.mrf.mxu0 }
  0xb1   :  { %v190_v30 = vadd.f32 %v942_v0, %v189_v27 }
  0xb2   :  { %v487_v31 = vmax.f32 %v427_v26, 0.0  ;;  %396 = vmatmul.f32.gmra.mxu2 %v88_v25  ;;  %v269_v32 = vpop.f32.mrf.mxu1 }
  0xb3   :  { %v270_v34 = vadd.f32 %v269_v32, %v190_v30  ;;  %236 = vmatmul.f32.gmra.mxu0 %v86_v28  ;;  %476 = vmatmul.f32.gmra.mxu3 %v89_v29 }
  0xb4   :  { %509 = vst.msk [vmem:[%s1111_s3 + $0x8] sm:$0xff] %vm507_vm0, %v487_v31 }
  0xb5   :  { %v349_v35 = vpop.f32.mrf.mxu2  ;;  %316 = vmatmul.f32.gmra.mxu1 %v87_v33 }
  0xb6   :  { %v350_v36 = vadd.f32 %v349_v35, %v270_v34  ;;  %v429_v37 = vpop.f32.mrf.mxu3 }
  0xb8   :  { %v430_v39 = vadd.f32 %v429_v37, %v350_v36  ;;  %v192_v40 = vpop.f32.mrf.mxu0 }
  0xb9   :  { %v193_v43 = vadd.f32 %v942_v0, %v192_v40 }
  0xba   :  { %v488_v44 = vmax.f32 %v430_v39, 0.0  ;;  %399 = vmatmul.f32.gmra.mxu2 %v92_v38  ;;  %v272_v45 = vpop.f32.mrf.mxu1 }
  0xbb   :  { %v273_v47 = vadd.f32 %v272_v45, %v193_v43  ;;  %239 = vmatmul.f32.gmra.mxu0 %v90_v41  ;;  %479 = vmatmul.f32.gmra.mxu3 %v93_v42 }
  0xbc   :  { %510 = vst.msk [vmem:[%s1111_s3 + $0x10] sm:$0xff] %vm507_vm0, %v488_v44 }
  0xbd   :  { %v352_v48 = vpop.f32.mrf.mxu2  ;;  %319 = vmatmul.f32.gmra.mxu1 %v91_v46 }
  0xbe   :  { %v353_v49 = vadd.f32 %v352_v48, %v273_v47  ;;  %v432_v50 = vpop.f32.mrf.mxu3 }
  0xc0   :  { %v433_v52 = vadd.f32 %v432_v50, %v353_v49  ;;  %v195_v53 = vpop.f32.mrf.mxu0 }
  0xc1   :  { %v196_v56 = vadd.f32 %v942_v0, %v195_v53 }
  0xc2   :  { %v489_v57 = vmax.f32 %v433_v52, 0.0  ;;  %402 = vmatmul.f32.gmra.mxu2 %v96_v51  ;;  %v275_v58 = vpop.f32.mrf.mxu1 }
  0xc3   :  { %v276_v60 = vadd.f32 %v275_v58, %v196_v56  ;;  %242 = vmatmul.f32.gmra.mxu0 %v94_v54  ;;  %482 = vmatmul.f32.gmra.mxu3 %v97_v55 }
  0xc4   :  { %511 = vst.msk [vmem:[%s1111_s3 + $0x18] sm:$0xff] %vm507_vm0, %v489_v57 }
  0xc5   :  { %v355_v61 = vpop.f32.mrf.mxu2  ;;  %322 = vmatmul.f32.gmra.mxu1 %v95_v59 }
  0xc6   :  { %v356_v62 = vadd.f32 %v355_v61, %v276_v60  ;;  %v435_v63 = vpop.f32.mrf.mxu3 }
  0xc8   :  { %v436_v1 = vadd.f32 %v435_v63, %v356_v62  ;;  %v198_v2 = vpop.f32.mrf.mxu0 }
  0xc9   :  { %v199_v3 = vadd.f32 %v942_v0, %v198_v2 }
  0xca   :  { %v490_v4 = vmax.f32 %v436_v1, 0.0  ;;  %v278_v5 = vpop.f32.mrf.mxu1 }
  0xcb   :  { %v279_v6 = vadd.f32 %v278_v5, %v199_v3 }
  0xcc   :  { %512 = vst.msk [vmem:[%s1111_s3 + $0x20] sm:$0xff] %vm507_vm0, %v490_v4 }
  0xcd   :  { %v358_v7 = vpop.f32.mrf.mxu2 }
  0xce   :  { %v359_v8 = vadd.f32 %v358_v7, %v279_v6  ;;  %v438_v9 = vpop.f32.mrf.mxu3 }
  0xd0   :  { %v439_v10 = vadd.f32 %v438_v9, %v359_v8  ;;  %v201_v11 = vpop.f32.mrf.mxu0 }
  0xd1   :  { %v202_v12 = vadd.f32 %v942_v0, %v201_v11 }
  0xd2   :  { %v491_v13 = vmax.f32 %v439_v10, 0.0  ;;  %v281_v14 = vpop.f32.mrf.mxu1 }
  0xd3   :  { %v282_v15 = vadd.f32 %v281_v14, %v202_v12 }
  0xd4   :  { %513 = vst.msk [vmem:[%s1111_s3 + $0x28] sm:$0xff] %vm507_vm0, %v491_v13 }
  0xd5   :  { %v361_v16 = vpop.f32.mrf.mxu2 }
  0xd6   :  { %v362_v17 = vadd.f32 %v361_v16, %v282_v15  ;;  %v441_v18 = vpop.f32.mrf.mxu3 }
  0xd8   :  { %v442_v19 = vadd.f32 %v441_v18, %v362_v17  ;;  %v204_v20 = vpop.f32.mrf.mxu0 }
  0xd9   :  { %v205_v21 = vadd.f32 %v942_v0, %v204_v20 }
  0xda   :  { %v492_v22 = vmax.f32 %v442_v19, 0.0  ;;  %v284_v23 = vpop.f32.mrf.mxu1 }
  0xdb   :  { %v285_v24 = vadd.f32 %v284_v23, %v205_v21 }
  0xdc   :  { %514 = vst.msk [vmem:[%s1111_s3 + $0x30] sm:$0xff] %vm507_vm0, %v492_v22 }
  0xdd   :  { %v364_v25 = vpop.f32.mrf.mxu2 }
  0xde   :  { %v365_v26 = vadd.f32 %v364_v25, %v285_v24  ;;  %v444_v27 = vpop.f32.mrf.mxu3 }
  0xe0   :  { %v445_v28 = vadd.f32 %v444_v27, %v365_v26  ;;  %v207_v29 = vpop.f32.mrf.mxu0 }
  0xe1   :  { %v208_v30 = vadd.f32 %v942_v0, %v207_v29 }
  0xe2   :  { %v493_v31 = vmax.f32 %v445_v28, 0.0  ;;  %v287_v32 = vpop.f32.mrf.mxu1 }
  0xe3   :  { %v288_v33 = vadd.f32 %v287_v32, %v208_v30 }
  0xe4   :  { %515 = vst.msk [vmem:[%s1111_s3 + $0x38] sm:$0xff] %vm507_vm0, %v493_v31 }
  0xe5   :  { %v367_v34 = vpop.f32.mrf.mxu2 }
  0xe6   :  { %v368_v35 = vadd.f32 %v367_v34, %v288_v33  ;;  %v447_v36 = vpop.f32.mrf.mxu3 }
  0xe8   :  { %v448_v37 = vadd.f32 %v447_v36, %v368_v35  ;;  %v210_v38 = vpop.f32.mrf.mxu0 }
  0xe9   :  { %v211_v39 = vadd.f32 %v942_v0, %v210_v38 }
  0xea   :  { %v494_v40 = vmax.f32 %v448_v37, 0.0  ;;  %v290_v41 = vpop.f32.mrf.mxu1 }
  0xeb   :  { %v291_v42 = vadd.f32 %v290_v41, %v211_v39 }
  0xec   :  { %516 = vst.msk [vmem:[%s1111_s3 + $0x40] sm:$0xff] %vm507_vm0, %v494_v40 }
  0xed   :  { %v370_v43 = vpop.f32.mrf.mxu2 }
  0xee   :  { %v371_v44 = vadd.f32 %v370_v43, %v291_v42  ;;  %v450_v45 = vpop.f32.mrf.mxu3 }
  0xf0   :  { %v451_v46 = vadd.f32 %v450_v45, %v371_v44  ;;  %v213_v47 = vpop.f32.mrf.mxu0 }
  0xf1   :  { %v214_v48 = vadd.f32 %v942_v0, %v213_v47 }
  0xf2   :  { %v495_v49 = vmax.f32 %v451_v46, 0.0  ;;  %v293_v50 = vpop.f32.mrf.mxu1 }
  0xf3   :  { %v294_v51 = vadd.f32 %v293_v50, %v214_v48 }
  0xf4   :  { %517 = vst.msk [vmem:[%s1111_s3 + $0x48] sm:$0xff] %vm507_vm0, %v495_v49 }
  0xf5   :  { %v373_v52 = vpop.f32.mrf.mxu2 }
  0xf6   :  { %v374_v53 = vadd.f32 %v373_v52, %v294_v51  ;;  %v453_v54 = vpop.f32.mrf.mxu3 }
  0xf8   :  { %v454_v55 = vadd.f32 %v453_v54, %v374_v53  ;;  %v216_v56 = vpop.f32.mrf.mxu0 }
  0xf9   :  { %v217_v57 = vadd.f32 %v942_v0, %v216_v56 }
  0xfa   :  { %v496_v58 = vmax.f32 %v454_v55, 0.0  ;;  %v296_v59 = vpop.f32.mrf.mxu1 }
  0xfb   :  { %v297_v60 = vadd.f32 %v296_v59, %v217_v57 }
  0xfc   :  { %518 = vst.msk [vmem:[%s1111_s3 + $0x50] sm:$0xff] %vm507_vm0, %v496_v58 }
  0xfd   :  { %v376_v61 = vpop.f32.mrf.mxu2 }
  0xfe   :  { %v377_v62 = vadd.f32 %v376_v61, %v297_v60  ;;  %v456_v63 = vpop.f32.mrf.mxu3 }
 0x100   :  { %v457_v1 = vadd.f32 %v456_v63, %v377_v62  ;;  %v219_v2 = vpop.f32.mrf.mxu0 }
 0x101   :  { %v220_v3 = vadd.f32 %v942_v0, %v219_v2 }
 0x102   :  { %v497_v4 = vmax.f32 %v457_v1, 0.0  ;;  %v299_v5 = vpop.f32.mrf.mxu1 }
 0x103   :  { %v300_v6 = vadd.f32 %v299_v5, %v220_v3 }
 0x104   :  { %519 = vst.msk [vmem:[%s1111_s3 + $0x58] sm:$0xff] %vm507_vm0, %v497_v4 }
 0x105   :  { %v379_v7 = vpop.f32.mrf.mxu2 }
 0x106   :  { %v380_v8 = vadd.f32 %v379_v7, %v300_v6  ;;  %v459_v9 = vpop.f32.mrf.mxu3 }
 0x108   :  { %v460_v10 = vadd.f32 %v459_v9, %v380_v8  ;;  %v222_v11 = vpop.f32.mrf.mxu0 }
 0x109   :  { %v223_v12 = vadd.f32 %v942_v0, %v222_v11 }
 0x10a   :  { %v498_v13 = vmax.f32 %v460_v10, 0.0  ;;  %v302_v14 = vpop.f32.mrf.mxu1 }
 0x10b   :  { %v303_v15 = vadd.f32 %v302_v14, %v223_v12 }
 0x10c   :  { %520 = vst.msk [vmem:[%s1111_s3 + $0x60] sm:$0xff] %vm507_vm0, %v498_v13 }
 0x10d   :  { %v382_v16 = vpop.f32.mrf.mxu2 }
 0x10e   :  { %v383_v17 = vadd.f32 %v382_v16, %v303_v15  ;;  %v462_v18 = vpop.f32.mrf.mxu3 }
 0x110   :  { %v463_v19 = vadd.f32 %v462_v18, %v383_v17  ;;  %v225_v20 = vpop.f32.mrf.mxu0 }
 0x111   :  { %v226_v21 = vadd.f32 %v942_v0, %v225_v20 }
 0x112   :  { %v499_v22 = vmax.f32 %v463_v19, 0.0  ;;  %v305_v23 = vpop.f32.mrf.mxu1 }
 0x113   :  { %v306_v24 = vadd.f32 %v305_v23, %v226_v21 }
 0x114   :  { %521 = vst.msk [vmem:[%s1111_s3 + $0x68] sm:$0xff] %vm507_vm0, %v499_v22 }
 0x115   :  { %v385_v25 = vpop.f32.mrf.mxu2 }
 0x116   :  { %v386_v26 = vadd.f32 %v385_v25, %v306_v24  ;;  %v465_v27 = vpop.f32.mrf.mxu3 }
 0x118   :  { %v466_v28 = vadd.f32 %v465_v27, %v386_v26  ;;  %v228_v29 = vpop.f32.mrf.mxu0 }
 0x119   :  { %v229_v30 = vadd.f32 %v942_v0, %v228_v29 }
 0x11a   :  { %v500_v31 = vmax.f32 %v466_v28, 0.0  ;;  %v308_v32 = vpop.f32.mrf.mxu1 }
 0x11b   :  { %v309_v33 = vadd.f32 %v308_v32, %v229_v30 }
 0x11c   :  { %522 = vst.msk [vmem:[%s1111_s3 + $0x70] sm:$0xff] %vm507_vm0, %v500_v31 }
 0x11d   :  { %v388_v34 = vpop.f32.mrf.mxu2 }
 0x11e   :  { %v389_v35 = vadd.f32 %v388_v34, %v309_v33  ;;  %v468_v36 = vpop.f32.mrf.mxu3 }
 0x120   :  { %v469_v37 = vadd.f32 %v468_v36, %v389_v35  ;;  %v231_v38 = vpop.f32.mrf.mxu0 }
 0x121   :  { %v232_v39 = vadd.f32 %v942_v0, %v231_v38 }
 0x122   :  { %v501_v40 = vmax.f32 %v469_v37, 0.0  ;;  %v311_v41 = vpop.f32.mrf.mxu1 }
 0x123   :  { %v312_v42 = vadd.f32 %v311_v41, %v232_v39 }
 0x124   :  { %523 = vst.msk [vmem:[%s1111_s3 + $0x78] sm:$0xff] %vm507_vm0, %v501_v40 }
 0x125   :  { %v391_v43 = vpop.f32.mrf.mxu2 }
 0x126   :  { %v392_v44 = vadd.f32 %v391_v43, %v312_v42  ;;  %v471_v45 = vpop.f32.mrf.mxu3 }
 0x128   :  { %v472_v46 = vadd.f32 %v471_v45, %v392_v44  ;;  %v234_v47 = vpop.f32.mrf.mxu0 }
 0x129   :  { %v235_v48 = vadd.f32 %v942_v0, %v234_v47 }
 0x12a   :  { %v502_v49 = vmax.f32 %v472_v46, 0.0  ;;  %v314_v50 = vpop.f32.mrf.mxu1 }
 0x12b   :  { %v315_v51 = vadd.f32 %v314_v50, %v235_v48 }
 0x12c   :  { %524 = vst.msk [vmem:[%s1111_s3 + $0x80] sm:$0xff] %vm507_vm0, %v502_v49 }
 0x12d   :  { %v394_v52 = vpop.f32.mrf.mxu2 }
 0x12e   :  { %v395_v53 = vadd.f32 %v394_v52, %v315_v51  ;;  %v474_v54 = vpop.f32.mrf.mxu3 }
 0x130   :  { %v475_v55 = vadd.f32 %v474_v54, %v395_v53  ;;  %v237_v56 = vpop.f32.mrf.mxu0 }
 0x131   :  { %v238_v57 = vadd.f32 %v942_v0, %v237_v56 }
 0x132   :  { %v503_v58 = vmax.f32 %v475_v55, 0.0  ;;  %v317_v59 = vpop.f32.mrf.mxu1 }
 0x133   :  { %v318_v60 = vadd.f32 %v317_v59, %v238_v57 }
 0x134   :  { %525 = vst.msk [vmem:[%s1111_s3 + $0x88] sm:$0xff] %vm507_vm0, %v503_v58 }
 0x135   :  { %v397_v61 = vpop.f32.mrf.mxu2 }
 0x136   :  { %v398_v62 = vadd.f32 %v397_v61, %v318_v60  ;;  %v477_v63 = vpop.f32.mrf.mxu3 }
 0x138   :  { %v478_v1 = vadd.f32 %v477_v63, %v398_v62  ;;  %v240_v2 = vpop.f32.mrf.mxu0 }
 0x139   :  { %v241_v3 = vadd.f32 %v942_v0, %v240_v2 }
 0x13a   :  { %v504_v4 = vmax.f32 %v478_v1, 0.0  ;;  %v320_v5 = vpop.f32.mrf.mxu1 }
 0x13b   :  { %v321_v6 = vadd.f32 %v320_v5, %v241_v3 }
 0x13c   :  { %526 = vst.msk [vmem:[%s1111_s3 + $0x90] sm:$0xff] %vm507_vm0, %v504_v4 }
 0x13d   :  { %v400_v7 = vpop.f32.mrf.mxu2 }
 0x13e   :  { %v401_v8 = vadd.f32 %v400_v7, %v321_v6  ;;  %v480_v9 = vpop.f32.mrf.mxu3 }
 0x140   :  { %v481_v10 = vadd.f32 %v480_v9, %v401_v8  ;;  %v243_v11 = vpop.f32.mrf.mxu0 }
 0x141   :  { %v244_v12 = vadd.f32 %v942_v0, %v243_v11 }
 0x142   :  { %v505_v13 = vmax.f32 %v481_v10, 0.0  ;;  %v323_v14 = vpop.f32.mrf.mxu1 }
 0x143   :  { %v324_v15 = vadd.f32 %v323_v14, %v244_v12 }
 0x144   :  { %527 = vst.msk [vmem:[%s1111_s3 + $0x98] sm:$0xff] %vm507_vm0, %v505_v13 }
 0x145   :  { %v403_v16 = vpop.f32.mrf.mxu2 }
 0x146   :  { %v404_v17 = vadd.f32 %v403_v16, %v324_v15  ;;  %v483_v18 = vpop.f32.mrf.mxu3 }
 0x148   :  { %v484_v19 = vadd.f32 %v483_v18, %v404_v17 }
 0x14a   :  { %v506_v20 = vmax.f32 %v484_v19, 0.0 }
 0x14c   :  { %529 = vst.msk [vmem:[%s1111_s3 + $0xa0] sm:$0x3] %vm528_vm1, %v506_v20 }

// kernel: actor_critic_forward.5
= control target key start
LH: loop header
LB: loop body
LE: loop exit
PB: predicated region body
PF: predicated region fallthrough
CT: control target
= control target key end

     0   :  { %vm167_vm0 = vcmask 523264   ;;  %vm512_vm1 = vcmask 517120   ;;  %vm521_vm2 = vcmask 1041920   ;;  %s3599_s1 = inlined_call_operand.vmem [shape: f32[576,64], index: 1, kind: input, shape index: {}]   ;;  %s3600_s0 = inlined_call_operand.vmem [shape: f32[98,576], index: 0, kind: input, shape index: {}]   ;;  %s3601_s2 = inlined_call_operand.vmem [shape: f32[1,64], index: 2, kind: input, shape index: {}]   ;;  %s3602_s3 = inlined_call_operand.vmem [shape: f32[3136,128], index: 3, kind: input, shape index: {}]   ;;  %s3603_s4 = inlined_call_operand.vmem [shape: f32[1,128], index: 4, kind: input, shape index: {}]   ;;  %s3604_s6 = inlined_call_operand.vmem [shape: f32[1,128], index: 6, kind: input, shape index: {}]   ;;  %s3605_s5 = inlined_call_operand.vmem [shape: f32[128,128], index: 5, kind: input, shape index: {}]   ;;  %s3606_s7 = inlined_call_operand.vmem [shape: f32[2,128], index: 7, kind: output, shape index: {}]  }
   0x1   :  { %v106_v0 = vld [vmem:[%s3599_s1 + $0x78] sm:$0xff]  ;;  %v105_v2 = vld [vmem:[%s3599_s1 + $0x70] sm:$0xff]  ;;  %v104_v6 = vld [vmem:[%s3599_s1 + $0x68] sm:$0xff] }
   0x2   :  { %v138_v1 = vld [vmem:[%s3599_s1 + $0x178] sm:$0xff]  ;;  %207 = vmatpush.msra.mxu0 %v106_v0  ;;  %v137_v4 = vld [vmem:[%s3599_s1 + $0x170] sm:$0xff]  ;;  %v136_v8 = vld [vmem:[%s3599_s1 + $0x168] sm:$0xff] }
   0x3   :  { %319 = vmatpush.msra.mxu2 %v138_v1  ;;  %v122_v3 = vld [vmem:[%s3599_s1 + $0xf8] sm:$0xff]  ;;  %v121_v7 = vld [vmem:[%s3599_s1 + $0xf0] sm:$0xff]  ;;  %v120_v10 = vld [vmem:[%s3599_s1 + $0xe8] sm:$0xff] }
   0x4   :  { %v154_v5 = vld [vmem:[%s3599_s1 + $0x1f8] sm:$0xff]  ;;  %263 = vmatpush.msra.mxu1 %v122_v3  ;;  %208 = vmatpush.msra.mxu0 %v105_v2  ;;  %v153_v9 = vld [vmem:[%s3599_s1 + $0x1f0] sm:$0xff]  ;;  %v103_v11 = vld [vmem:[%s3599_s1 + $0x60] sm:$0xff] }
   0x5   :  { %375 = vmatpush.msra.mxu3 %v154_v5  ;;  %320 = vmatpush.msra.mxu2 %v137_v4  ;;  %v135_v12 = vld [vmem:[%s3599_s1 + $0x160] sm:$0xff]  ;;  %v152_v13 = vld [vmem:[%s3599_s1 + $0x1e8] sm:$0xff]  ;;  %v102_v16 = vld [vmem:[%s3599_s1 + $0x58] sm:$0xff] }
   0x6   :  { %264 = vmatpush.msra.mxu1 %v121_v7  ;;  %209 = vmatpush.msra.mxu0 %v104_v6  ;;  %v119_v14 = vld [vmem:[%s3599_s1 + $0xe0] sm:$0xff]  ;;  %v134_v17 = vld [vmem:[%s3599_s1 + $0x158] sm:$0xff]  ;;  %v101_v20 = vld [vmem:[%s3599_s1 + $0x50] sm:$0xff] }
   0x7   :  { %376 = vmatpush.msra.mxu3 %v153_v9  ;;  %321 = vmatpush.msra.mxu2 %v136_v8  ;;  %v151_v15 = vld [vmem:[%s3599_s1 + $0x1e0] sm:$0xff]  ;;  %v118_v18 = vld [vmem:[%s3599_s1 + $0xd8] sm:$0xff]  ;;  %v133_v21 = vld [vmem:[%s3599_s1 + $0x150] sm:$0xff] }
   0x8   :  { %265 = vmatpush.msra.mxu1 %v120_v10  ;;  %210 = vmatpush.msra.mxu0 %v103_v11  ;;  %v150_v19 = vld [vmem:[%s3599_s1 + $0x1d8] sm:$0xff]  ;;  %v117_v22 = vld [vmem:[%s3599_s1 + $0xd0] sm:$0xff]  ;;  %v100_v24 = vld [vmem:[%s3599_s1 + $0x48] sm:$0xff] }
   0x9   :  { %377 = vmatpush.msra.mxu3 %v152_v13  ;;  %322 = vmatpush.msra.mxu2 %v135_v12  ;;  %v149_v23 = vld [vmem:[%s3599_s1 + $0x1d0] sm:$0xff]  ;;  %v132_v25 = vld [vmem:[%s3599_s1 + $0x148] sm:$0xff]  ;;  %v99_v28 = vld [vmem:[%s3599_s1 + $0x40] sm:$0xff] }
   0xa   :  { %266 = vmatpush.msra.mxu1 %v119_v14  ;;  %211 = vmatpush.msra.mxu0 %v102_v16  ;;  %v116_v26 = vld [vmem:[%s3599_s1 + $0xc8] sm:$0xff]  ;;  %v131_v29 = vld [vmem:[%s3599_s1 + $0x140] sm:$0xff]  ;;  %v98_v32 = vld [vmem:[%s3599_s1 + $0x38] sm:$0xff] }
   0xb   :  { %378 = vmatpush.msra.mxu3 %v151_v15  ;;  %323 = vmatpush.msra.mxu2 %v134_v17  ;;  %v148_v27 = vld [vmem:[%s3599_s1 + $0x1c8] sm:$0xff]  ;;  %v115_v30 = vld [vmem:[%s3599_s1 + $0xc0] sm:$0xff]  ;;  %v130_v33 = vld [vmem:[%s3599_s1 + $0x138] sm:$0xff] }
   0xc   :  { %267 = vmatpush.msra.mxu1 %v118_v18  ;;  %212 = vmatpush.msra.mxu0 %v101_v20  ;;  %v147_v31 = vld [vmem:[%s3599_s1 + $0x1c0] sm:$0xff]  ;;  %v114_v34 = vld [vmem:[%s3599_s1 + $0xb8] sm:$0xff]  ;;  %v97_v36 = vld [vmem:[%s3599_s1 + $0x30] sm:$0xff] }
   0xd   :  { %379 = vmatpush.msra.mxu3 %v150_v19  ;;  %324 = vmatpush.msra.mxu2 %v133_v21  ;;  %v146_v35 = vld [vmem:[%s3599_s1 + $0x1b8] sm:$0xff]  ;;  %v129_v37 = vld [vmem:[%s3599_s1 + $0x130] sm:$0xff]  ;;  %v96_v40 = vld [vmem:[%s3599_s1 + $0x28] sm:$0xff] }
   0xe   :  { %268 = vmatpush.msra.mxu1 %v117_v22  ;;  %213 = vmatpush.msra.mxu0 %v100_v24  ;;  %v113_v38 = vld [vmem:[%s3599_s1 + $0xb0] sm:$0xff]  ;;  %v128_v41 = vld [vmem:[%s3599_s1 + $0x128] sm:$0xff]  ;;  %v95_v44 = vld [vmem:[%s3599_s1 + $0x20] sm:$0xff] }
   0xf   :  { %380 = vmatpush.msra.mxu3 %v149_v23  ;;  %325 = vmatpush.msra.mxu2 %v132_v25  ;;  %v145_v39 = vld [vmem:[%s3599_s1 + $0x1b0] sm:$0xff]  ;;  %v112_v42 = vld [vmem:[%s3599_s1 + $0xa8] sm:$0xff]  ;;  %v127_v45 = vld [vmem:[%s3599_s1 + $0x120] sm:$0xff] }
  0x10   :  { %269 = vmatpush.msra.mxu1 %v116_v26  ;;  %214 = vmatpush.msra.mxu0 %v99_v28  ;;  %v144_v43 = vld [vmem:[%s3599_s1 + $0x1a8] sm:$0xff]  ;;  %v111_v46 = vld [vmem:[%s3599_s1 + $0xa0] sm:$0xff]  ;;  %v94_v48 = vld [vmem:[%s3599_s1 + $0x18] sm:$0xff] }
  0x11   :  { %381 = vmatpush.msra.mxu3 %v148_v27  ;;  %326 = vmatpush.msra.mxu2 %v131_v29  ;;  %v143_v47 = vld [vmem:[%s3599_s1 + $0x1a0] sm:$0xff]  ;;  %v126_v49 = vld [vmem:[%s3599_s1 + $0x118] sm:$0xff]  ;;  %v93_v52 = vld [vmem:[%s3599_s1 + $0x10] sm:$0xff] }
  0x12   :  { %270 = vmatpush.msra.mxu1 %v115_v30  ;;  %215 = vmatpush.msra.mxu0 %v98_v32  ;;  %v110_v50 = vld [vmem:[%s3599_s1 + $0x98] sm:$0xff]  ;;  %v125_v53 = vld [vmem:[%s3599_s1 + $0x110] sm:$0xff]  ;;  %v92_v56 = vld [vmem:[%s3599_s1 + $0x8] sm:$0xff] }
  0x13   :  { %382 = vmatpush.msra.mxu3 %v147_v31  ;;  %327 = vmatpush.msra.mxu2 %v130_v33  ;;  %v142_v51 = vld [vmem:[%s3599_s1 + $0x198] sm:$0xff]  ;;  %v109_v54 = vld [vmem:[%s3599_s1 + $0x90] sm:$0xff]  ;;  %v124_v57 = vld [vmem:[%s3599_s1 + $0x108] sm:$0xff] }
  0x14   :  { %271 = vmatpush.msra.mxu1 %v114_v34  ;;  %216 = vmatpush.msra.mxu0 %v97_v36  ;;  %v141_v55 = vld [vmem:[%s3599_s1 + $0x190] sm:$0xff]  ;;  %v108_v58 = vld [vmem:[%s3599_s1 + $0x88] sm:$0xff]  ;;  %v91_v60 = vld [vmem:[%s3599_s1] sm:$0xff] }
  0x15   :  { %383 = vmatpush.msra.mxu3 %v146_v35  ;;  %328 = vmatpush.msra.mxu2 %v129_v37  ;;  %v140_v59 = vld [vmem:[%s3599_s1 + $0x188] sm:$0xff]  ;;  %v123_v61 = vld [vmem:[%s3599_s1 + $0x100] sm:$0xff]  ;;  %v28_v63 = vld [vmem:[%s3600_s0 + $0x10] sm:$0xff] }
  0x16   :  { %272 = vmatpush.msra.mxu1 %v113_v38  ;;  %217 = vmatpush.msra.mxu0 %v96_v40  ;;  %v26_v62 = vld [vmem:[%s3600_s0] sm:$0xff]  ;;  %v27_v2 = vld [vmem:[%s3600_s0 + $0x8] sm:$0xff]  ;;  %v29_v3 = vld [vmem:[%s3600_s0 + $0x18] sm:$0xff] }
  0x17   :  { %384 = vmatpush.msra.mxu3 %v145_v39  ;;  %329 = vmatpush.msra.mxu2 %v128_v41  ;;  %v107_v0 = vld [vmem:[%s3599_s1 + $0x80] sm:$0xff]  ;;  %v31_v4 = vld [vmem:[%s3600_s0 + $0x28] sm:$0xff]  ;;  %v33_v5 = vld [vmem:[%s3600_s0 + $0x38] sm:$0xff] }
  0x18   :  { %273 = vmatpush.msra.mxu1 %v112_v42  ;;  %218 = vmatpush.msra.mxu0 %v95_v44  ;;  %v139_v1 = vld [vmem:[%s3599_s1 + $0x180] sm:$0xff]  ;;  %v32_v6 = vld [vmem:[%s3600_s0 + $0x30] sm:$0xff]  ;;  %v37_v10 = vld [vmem:[%s3600_s0 + $0x58] sm:$0xff] }
  0x19   :  { %385 = vmatpush.msra.mxu3 %v144_v43  ;;  %330 = vmatpush.msra.mxu2 %v127_v45  ;;  %v34_v7 = vld [vmem:[%s3600_s0 + $0x40] sm:$0xff]  ;;  %v36_v8 = vld [vmem:[%s3600_s0 + $0x50] sm:$0xff]  ;;  %v39_v11 = vld [vmem:[%s3600_s0 + $0x68] sm:$0xff] }
  0x1a   :  { %274 = vmatpush.msra.mxu1 %v111_v46  ;;  %219 = vmatpush.msra.mxu0 %v94_v48  ;;  %v38_v9 = vld [vmem:[%s3600_s0 + $0x60] sm:$0xff]  ;;  %v41_v12 = vld [vmem:[%s3600_s0 + $0x78] sm:$0xff]  ;;  %v43_v13 = vld [vmem:[%s3600_s0 + $0x88] sm:$0xff] }
  0x1b   :  { %386 = vmatpush.msra.mxu3 %v143_v47  ;;  %331 = vmatpush.msra.mxu2 %v126_v49  ;;  %v42_v14 = vld [vmem:[%s3600_s0 + $0x80] sm:$0xff]  ;;  %v44_v15 = vld [vmem:[%s3600_s0 + $0x90] sm:$0xff]  ;;  %v47_v18 = vld [vmem:[%s3600_s0 + $0xa8] sm:$0xff] }
  0x1c   :  { %275 = vmatpush.msra.mxu1 %v110_v50  ;;  %220 = vmatpush.msra.mxu0 %v93_v52  ;;  %v46_v16 = vld [vmem:[%s3600_s0 + $0xa0] sm:$0xff]  ;;  %v48_v17 = vld [vmem:[%s3600_s0 + $0xb0] sm:$0xff]  ;;  %v49_v19 = vld [vmem:[%s3600_s0 + $0xb8] sm:$0xff] }
  0x1d   :  { %387 = vmatpush.msra.mxu3 %v142_v51  ;;  %332 = vmatpush.msra.mxu2 %v125_v53  ;;  %v162_v20 = vld [vmem:[%s3599_s1 + $0x238] sm:$0xff]  ;;  %v51_v21 = vld [vmem:[%s3600_s0 + $0xc8] sm:$0xff]  ;;  %v52_v23 = vld [vmem:[%s3600_s0 + $0xd0] sm:$0xff] }
  0x1e   :  { %276 = vmatpush.msra.mxu1 %v109_v54  ;;  %221 = vmatpush.msra.mxu0 %v92_v56  ;;  %v53_v22 = vld [vmem:[%s3600_s0 + $0xd8] sm:$0xff]  ;;  %v54_v24 = vld [vmem:[%s3600_s0 + $0xe0] sm:$0xff]  ;;  %v161_v25 = vld [vmem:[%s3599_s1 + $0x230] sm:$0xff] }
  0x1f   :  { %388 = vmatpush.msra.mxu3 %v141_v55  ;;  %333 = vmatpush.msra.mxu2 %v124_v57  ;;  %v56_v26 = vld [vmem:[%s3600_s0 + $0xf0] sm:$0xff]  ;;  %v58_v27 = vld [vmem:[%s3600_s0 + $0x100] sm:$0xff]  ;;  %v57_v28 = vld [vmem:[%s3600_s0 + $0xf8] sm:$0xff] }
  0x20   :  { %277 = vmatpush.msra.mxu1 %v108_v58  ;;  %222 = vmatpush.msra.mxu0 %v91_v60  ;;  %v59_v29 = vld [vmem:[%s3600_s0 + $0x108] sm:$0xff]  ;;  %v61_v30 = vld [vmem:[%s3600_s0 + $0x118] sm:$0xff]  ;;  %v62_v32 = vld [vmem:[%s3600_s0 + $0x120] sm:$0xff] }
  0x21   :  { %389 = vmatpush.msra.mxu3 %v140_v59  ;;  %334 = vmatpush.msra.mxu2 %v123_v61  ;;  %v63_v31 = vld [vmem:[%s3600_s0 + $0x128] sm:$0xff]  ;;  %v64_v33 = vld [vmem:[%s3600_s0 + $0x130] sm:$0xff]  ;;  %v159_v35 = vld [vmem:[%s3599_s1 + $0x220] sm:$0xff] }
  0x22   :  { %223 = vmatmul.f32.vlgmr.msra.gmra.mxu0 %v26_v62  ;;  %335 = vmatmul.f32.vlgmr.msra.gmra.mxu2 %v28_v63  ;;  %v160_v34 = vld [vmem:[%s3599_s1 + $0x228] sm:$0xff]  ;;  %v66_v36 = vld [vmem:[%s3600_s0 + $0x140] sm:$0xff]  ;;  %v68_v37 = vld [vmem:[%s3600_s0 + $0x150] sm:$0xff] }
  0x23   :  { %278 = vmatpush.msra.mxu1 %v107_v0  ;;  %390 = vmatpush.msra.mxu3 %v139_v1  ;;  %v67_v38 = vld [vmem:[%s3600_s0 + $0x148] sm:$0xff]  ;;  %v69_v39 = vld [vmem:[%s3600_s0 + $0x158] sm:$0xff]  ;;  %v157_v41 = vld [vmem:[%s3599_s1 + $0x210] sm:$0xff] }
  0x24   :  { %279 = vmatmul.f32.vlgmr.msra.gmra.mxu1 %v27_v2  ;;  %391 = vmatmul.f32.vlgmr.msra.gmra.mxu3 %v29_v3  ;;  %v158_v40 = vld [vmem:[%s3599_s1 + $0x218] sm:$0xff]  ;;  %v156_v42 = vld [vmem:[%s3599_s1 + $0x208] sm:$0xff]  ;;  %v155_v43 = vld [vmem:[%s3599_s1 + $0x200] sm:$0xff] }
  0x25   :  { %439 = vmatpush.msrb.mxu0 %v162_v20  ;;  %v71_v44 = vld [vmem:[%s3600_s0 + $0x168] sm:$0xff]  ;;  %v73_v45 = vld [vmem:[%s3600_s0 + $0x178] sm:$0xff]  ;;  %v72_v46 = vld [vmem:[%s3600_s0 + $0x170] sm:$0xff] }
  0x26   :  { %v74_v47 = vld [vmem:[%s3600_s0 + $0x180] sm:$0xff]  ;;  %v76_v48 = vld [vmem:[%s3600_s0 + $0x190] sm:$0xff]  ;;  %v77_v50 = vld [vmem:[%s3600_s0 + $0x198] sm:$0xff] }
  0x27   :  { %440 = vmatpush.msrb.mxu0 %v161_v25  ;;  %v78_v49 = vld [vmem:[%s3600_s0 + $0x1a0] sm:$0xff]  ;;  %v79_v51 = vld [vmem:[%s3600_s0 + $0x1a8] sm:$0xff]  ;;  %v81_v52 = vld [vmem:[%s3600_s0 + $0x1b8] sm:$0xff] }
  0x28   :  { %v83_v53 = vld [vmem:[%s3600_s0 + $0x1c8] sm:$0xff]  ;;  %v82_v54 = vld [vmem:[%s3600_s0 + $0x1c0] sm:$0xff]  ;;  %v84_v55 = vld [vmem:[%s3600_s0 + $0x1d0] sm:$0xff] }
  0x29   :  { %441 = vmatpush.msrb.mxu0 %v160_v34  ;;  %v86_v56 = vld [vmem:[%s3600_s0 + $0x1e0] sm:$0x3]  ;;  %v88_v57 = vld [vmem:[%s3600_s0 + $0x1f0] sm:$0x3]  ;;  %v87_v58 = vld [vmem:[%s3600_s0 + $0x1e8] sm:$0x3] }
  0x2a   :  { %226 = vmatmul.f32.gmra.mxu0 %v31_v4  ;;  %338 = vmatmul.f32.gmra.mxu2 %v33_v5  ;;  %v89_v59 = vld [vmem:[%s3600_s0 + $0x1f8] sm:$0x3]  ;;  %v30_v60 = vld [vmem:[%s3600_s0 + $0x20] sm:$0xff]  ;;  %v35_v61 = vld [vmem:[%s3600_s0 + $0x48] sm:$0xff] }
  0x2b   :  { %442 = vmatpush.msrb.mxu0 %v159_v35  ;;  %v40_v62 = vld [vmem:[%s3600_s0 + $0x70] sm:$0xff]  ;;  %v45_v0 = vld [vmem:[%s3600_s0 + $0x98] sm:$0xff]  ;;  %v50_v2 = vld [vmem:[%s3600_s0 + $0xc0] sm:$0xff] }
  0x2c   :  { %282 = vmatmul.f32.gmra.mxu1 %v32_v6  ;;  %394 = vmatmul.f32.gmra.mxu3 %v34_v7  ;;  %v55_v4 = vld [vmem:[%s3600_s0 + $0xe8] sm:$0xff]  ;;  %v60_v6 = vld [vmem:[%s3600_s0 + $0x110] sm:$0xff]  ;;  %v90_v20 = vld [vmem:[%s3600_s0 + $0x200] sm:$0x3] }
  0x2d   :  { %443 = vmatpush.msrb.mxu0 %v158_v40 }
  0x2f   :  { %444 = vmatpush.msrb.mxu0 %v157_v41 }
  0x31   :  { %445 = vmatpush.msrb.mxu0 %v156_v42 }
  0x32   :  { %229 = vmatmul.f32.gmra.mxu0 %v36_v8  ;;  %341 = vmatmul.f32.gmra.mxu2 %v38_v9  ;;  %v65_v8 = vld [vmem:[%s3600_s0 + $0x138] sm:$0xff] }
  0x33   :  { %446 = vmatpush.msrb.mxu0 %v155_v43 }
  0x34   :  { %285 = vmatmul.f32.gmra.mxu1 %v37_v10  ;;  %397 = vmatmul.f32.gmra.mxu3 %v39_v11  ;;  %v70_v10 = vld [vmem:[%s3600_s0 + $0x160] sm:$0xff] }
  0x3a   :  { %232 = vmatmul.f32.gmra.mxu0 %v41_v12  ;;  %344 = vmatmul.f32.gmra.mxu2 %v43_v13  ;;  %v75_v12 = vld [vmem:[%s3600_s0 + $0x188] sm:$0xff] }
  0x3c   :  { %288 = vmatmul.f32.gmra.mxu1 %v42_v14  ;;  %400 = vmatmul.f32.gmra.mxu3 %v44_v15  ;;  %v80_v14 = vld [vmem:[%s3600_s0 + $0x1b0] sm:$0xff] }
  0x42   :  { %235 = vmatmul.f32.gmra.mxu0 %v46_v16  ;;  %347 = vmatmul.f32.gmra.mxu2 %v48_v17  ;;  %v85_v16 = vld [vmem:[%s3600_s0 + $0x1d8] sm:$0xff]  ;;  %s1742_s0 = smov 64  }
  0x44   :  { %291 = vmatmul.f32.gmra.mxu1 %v47_v18  ;;  %403 = vmatmul.f32.gmra.mxu3 %v49_v19 }
  0x4a   :  { %238 = vmatmul.f32.gmra.mxu0 %v51_v21  ;;  %350 = vmatmul.f32.gmra.mxu2 %v53_v22 }
  0x4c   :  { %294 = vmatmul.f32.gmra.mxu1 %v52_v23  ;;  %406 = vmatmul.f32.gmra.mxu3 %v54_v24 }
  0x52   :  { %241 = vmatmul.f32.gmra.mxu0 %v56_v26  ;;  %353 = vmatmul.f32.gmra.mxu2 %v58_v27  ;;  %v2226_v27 = vld [vmem:[%s3601_s2] ss:$0 sm:$0xff] }
  0x54   :  { %297 = vmatmul.f32.gmra.mxu1 %v57_v28  ;;  %409 = vmatmul.f32.gmra.mxu3 %v59_v29 }
  0x5a   :  { %244 = vmatmul.f32.gmra.mxu0 %v61_v30  ;;  %356 = vmatmul.f32.gmra.mxu2 %v63_v31 }
  0x5c   :  { %300 = vmatmul.f32.gmra.mxu1 %v62_v32  ;;  %412 = vmatmul.f32.gmra.mxu3 %v64_v33 }
  0x62   :  { %247 = vmatmul.f32.gmra.mxu0 %v66_v36  ;;  %359 = vmatmul.f32.gmra.mxu2 %v68_v37 }
  0x64   :  { %303 = vmatmul.f32.gmra.mxu1 %v67_v38  ;;  %415 = vmatmul.f32.gmra.mxu3 %v69_v39 }
  0x6a   :  { %250 = vmatmul.f32.gmra.mxu0 %v71_v44  ;;  %362 = vmatmul.f32.gmra.mxu2 %v73_v45 }
  0x6c   :  { %306 = vmatmul.f32.gmra.mxu1 %v72_v46  ;;  %418 = vmatmul.f32.gmra.mxu3 %v74_v47 }
  0x72   :  { %253 = vmatmul.f32.gmra.mxu0 %v76_v48  ;;  %365 = vmatmul.f32.gmra.mxu2 %v78_v49 }
  0x74   :  { %309 = vmatmul.f32.gmra.mxu1 %v77_v50  ;;  %421 = vmatmul.f32.gmra.mxu3 %v79_v51 }
  0x7a   :  { %256 = vmatmul.f32.gmra.mxu0 %v81_v52  ;;  %368 = vmatmul.f32.gmra.mxu2 %v83_v53 }
  0x7c   :  { %312 = vmatmul.f32.gmra.mxu1 %v82_v54  ;;  %424 = vmatmul.f32.gmra.mxu3 %v84_v55 }
  0x82   :  { %259 = vmatmul.f32.gmra.mxu0 %v86_v56  ;;  %371 = vmatmul.f32.gmra.mxu2 %v88_v57 }
  0x84   :  { %315 = vmatmul.f32.gmra.mxu1 %v87_v58  ;;  %427 = vmatmul.f32.gmra.mxu3 %v89_v59 }
  0x8a   :  { %1724 = vmatmul.msk.f32.vlgmr.msrb.gmra.mxu0 %vm167_vm0, %v30_v60 }
  0x92   :  { %1725 = vmatmul.msk.f32.gmra.mxu0 %vm167_vm0, %v35_v61 }
  0x9a   :  { %1726 = vmatmul.msk.f32.gmra.mxu0 %vm167_vm0, %v40_v62 }
  0x9f   :  { %v224_v63 = vpop.f32.mrf.mxu0 }
  0xa0   :  { %v225_v30 = vadd.f32 %v2226_v27, %v224_v63 }
  0xa1   :  { %v280_v17 = vpop.f32.mrf.mxu1 }
  0xa2   :  { %1727 = vmatmul.msk.f32.gmra.mxu0 %vm167_vm0, %v45_v0  ;;  %v281_v33 = vadd.f32 %v280_v17, %v225_v30 }
  0xa5   :  { %v336_v18 = vpop.f32.mrf.mxu2 }
  0xa6   :  { %v337_v34 = vadd.f32 %v336_v18, %v281_v33 }
  0xa7   :  { %v227_v1 = vpop.f32.mrf.mxu0  ;;  %v392_v21 = vpop.f32.mrf.mxu3 }
  0xa8   :  { %v228_v36 = vadd.f32 %v2226_v27, %v227_v1  ;;  %v393_v38 = vadd.f32 %v392_v21, %v337_v34 }
  0xa9   :  { %v283_v22 = vpop.f32.mrf.mxu1 }
  0xaa   :  { %1728 = vmatmul.msk.f32.gmra.mxu0 %vm167_vm0, %v50_v2  ;;  %v284_v40 = vadd.f32 %v283_v22, %v228_v36 }
  0xad   :  { %v339_v24 = vpop.f32.mrf.mxu2 }
  0xae   :  { %v340_v43 = vadd.f32 %v339_v24, %v284_v40 }
  0xaf   :  { %v230_v3 = vpop.f32.mrf.mxu0  ;;  %v395_v25 = vpop.f32.mrf.mxu3 }
  0xb0   :  { %v231_v45 = vadd.f32 %v2226_v27, %v230_v3  ;;  %v396_v47 = vadd.f32 %v395_v25, %v340_v43 }
  0xb1   :  { %v286_v28 = vpop.f32.mrf.mxu1 }
  0xb2   :  { %1729 = vmatmul.msk.f32.gmra.mxu0 %vm167_vm0, %v55_v4  ;;  %v287_v50 = vadd.f32 %v286_v28, %v231_v45 }
  0xb5   :  { %v342_v29 = vpop.f32.mrf.mxu2 }
  0xb6   :  { %v343_v52 = vadd.f32 %v342_v29, %v287_v50 }
  0xb7   :  { %v233_v5 = vpop.f32.mrf.mxu0  ;;  %v398_v31 = vpop.f32.mrf.mxu3 }
  0xb8   :  { %v234_v57 = vadd.f32 %v2226_v27, %v233_v5  ;;  %v399_v59 = vadd.f32 %v398_v31, %v343_v52 }
  0xb9   :  { %v289_v35 = vpop.f32.mrf.mxu1 }
  0xba   :  { %1730 = vmatmul.msk.f32.gmra.mxu0 %vm167_vm0, %v60_v6  ;;  %v290_v62 = vadd.f32 %v289_v35, %v234_v57 }
  0xbd   :  { %v345_v37 = vpop.f32.mrf.mxu2 }
  0xbe   :  { %v346_v1 = vadd.f32 %v345_v37, %v290_v62 }
  0xbf   :  { %v2183_v7 = vpop.f32.mrf.mxu0  ;;  %v401_v42 = vpop.f32.mrf.mxu3 }
  0xc0   :  { %v237_v6 = vadd.f32 %v2226_v27, %v2183_v7 }
  0xc1   :  { %v292_v46 = vpop.f32.mrf.mxu1 }
  0xc2   :  { %1731 = vmatmul.msk.f32.gmra.mxu0 %vm167_vm0, %v65_v8 }
  0xc5   :  { %v348_v48 = vpop.f32.mrf.mxu2 }
  0xc7   :  { %v2189_v9 = vpop.f32.mrf.mxu0  ;;  %v404_v54 = vpop.f32.mrf.mxu3 }
  0xc8   :  { %v240_v28 = vadd.f32 %v2226_v27, %v2189_v9 }
  0xc9   :  { %v295_v60 = vpop.f32.mrf.mxu1 }
  0xca   :  { %1732 = vmatmul.msk.f32.gmra.mxu0 %vm167_vm0, %v70_v10  ;;  %v296_v34 = vadd.f32 %v295_v60, %v240_v28 }
  0xcd   :  { %v351_v0 = vpop.f32.mrf.mxu2 }
  0xce   :  { %v352_v36 = vadd.f32 %v351_v0, %v296_v34 }
  0xcf   :  { %v2195_v11 = vpop.f32.mrf.mxu0  ;;  %v407_v10 = vpop.f32.mrf.mxu3 }
  0xd0   :  { %v408_v45 = vadd.f32 %v407_v10, %v352_v36 }
  0xd1   :  { %v298_v18 = vpop.f32.mrf.mxu1 }
  0xd2   :  { %1733 = vmatmul.msk.f32.gmra.mxu0 %vm167_vm0, %v75_v12  ;;  %v402_v12 = vadd.f32 %v401_v42, %v346_v1  ;;  %v243_v42 = vadd.f32 %v2226_v27, %v2195_v11 }
  0xd5   :  { %v354_v7 = vpop.f32.mrf.mxu2 }
  0xd7   :  { %v2201_v13 = vpop.f32.mrf.mxu0  ;;  %v410_v31 = vpop.f32.mrf.mxu3 }
  0xd9   :  { %v301_v9 = vpop.f32.mrf.mxu1 }
  0xda   :  { %1734 = vmatmul.msk.f32.gmra.mxu0 %vm167_vm0, %v80_v14 }
  0xdf   :  { %v2207_v15 = vpop.f32.mrf.mxu0 }
  0xe2   :  { %1735 = vmatmul.msk.f32.gmra.mxu0 %vm167_vm0, %v85_v16  ;;  %v293_v16 = vadd.f32 %v292_v46, %v237_v6 }
  0xe7   :  { %v2213_v19 = vpop.f32.mrf.mxu0 }
  0xea   :  { %1736 = vmatmul.msk.f32.gmra.mxu0 %vm167_vm0, %v90_v20  ;;  %v349_v20 = vadd.f32 %v348_v48, %v293_v16 }
  0xec   :  { %v405_v30 = vadd.f32 %v404_v54, %v349_v20  ;;  %v246_v54 = vadd.f32 %v2226_v27, %v2201_v13 }
  0xee   :  { %v302_v60 = vadd.f32 %v301_v9, %v246_v54  ;;  %v730_v9 = vld [vmem:[%s3602_s3 + $0x70] sm:$0xff]  ;;  %v743_v54 = vld [vmem:[%s3602_s3 + $0xd8] sm:$0xff] }
  0xef   :  { %v2219_v23 = vpop.f32.mrf.mxu0 }
  0xf7   :  { %v2221_v26 = vpop.f32.mrf.mxu0 }
  0xff   :  { %v2229_v32 = vpop.f32.mrf.mxu0 }
 0x107   :  { %v448_v39 = vpop.f32.mrf.mxu0 }
 0x108   :  { %v449_v41 = vadd.f32 %v448_v39, %v393_v38 }
 0x10a   :  { %v487_v44 = vmax.f32 %v449_v41, 0.0 }
 0x10c   :  { %500 = vst.msk [vmem:[#allocation2] sm:$0xff] %vm167_vm0, %v487_v44  ;;  %v357_v44 = vpop.f32.mrf.mxu2 }
 0x10d   :  { %v358_v62 = vadd.f32 %v357_v44, %v302_v60  ;;  %v761_v44 = vld [vmem:[%s3602_s3 + $0x168] sm:$0xff] }
 0x10f   :  { %v451_v49 = vpop.f32.mrf.mxu0 }
 0x110   :  { %v452_v51 = vadd.f32 %v451_v49, %v396_v47  ;;  %v299_v47 = vadd.f32 %v298_v18, %v243_v42  ;;  %v413_v49 = vpop.f32.mrf.mxu3 }
 0x112   :  { %v488_v53 = vmax.f32 %v452_v51, 0.0  ;;  %v355_v11 = vadd.f32 %v354_v7, %v299_v47 }
 0x113   :  { %v516_v55 = vld [vmem:[#allocation2 + $0x2] sm:$0x3]  ;;  %v514_v56 = vld [vmem:[#allocation2] sm:$0x3]  ;;  %v523_v58 = vld [vmem:[#allocation2 + $0x4] sm:$0x3] }
 0x114   :  { %501 = vst.msk [vmem:[#allocation2 + $0x8] sm:$0xff] %vm167_vm0, %v488_v53  ;;  %518 = vrot.lane.b32.xlu0 %v516_v55, %s1742_s0  ;;  %v525_v4 = vld [vmem:[#allocation2 + $0x6] sm:$0x3]  ;;  %v411_v57 = vadd.f32 %v410_v31, %v355_v11  ;;  %v747_v31 = vld [vmem:[%s3602_s3 + $0xf8] sm:$0xff]  ;;  %v744_v11 = vld [vmem:[%s3602_s3 + $0xe0] sm:$0xff] }
 0x115   :  { %515 = vst.msk [vmem:[#allocation3] sm:$0x3] %vm512_vm1, %v514_v56  ;;  %v304_v56 = vpop.f32.mrf.mxu1  ;;  %1198 = vmatpush.msrb.mxu2 %v747_v31 }
 0x116   :  { %524 = vst.msk [vmem:[#allocation3 + $0x2] sm:$0x3] %vm512_vm1, %v523_v58  ;;  %v360_v58 = vpop.f32.mrf.mxu2 }
 0x117   :  { %v454_v61 = vpop.f32.mrf.mxu0 }
 0x118   :  { %v455_v63 = vadd.f32 %v454_v61, %v399_v59  ;;  %v416_v13 = vpop.f32.mrf.mxu3 }
 0x11a   :  { %v489_v2 = vmax.f32 %v455_v63, 0.0 }
 0x11b   :  { %v533_v3 = vld [vmem:[#allocation2 + $0xa] sm:$0x3]  ;;  %v531_v5 = vld [vmem:[#allocation2 + $0x8] sm:$0x3]  ;;  %v539_v8 = vld [vmem:[#allocation2 + $0xc] sm:$0x3] }
 0x11c   :  { %502 = vst.msk [vmem:[#allocation2 + $0x10] sm:$0xff] %vm167_vm0, %v489_v2  ;;  %535 = vrot.lane.b32.xlu1 %v533_v3, %s1742_s0  ;;  %527 = vrot.lane.b32.xlu0 %v525_v4, %s1742_s0  ;;  %v541_v24 = vld [vmem:[#allocation2 + $0xe] sm:$0x3]  ;;  %v249_v3 = vadd.f32 %v2226_v27, %v2207_v15 }
 0x11d   :  { %532 = vst.msk [vmem:[#allocation3 + $0x4] sm:$0x3] %vm512_vm1, %v531_v5  ;;  %v414_v5 = vadd.f32 %v413_v49, %v358_v62  ;;  %v307_v6 = vpop.f32.mrf.mxu1  ;;  %v728_v49 = vld [vmem:[%s3602_s3 + $0x60] sm:$0xff]  ;;  %v258_v62 = vadd.f32 %v2226_v27, %v2221_v26  ;;  %v725_v26 = vld [vmem:[%s3602_s3 + $0x48] sm:$0xff] }
 0x11e   :  { %540 = vst.msk [vmem:[#allocation3 + $0x6] sm:$0x3] %vm512_vm1, %v539_v8  ;;  %v305_v10 = vadd.f32 %v304_v56, %v249_v3 }
 0x11f   :  { %v457_v14 = vpop.f32.mrf.mxu0 }
 0x120   :  { %v458_v17 = vadd.f32 %v457_v14, %v402_v12  ;;  %v363_v14 = vpop.f32.mrf.mxu2  ;;  %v361_v16 = vadd.f32 %v360_v58, %v305_v10  ;;  %v740_v10 = vld [vmem:[%s3602_s3 + $0xc0] sm:$0xff] }
 0x122   :  { %v490_v21 = vmax.f32 %v458_v17, 0.0 }
 0x123   :  { %v549_v22 = vld [vmem:[#allocation2 + $0x12] sm:$0x3]  ;;  %v547_v25 = vld [vmem:[#allocation2 + $0x10] sm:$0x3]  ;;  %v555_v29 = vld [vmem:[#allocation2 + $0x14] sm:$0x3] }
 0x124   :  { %503 = vst.msk [vmem:[#allocation2 + $0x18] sm:$0xff] %vm167_vm0, %v490_v21  ;;  %551 = vrot.lane.b32.xlu2 %v549_v22, %s1742_s0  ;;  %543 = vrot.lane.b32.xlu1 %v541_v24, %s1742_s0  ;;  %v557_v38 = vld [vmem:[#allocation2 + $0x16] sm:$0x3]  ;;  %v252_v21 = vadd.f32 %v2226_v27, %v2213_v19  ;;  %v419_v22 = vpop.f32.mrf.mxu3  ;;  %v417_v24 = vadd.f32 %v416_v13, %v361_v16  ;;  %v758_v13 = vld [vmem:[%s3602_s3 + $0x150] sm:$0xff]  ;;  %v756_v16 = vld [vmem:[%s3602_s3 + $0x140] sm:$0xff] }
 0x125   :  { %548 = vst.msk [vmem:[#allocation3 + $0x8] sm:$0x3] %vm512_vm1, %v547_v25  ;;  %v731_v19 = vld [vmem:[%s3602_s3 + $0x78] sm:$0xff] }
 0x126   :  { %556 = vst.msk [vmem:[#allocation3 + $0xa] sm:$0x3] %vm512_vm1, %v555_v29  ;;  %v308_v28 = vadd.f32 %v307_v6, %v252_v21  ;;  %1178 = vmatpush.msrb.mxu1 %v731_v19  ;;  %v739_v21 = vld [vmem:[%s3602_s3 + $0xb8] sm:$0xff] }
 0x127   :  { %v460_v33 = vpop.f32.mrf.mxu0 }
 0x128   :  { %v461_v35 = vadd.f32 %v460_v33, %v405_v30  ;;  %v310_v30 = vpop.f32.mrf.mxu1  ;;  %v763_v33 = vld [vmem:[%s3602_s3 + $0x178] sm:$0xff]  ;;  %v364_v34 = vadd.f32 %v363_v14, %v308_v28  ;;  %v366_v36 = vpop.f32.mrf.mxu2  ;;  %1179 = vmatpush.msrb.mxu1 %v730_v9  ;;  %v261_v28 = vadd.f32 %v2226_v27, %v2229_v32 }
 0x129   :  { %1218 = vmatpush.msrb.mxu3 %v763_v33  ;;  %v737_v33 = vld [vmem:[%s3602_s3 + $0xa8] sm:$0xff] }
 0x12a   :  { %v491_v37 = vmax.f32 %v461_v35, 0.0 }
 0x12b   :  { %v573_v39 = vld [vmem:[#allocation2 + $0x1e] sm:$0x3]  ;;  %v565_v40 = vld [vmem:[#allocation2 + $0x1a] sm:$0x3]  ;;  %v571_v41 = vld [vmem:[#allocation2 + $0x1c] sm:$0x3] }
 0x12c   :  { %504 = vst.msk [vmem:[#allocation2 + $0x20] sm:$0xff] %vm167_vm0, %v491_v37  ;;  %559 = vrot.lane.b32.xlu2 %v557_v38, %s1742_s0  ;;  %575 = vrot.lane.b32.xlu1 %v573_v39, %s1742_s0  ;;  %v563_v43 = vld [vmem:[#allocation2 + $0x18] sm:$0x3]  ;;  %v255_v39 = vadd.f32 %v2226_v27, %v2219_v23  ;;  %v729_v23 = vld [vmem:[%s3602_s3 + $0x68] sm:$0xff]  ;;  %v422_v47 = vpop.f32.mrf.mxu3 }
 0x12d   :  { %567 = vrot.lane.b32.xlu0 %v565_v40, %s1742_s0  ;;  %572 = vst.msk [vmem:[#allocation3 + $0xe] sm:$0x3] %vm512_vm1, %v571_v41  ;;  %v746_v40 = vld [vmem:[%s3602_s3 + $0xf0] sm:$0xff]  ;;  %1180 = vmatpush.msrb.mxu1 %v729_v23  ;;  %v721_v27 = vld [vmem:[%s3602_s3 + $0x28] sm:$0xff] }
 0x12e   :  { %564 = vst.msk [vmem:[#allocation3 + $0xc] sm:$0x3] %vm512_vm1, %v563_v43  ;;  %v762_v41 = vld [vmem:[%s3602_s3 + $0x170] sm:$0xff]  ;;  %1199 = vmatpush.msrb.mxu2 %v746_v40  ;;  %v745_v43 = vld [vmem:[%s3602_s3 + $0xe8] sm:$0xff]  ;;  %v736_v40 = vld [vmem:[%s3602_s3 + $0xa0] sm:$0xff] }
 0x12f   :  { %v463_v46 = vpop.f32.mrf.mxu0  ;;  %1219 = vmatpush.msrb.mxu3 %v762_v41  ;;  %1181 = vmatpush.msrb.mxu1 %v728_v49  ;;  %v752_v41 = vld [vmem:[%s3602_s3 + $0x120] sm:$0xff] }
 0x130   :  { %v464_v48 = vadd.f32 %v463_v46, %v408_v45  ;;  %v420_v45 = vadd.f32 %v419_v22, %v364_v34  ;;  %1200 = vmatpush.msrb.mxu2 %v745_v43  ;;  %v313_v58 = vpop.f32.mrf.mxu1  ;;  %v753_v34 = vld [vmem:[%s3602_s3 + $0x128] sm:$0xff]  ;;  %v719_v43 = vld [vmem:[%s3602_s3 + $0x18] sm:$0xff] }
 0x131   :  { %1220 = vmatpush.msrb.mxu3 %v761_v44  ;;  %v735_v44 = vld [vmem:[%s3602_s3 + $0x98] sm:$0xff] }
 0x132   :  { %v492_v50 = vmax.f32 %v464_v48, 0.0  ;;  %1201 = vmatpush.msrb.mxu2 %v744_v11  ;;  %v718_v11 = vld [vmem:[%s3602_s3 + $0x10] sm:$0xff] }
 0x133   :  { %v581_v51 = vld [vmem:[#allocation2 + $0x22] sm:$0x3]  ;;  %v589_v52 = vld [vmem:[#allocation2 + $0x26] sm:$0x3]  ;;  %v579_v53 = vld [vmem:[#allocation2 + $0x20] sm:$0x3] }
 0x134   :  { %505 = vst.msk [vmem:[#allocation2 + $0x28] sm:$0xff] %vm167_vm0, %v492_v50  ;;  %583 = vrot.lane.b32.xlu2 %v581_v51, %s1742_s0  ;;  %v587_v55 = vld [vmem:[#allocation2 + $0x24] sm:$0x3]  ;;  %v760_v50 = vld [vmem:[%s3602_s3 + $0x160] sm:$0xff]  ;;  %v311_v51 = vadd.f32 %v310_v30, %v255_v39  ;;  %1202 = vmatpush.msrb.mxu2 %v743_v54  ;;  %v754_v30 = vld [vmem:[%s3602_s3 + $0x130] sm:$0xff] }
 0x135   :  { %591 = vrot.lane.b32.xlu0 %v589_v52, %s1742_s0  ;;  %580 = vst.msk [vmem:[#allocation3 + $0x10] sm:$0x3] %vm512_vm1, %v579_v53  ;;  %v727_v53 = vld [vmem:[%s3602_s3 + $0x58] sm:$0xff]  ;;  %1221 = vmatpush.msrb.mxu3 %v760_v50  ;;  %v734_v50 = vld [vmem:[%s3602_s3 + $0x90] sm:$0xff]  ;;  %v717_v54 = vld [vmem:[%s3602_s3 + $0x8] sm:$0xff] }
 0x136   :  { %588 = vst.msk [vmem:[#allocation3 + $0x12] sm:$0x3] %vm512_vm1, %v587_v55  ;;  %v367_v55 = vadd.f32 %v366_v36, %v311_v51  ;;  %1182 = vmatpush.msrb.mxu1 %v727_v53 }
 0x137   :  { %v466_v59 = vpop.f32.mrf.mxu0 }
 0x138   :  { %v467_v61 = vadd.f32 %v466_v59, %v411_v57  ;;  %v759_v57 = vld [vmem:[%s3602_s3 + $0x158] sm:$0xff]  ;;  %v423_v3 = vadd.f32 %v422_v47, %v367_v55  ;;  %v316_v31 = vpop.f32.mrf.mxu1  ;;  %v733_v55 = vld [vmem:[%s3602_s3 + $0x88] sm:$0xff] }
 0x139   :  { %1222 = vmatpush.msrb.mxu3 %v759_v57  ;;  %v317_v9 = vadd.f32 %v316_v31, %v261_v28  ;;  %v749_v57 = vld [vmem:[%s3602_s3 + $0x108] sm:$0xff]  ;;  %v806_v28 = vld [vmem:[%s3602_s3 + $0x2d0] sm:$0xff] }
 0x13a   :  { %v493_v63 = vmax.f32 %v467_v61, 0.0  ;;  %v726_v61 = vld [vmem:[%s3602_s3 + $0x50] sm:$0xff]  ;;  %v805_v31 = vld [vmem:[%s3602_s3 + $0x2c8] sm:$0xff] }
 0x13b   :  { %v605_v0 = vld [vmem:[#allocation2 + $0x2e] sm:$0x3]  ;;  %v597_v1 = vld [vmem:[#allocation2 + $0x2a] sm:$0x3]  ;;  %v603_v2 = vld [vmem:[#allocation2 + $0x2c] sm:$0x3]  ;;  %1183 = vmatpush.msrb.mxu1 %v726_v61  ;;  %1223 = vmatpush.msrb.mxu3 %v758_v13 }
 0x13c   :  { %506 = vst.msk [vmem:[#allocation2 + $0x30] sm:$0xff] %vm167_vm0, %v493_v63  ;;  %607 = vrot.lane.b32.xlu2 %v605_v0, %s1742_s0  ;;  %599 = vrot.lane.b32.xlu1 %v597_v1, %s1742_s0  ;;  %v595_v4 = vld [vmem:[#allocation2 + $0x28] sm:$0x3]  ;;  %v369_v1 = vpop.f32.mrf.mxu2  ;;  %v795_v13 = vld [vmem:[%s3602_s3 + $0x278] sm:$0xff] }
 0x13d   :  { %604 = vst.msk [vmem:[#allocation3 + $0x16] sm:$0x3] %vm512_vm1, %v603_v2  ;;  %v742_v63 = vld [vmem:[%s3602_s3 + $0xd0] sm:$0xff]  ;;  %v741_v2 = vld [vmem:[%s3602_s3 + $0xc8] sm:$0xff]  ;;  %1184 = vmatpush.msrb.mxu1 %v725_v26  ;;  %v811_v26 = vld [vmem:[%s3602_s3 + $0x2f8] sm:$0xff] }
 0x13e   :  { %596 = vst.msk [vmem:[#allocation3 + $0x14] sm:$0x3] %vm512_vm1, %v595_v4  ;;  %1203 = vmatpush.msrb.mxu2 %v742_v63  ;;  %v757_v4 = vld [vmem:[%s3602_s3 + $0x148] sm:$0xff]  ;;  %v779_v63 = vld [vmem:[%s3602_s3 + $0x1f8] sm:$0xff] }
 0x13f   :  { %v469_v8 = vpop.f32.mrf.mxu0  ;;  %1224 = vmatpush.msrb.mxu3 %v757_v4  ;;  %v794_v4 = vld [vmem:[%s3602_s3 + $0x270] sm:$0xff] }
 0x140   :  { %v470_v12 = vadd.f32 %v469_v8, %v414_v5  ;;  %v724_v8 = vld [vmem:[%s3602_s3 + $0x40] sm:$0xff]  ;;  %1204 = vmatpush.msrb.mxu2 %v741_v2  ;;  %v778_v2 = vld [vmem:[%s3602_s3 + $0x1f0] sm:$0xff] }
 0x141   :  { %1185 = vmatpush.msrb.mxu1 %v724_v8  ;;  %1225 = vmatpush.msrb.mxu3 %v756_v16  ;;  %v792_v16 = vld [vmem:[%s3602_s3 + $0x260] sm:$0xff] }
 0x142   :  { %v494_v17 = vmax.f32 %v470_v12, 0.0  ;;  %v314_v12 = vadd.f32 %v313_v58, %v258_v62  ;;  %1205 = vmatpush.msrb.mxu2 %v740_v10  ;;  %v748_v62 = vld [vmem:[%s3602_s3 + $0x100] sm:$0xff]  ;;  %v793_v10 = vld [vmem:[%s3602_s3 + $0x268] sm:$0xff] }
 0x143   :  { %v621_v15 = vld [vmem:[#allocation2 + $0x36] sm:$0x3]  ;;  %v613_v18 = vld [vmem:[#allocation2 + $0x32] sm:$0x3]  ;;  %v619_v20 = vld [vmem:[#allocation2 + $0x34] sm:$0x3] }
 0x144   :  { %507 = vst.msk [vmem:[#allocation2 + $0x38] sm:$0xff] %vm167_vm0, %v494_v17  ;;  %623 = vrot.lane.b32.xlu1 %v621_v15, %s1742_s0  ;;  %615 = vrot.lane.b32.xlu0 %v613_v18, %s1742_s0  ;;  %v611_v7 = vld [vmem:[#allocation2 + $0x30] sm:$0x3]  ;;  %v425_v17 = vpop.f32.mrf.mxu3  ;;  %v370_v18 = vadd.f32 %v369_v1, %v314_v12  ;;  %v372_v36 = vpop.f32.mrf.mxu2  ;;  %v809_v12 = vld [vmem:[%s3602_s3 + $0x2e8] sm:$0xff] }
 0x145   :  { %620 = vst.msk [vmem:[#allocation3 + $0x1a] sm:$0x3] %vm512_vm1, %v619_v20  ;;  %v723_v15 = vld [vmem:[%s3602_s3 + $0x38] sm:$0xff]  ;;  %1206 = vmatpush.msrb.mxu2 %v739_v21 }
 0x146   :  { %612 = vst.msk [vmem:[#allocation3 + $0x18] sm:$0x3] %vm512_vm1, %v611_v7  ;;  %v755_v7 = vld [vmem:[%s3602_s3 + $0x138] sm:$0xff]  ;;  %1186 = vmatpush.msrb.mxu1 %v723_v15  ;;  %v426_v32 = vadd.f32 %v425_v17, %v370_v18  ;;  %v808_v17 = vld [vmem:[%s3602_s3 + $0x2e0] sm:$0xff] }
 0x147   :  { %v472_v25 = vpop.f32.mrf.mxu0  ;;  %1226 = vmatpush.msrb.mxu3 %v755_v7  ;;  %v775_v15 = vld [vmem:[%s3602_s3 + $0x1d8] sm:$0xff] }
 0x148   :  { %v473_v29 = vadd.f32 %v472_v25, %v417_v24  ;;  %v722_v25 = vld [vmem:[%s3602_s3 + $0x30] sm:$0xff]  ;;  %v791_v18 = vld [vmem:[%s3602_s3 + $0x258] sm:$0xff] }
 0x149   :  { %1187 = vmatpush.msrb.mxu1 %v722_v25  ;;  %1227 = vmatpush.msrb.mxu3 %v754_v30  ;;  %v807_v21 = vld [vmem:[%s3602_s3 + $0x2d8] sm:$0xff]  ;;  %v790_v25 = vld [vmem:[%s3602_s3 + $0x250] sm:$0xff]  ;;  %v921_v30 = vld [vmem:[%s3602_s3 + $0x668] sm:$0xff] }
 0x14a   :  { %v495_v35 = vmax.f32 %v473_v29, 0.0  ;;  %v738_v29 = vld [vmem:[%s3602_s3 + $0xb0] sm:$0xff]  ;;  %v923_v7 = vld [vmem:[%s3602_s3 + $0x678] sm:$0xff] }
 0x14b   :  { %v629_v37 = vld [vmem:[#allocation2 + $0x3a] sm:$0x3]  ;;  %v637_v38 = vld [vmem:[#allocation2 + $0x3e] sm:$0x3]  ;;  %v627_v42 = vld [vmem:[#allocation2 + $0x38] sm:$0x3]  ;;  %1207 = vmatpush.msrb.mxu2 %v738_v29  ;;  %1188 = vmatpush.msrb.mxu1 %v721_v27 }
 0x14c   :  { %508 = vst.msk [vmem:[#allocation2 + $0x40] sm:$0xff] %vm167_vm0, %v495_v35  ;;  %631 = vrot.lane.b32.xlu2 %v629_v37, %s1742_s0  ;;  %639 = vrot.lane.b32.xlu0 %v637_v38, %s1742_s0  ;;  %v635_v46 = vld [vmem:[#allocation2 + $0x3c] sm:$0x3]  ;;  %v773_v29 = vld [vmem:[%s3602_s3 + $0x1c8] sm:$0xff] }
 0x14d   :  { %628 = vst.msk [vmem:[#allocation3 + $0x1c] sm:$0x3] %vm512_vm1, %v627_v42  ;;  %v720_v38 = vld [vmem:[%s3602_s3 + $0x20] sm:$0xff]  ;;  %1208 = vmatpush.msrb.mxu2 %v737_v33  ;;  %1228 = vmatpush.msrb.mxu3 %v753_v34  ;;  %v373_v42 = vadd.f32 %v372_v36, %v317_v9  ;;  %v771_v34 = vld [vmem:[%s3602_s3 + $0x1b8] sm:$0xff] }
 0x14e   :  { %636 = vst.msk [vmem:[#allocation3 + $0x1e] sm:$0x3] %vm512_vm1, %v635_v46  ;;  %1189 = vmatpush.msrb.mxu1 %v720_v38  ;;  %v428_v46 = vpop.f32.mrf.mxu3  ;;  %1418 = vmatpush.msra.mxu0 %v923_v7  ;;  %v772_v27 = vld [vmem:[%s3602_s3 + $0x1c0] sm:$0xff]  ;;  %v787_v36 = vld [vmem:[%s3602_s3 + $0x238] sm:$0xff]  ;;  %v770_v38 = vld [vmem:[%s3602_s3 + $0x1b0] sm:$0xff] }
 0x14f   :  { %v475_v48 = vpop.f32.mrf.mxu0  ;;  %1209 = vmatpush.msrb.mxu2 %v736_v40  ;;  %1229 = vmatpush.msrb.mxu3 %v752_v41  ;;  %v429_v53 = vadd.f32 %v428_v46, %v373_v42  ;;  %v804_v33 = vld [vmem:[%s3602_s3 + $0x2c0] sm:$0xff]  ;;  %v919_v9 = vld [vmem:[%s3602_s3 + $0x658] sm:$0xff]  ;;  %v802_v40 = vld [vmem:[%s3602_s3 + $0x2b0] sm:$0xff] }
 0x150   :  { %v476_v52 = vadd.f32 %v475_v48, %v420_v45  ;;  %v751_v45 = vld [vmem:[%s3602_s3 + $0x118] sm:$0xff]  ;;  %1190 = vmatpush.msrb.mxu1 %v719_v43  ;;  %v769_v42 = vld [vmem:[%s3602_s3 + $0x1a8] sm:$0xff] }
 0x151   :  { %1210 = vmatpush.msrb.mxu2 %v735_v44  ;;  %1230 = vmatpush.msrb.mxu3 %v751_v45  ;;  %v785_v43 = vld [vmem:[%s3602_s3 + $0x228] sm:$0xff]  ;;  %v768_v45 = vld [vmem:[%s3602_s3 + $0x1a0] sm:$0xff] }
 0x152   :  { %v496_v56 = vmax.f32 %v476_v52, 0.0  ;;  %v750_v52 = vld [vmem:[%s3602_s3 + $0x110] sm:$0xff]  ;;  %1191 = vmatpush.msrb.mxu1 %v718_v11  ;;  %v801_v44 = vld [vmem:[%s3602_s3 + $0x2a8] sm:$0xff]  ;;  %v916_v11 = vld [vmem:[%s3602_s3 + $0x640] sm:$0xff] }
 0x153   :  { %v653_v59 = vld [vmem:[#allocation2 + $0x46] sm:$0x3]  ;;  %v645_v60 = vld [vmem:[#allocation2 + $0x42] sm:$0x3]  ;;  %v651_v0 = vld [vmem:[#allocation2 + $0x44] sm:$0x3]  ;;  %1211 = vmatpush.msrb.mxu2 %v734_v50  ;;  %1231 = vmatpush.msrb.mxu3 %v750_v52 }
 0x154   :  { %509 = vst.msk [vmem:[#allocation2 + $0x48] sm:$0xff] %vm167_vm0, %v496_v56  ;;  %655 = vrot.lane.b32.xlu2 %v653_v59, %s1742_s0  ;;  %647 = vrot.lane.b32.xlu1 %v645_v60, %s1742_s0  ;;  %v643_v5 = vld [vmem:[#allocation2 + $0x40] sm:$0x3]  ;;  %v716_v59 = vld [vmem:[%s3602_s3] sm:$0xff]  ;;  %v783_v50 = vld [vmem:[%s3602_s3 + $0x218] sm:$0xff] }
 0x155   :  { %652 = vst.msk [vmem:[#allocation3 + $0x22] sm:$0x3] %vm512_vm1, %v651_v0  ;;  %v732_v60 = vld [vmem:[%s3602_s3 + $0x80] sm:$0xff]  ;;  %1192 = vmatpush.msrb.mxu1 %v717_v54  ;;  %1212 = vmatpush.msrb.mxu2 %v733_v55  ;;  %v917_v46 = vld [vmem:[%s3602_s3 + $0x648] sm:$0xff]  ;;  %v766_v52 = vld [vmem:[%s3602_s3 + $0x190] sm:$0xff] }
 0x156   :  { %644 = vst.msk [vmem:[#allocation3 + $0x20] sm:$0x3] %vm512_vm1, %v643_v5  ;;  %1232 = vmatpush.msrb.mxu3 %v749_v57  ;;  %v810_v5 = vld [vmem:[%s3602_s3 + $0x2f0] sm:$0xff] }
 0x157   :  { %v478_v6 = vpop.f32.mrf.mxu0  ;;  %1193 = vmatpush.msrb.mxu1 %v716_v59  ;;  %1213 = vmatpush.msrb.mxu2 %v732_v60  ;;  %v782_v54 = vld [vmem:[%s3602_s3 + $0x210] sm:$0xff]  ;;  %v781_v60 = vld [vmem:[%s3602_s3 + $0x208] sm:$0xff] }
 0x158   :  { %v479_v14 = vadd.f32 %v478_v6, %v423_v3  ;;  %1233 = vmatpush.msrb.mxu3 %v748_v62  ;;  %v777_v6 = vld [vmem:[%s3602_s3 + $0x1e8] sm:$0xff]  ;;  %v798_v55 = vld [vmem:[%s3602_s3 + $0x290] sm:$0xff]  ;;  %v764_v62 = vld [vmem:[%s3602_s3 + $0x180] sm:$0xff] }
 0x159   :  { %1238 = vmatpush.msra.mxu1 %v779_v63  ;;  %1258 = vmatpush.msra.mxu2 %v795_v13  ;;  %v914_v59 = vld [vmem:[%s3602_s3 + $0x630] sm:$0xff]  ;;  %v913_v63 = vld [vmem:[%s3602_s3 + $0x628] sm:$0xff]  ;;  %v780_v13 = vld [vmem:[%s3602_s3 + $0x200] sm:$0xff] }
 0x15a   :  { %v497_v20 = vmax.f32 %v479_v14, 0.0  ;;  %1278 = vmatpush.msra.mxu3 %v811_v26  ;;  %v776_v14 = vld [vmem:[%s3602_s3 + $0x1e0] sm:$0xff]  ;;  %v911_v26 = vld [vmem:[%s3602_s3 + $0x618] sm:$0xff] }
 0x15b   :  { %v669_v22 = vld [vmem:[#allocation2 + $0x4e] sm:$0x3]  ;;  %v661_v24 = vld [vmem:[#allocation2 + $0x4a] sm:$0x3]  ;;  %v667_v19 = vld [vmem:[#allocation2 + $0x4c] sm:$0x3]  ;;  %1239 = vmatpush.msra.mxu1 %v778_v2  ;;  %1259 = vmatpush.msra.mxu2 %v794_v4 }
 0x15c   :  { %510 = vst.msk [vmem:[#allocation2 + $0x50] sm:$0xff] %vm167_vm0, %v497_v20  ;;  %671 = vrot.lane.b32.xlu1 %v669_v22, %s1742_s0  ;;  %663 = vrot.lane.b32.xlu0 %v661_v24, %s1742_s0  ;;  %v659_v35 = vld [vmem:[#allocation2 + $0x48] sm:$0x3] }
 0x15d   :  { %668 = vst.msk [vmem:[#allocation3 + $0x26] sm:$0x3] %vm512_vm1, %v667_v19  ;;  %1279 = vmatpush.msra.mxu3 %v810_v5  ;;  %1240 = vmatpush.msra.mxu1 %v777_v6  ;;  %v774_v22 = vld [vmem:[%s3602_s3 + $0x1d0] sm:$0xff]  ;;  %v789_v19 = vld [vmem:[%s3602_s3 + $0x248] sm:$0xff] }
 0x15e   :  { %660 = vst.msk [vmem:[#allocation3 + $0x24] sm:$0x3] %vm512_vm1, %v659_v35  ;;  %1260 = vmatpush.msra.mxu2 %v793_v10  ;;  %v922_v24 = vld [vmem:[%s3602_s3 + $0x670] sm:$0xff]  ;;  %v920_v35 = vld [vmem:[%s3602_s3 + $0x660] sm:$0xff]  ;;  %v909_v6 = vld [vmem:[%s3602_s3 + $0x608] sm:$0xff] }
 0x15f   :  { %v481_v37 = vpop.f32.mrf.mxu0  ;;  %1280 = vmatpush.msra.mxu3 %v809_v12  ;;  %1241 = vmatpush.msra.mxu1 %v776_v14  ;;  %v910_v5 = vld [vmem:[%s3602_s3 + $0x610] sm:$0xff]  ;;  %v987_v10 = vld [vmem:[%s3602_s3 + $0x878] sm:$0xff] }
 0x160   :  { %v482_v39 = vadd.f32 %v481_v37, %v426_v32  ;;  %1261 = vmatpush.msra.mxu2 %v792_v16  ;;  %1419 = vmatpush.msra.mxu0 %v922_v24  ;;  %v788_v32 = vld [vmem:[%s3602_s3 + $0x240] sm:$0xff]  ;;  %v803_v37 = vld [vmem:[%s3602_s3 + $0x2b8] sm:$0xff]  ;;  %v986_v16 = vld [vmem:[%s3602_s3 + $0x870] sm:$0xff] }
 0x161   :  { %1281 = vmatpush.msra.mxu3 %v808_v17  ;;  %1242 = vmatpush.msra.mxu1 %v775_v15  ;;  %v985_v17 = vld [vmem:[%s3602_s3 + $0x868] sm:$0xff]  ;;  %v984_v15 = vld [vmem:[%s3602_s3 + $0x860] sm:$0xff] }
 0x162   :  { %v498_v23 = vmax.f32 %v482_v39, 0.0  ;;  %1262 = vmatpush.msra.mxu2 %v791_v18  ;;  %1420 = vmatpush.msra.mxu0 %v921_v30  ;;  %v786_v39 = vld [vmem:[%s3602_s3 + $0x230] sm:$0xff]  ;;  %v983_v18 = vld [vmem:[%s3602_s3 + $0x858] sm:$0xff]  ;;  %v981_v24 = vld [vmem:[%s3602_s3 + $0x848] sm:$0xff] }
 0x163   :  { %v677_v47 = vld [vmem:[#allocation2 + $0x52] sm:$0x3]  ;;  %v685_v48 = vld [vmem:[#allocation2 + $0x56] sm:$0x3]  ;;  %v675_v49 = vld [vmem:[#allocation2 + $0x50] sm:$0x3]  ;;  %1282 = vmatpush.msra.mxu3 %v807_v21  ;;  %1243 = vmatpush.msra.mxu1 %v774_v22 }
 0x164   :  { %511 = vst.msk [vmem:[#allocation2 + $0x58] sm:$0xff] %vm167_vm0, %v498_v23  ;;  %679 = vrot.lane.b32.xlu2 %v677_v47, %s1742_s0  ;;  %687 = vrot.lane.b32.xlu0 %v685_v48, %s1742_s0  ;;  %v683_v51 = vld [vmem:[#allocation2 + $0x54] sm:$0x3]  ;;  %v918_v23 = vld [vmem:[%s3602_s3 + $0x650] sm:$0xff]  ;;  %v784_v47 = vld [vmem:[%s3602_s3 + $0x220] sm:$0xff] }
 0x165   :  { %676 = vst.msk [vmem:[#allocation3 + $0x28] sm:$0x3] %vm512_vm1, %v675_v49  ;;  %1263 = vmatpush.msra.mxu2 %v790_v25  ;;  %1283 = vmatpush.msra.mxu3 %v806_v28  ;;  %v800_v48 = vld [vmem:[%s3602_s3 + $0x2a0] sm:$0xff]  ;;  %v767_v49 = vld [vmem:[%s3602_s3 + $0x198] sm:$0xff]  ;;  %v982_v22 = vld [vmem:[%s3602_s3 + $0x850] sm:$0xff] }
 0x166   :  { %684 = vst.msk [vmem:[#allocation3 + $0x2a] sm:$0x3] %vm512_vm1, %v683_v51  ;;  %1244 = vmatpush.msra.mxu1 %v773_v29  ;;  %1421 = vmatpush.msra.mxu0 %v920_v35  ;;  %v799_v51 = vld [vmem:[%s3602_s3 + $0x298] sm:$0xff]  ;;  %v980_v25 = vld [vmem:[%s3602_s3 + $0x840] sm:$0xff] }
 0x167   :  { %v484_v56 = vpop.f32.mrf.mxu0  ;;  %1264 = vmatpush.msra.mxu2 %v789_v19  ;;  %1284 = vmatpush.msra.mxu3 %v805_v31  ;;  %v979_v28 = vld [vmem:[%s3602_s3 + $0x838] sm:$0xff] }
 0x168   :  { %v485_v58 = vadd.f32 %v484_v56, %v429_v53  ;;  %1245 = vmatpush.msra.mxu1 %v772_v27  ;;  %1422 = vmatpush.msra.mxu0 %v919_v9  ;;  %v915_v53 = vld [vmem:[%s3602_s3 + $0x638] sm:$0xff]  ;;  %v978_v27 = vld [vmem:[%s3602_s3 + $0x830] sm:$0xff] }
 0x169   :  { %1265 = vmatpush.msra.mxu2 %v788_v32  ;;  %1285 = vmatpush.msra.mxu3 %v804_v33  ;;  %v827_v29 = vld [vmem:[%s3602_s3 + $0x378] sm:$0xff]  ;;  %v858_v9 = vld [vmem:[%s3602_s3 + $0x470] sm:$0xff] }
 0x16a   :  { %v499_v61 = vmax.f32 %v485_v58, 0.0  ;;  %1246 = vmatpush.msra.mxu1 %v771_v34  ;;  %1423 = vmatpush.msra.mxu0 %v918_v23  ;;  %v765_v58 = vld [vmem:[%s3602_s3 + $0x188] sm:$0xff]  ;;  %v843_v19 = vld [vmem:[%s3602_s3 + $0x3f8] sm:$0xff]  ;;  %v826_v34 = vld [vmem:[%s3602_s3 + $0x370] sm:$0xff] }
 0x16b   :  { %v701_v0 = vld [vmem:[#allocation2 + $0x5e] sm:$0x3]  ;;  %v693_v1 = vld [vmem:[#allocation2 + $0x5a] sm:$0x3]  ;;  %v699_v3 = vld [vmem:[#allocation2 + $0x5c] sm:$0x3]  ;;  %1266 = vmatpush.msra.mxu2 %v787_v36  ;;  %1286 = vmatpush.msra.mxu3 %v803_v37 }
 0x16c   :  { %513 = vst.msk [vmem:[#allocation2 + $0x60] sm:$0x3] %vm512_vm1, %v499_v61  ;;  %703 = vrot.lane.b32.xlu2 %v701_v0, %s1742_s0  ;;  %695 = vrot.lane.b32.xlu1 %v693_v1, %s1742_s0  ;;  %v691_v8 = vld [vmem:[#allocation2 + $0x58] sm:$0x3]  ;;  %v797_v61 = vld [vmem:[%s3602_s3 + $0x288] sm:$0xff]  ;;  %v859_v31 = vld [vmem:[%s3602_s3 + $0x478] sm:$0xff] }
 0x16d   :  { %700 = vst.msk [vmem:[#allocation3 + $0x2e] sm:$0x3] %vm512_vm1, %v699_v3  ;;  %1247 = vmatpush.msra.mxu1 %v770_v38  ;;  %1267 = vmatpush.msra.mxu2 %v786_v39  ;;  %v796_v0 = vld [vmem:[%s3602_s3 + $0x280] sm:$0xff]  ;;  %v842_v38 = vld [vmem:[%s3602_s3 + $0x3f0] sm:$0xff]  ;;  %v825_v39 = vld [vmem:[%s3602_s3 + $0x368] sm:$0xff] }
 0x16e   :  { %692 = vst.msk [vmem:[#allocation3 + $0x2c] sm:$0x3] %vm512_vm1, %v691_v8  ;;  %1287 = vmatpush.msra.mxu3 %v802_v40  ;;  %1424 = vmatpush.msra.mxu0 %v917_v46  ;;  %v912_v1 = vld [vmem:[%s3602_s3 + $0x620] sm:$0xff]  ;;  %v977_v40 = vld [vmem:[%s3602_s3 + $0x828] sm:$0xff] }
 0x16f   :  { %1248 = vmatpush.msra.mxu1 %v769_v42  ;;  %1268 = vmatpush.msra.mxu2 %v785_v43  ;;  %v908_v8 = vld [vmem:[%s3602_s3 + $0x600] sm:$0xff]  ;;  %v857_v42 = vld [vmem:[%s3602_s3 + $0x468] sm:$0xff] }
 0x170   :  { %1288 = vmatpush.msra.mxu3 %v801_v44  ;;  %1425 = vmatpush.msra.mxu0 %v916_v11  ;;  %v824_v23 = vld [vmem:[%s3602_s3 + $0x360] sm:$0xff]  ;;  %v839_v11 = vld [vmem:[%s3602_s3 + $0x3d8] sm:$0xff] }
 0x171   :  { %1249 = vmatpush.msra.mxu1 %v768_v45  ;;  %1269 = vmatpush.msra.mxu2 %v784_v47  ;;  %v976_v43 = vld [vmem:[%s3602_s3 + $0x820] sm:$0xff] }
 0x172   :  { %1289 = vmatpush.msra.mxu3 %v800_v48  ;;  %1426 = vmatpush.msra.mxu0 %v915_v53  ;;  %v840_v44 = vld [vmem:[%s3602_s3 + $0x3e0] sm:$0xff]  ;;  %v823_v48 = vld [vmem:[%s3602_s3 + $0x358] sm:$0xff]  ;;  %v822_v53 = vld [vmem:[%s3602_s3 + $0x350] sm:$0xff] }
 0x173   :  { %v707_v20 = vld [vmem:[#allocation2 + $0x60] sm:$0x3]  ;;  %1250 = vmatpush.msra.mxu1 %v767_v49  ;;  %1270 = vmatpush.msra.mxu2 %v783_v50  ;;  %v856_v45 = vld [vmem:[%s3602_s3 + $0x460] sm:$0xff] }
 0x174   :  { %708 = vst.msk [vmem:[#allocation3 + $0x30] sm:$0x3] %vm512_vm1, %v707_v20  ;;  %1290 = vmatpush.msra.mxu3 %v799_v51  ;;  %1427 = vmatpush.msra.mxu0 %v914_v59  ;;  %v855_v51 = vld [vmem:[%s3602_s3 + $0x458] sm:$0xff]  ;;  %v837_v59 = vld [vmem:[%s3602_s3 + $0x3c8] sm:$0xff] }
 0x175   :  { %1251 = vmatpush.msra.mxu1 %v766_v52  ;;  %1271 = vmatpush.msra.mxu2 %v782_v54  ;;  %v975_v54 = vld [vmem:[%s3602_s3 + $0x818] sm:$0xff] }
 0x176   :  { %1291 = vmatpush.msra.mxu3 %v798_v55  ;;  %1428 = vmatpush.msra.mxu0 %v913_v63  ;;  %v838_v55 = vld [vmem:[%s3602_s3 + $0x3d0] sm:$0xff]  ;;  %v836_v63 = vld [vmem:[%s3602_s3 + $0x3c0] sm:$0xff] }
 0x177   :  { %1252 = vmatpush.msra.mxu1 %v765_v58  ;;  %1272 = vmatpush.msra.mxu2 %v781_v60  ;;  %v974_v58 = vld [vmem:[%s3602_s3 + $0x810] sm:$0xff]  ;;  %v853_v60 = vld [vmem:[%s3602_s3 + $0x448] sm:$0xff] }
 0x178   :  { %1292 = vmatpush.msra.mxu3 %v797_v61  ;;  %1429 = vmatpush.msra.mxu0 %v912_v1  ;;  %v820_v61 = vld [vmem:[%s3602_s3 + $0x340] sm:$0xff] }
 0x179   :  { %1253 = vmatpush.msra.mxu1 %v764_v62  ;;  %1273 = vmatpush.msra.mxu2 %v780_v13  ;;  %v973_v62 = vld [vmem:[%s3602_s3 + $0x808] sm:$0xff]  ;;  %v852_v13 = vld [vmem:[%s3602_s3 + $0x440] sm:$0xff] }
 0x17a   :  { %1293 = vmatpush.msra.mxu3 %v796_v0  ;;  %1430 = vmatpush.msra.mxu0 %v911_v26 }
 0x17c   :  { %1431 = vmatpush.msra.mxu0 %v910_v5  ;;  %v851_v5 = vld [vmem:[%s3602_s3 + $0x438] sm:$0xff] }
 0x17e   :  { %v552_v41 = vpop.permute.xlu2 %551  ;;  %1432 = vmatpush.msra.mxu0 %v909_v6  ;;  %v818_v6 = vld [vmem:[%s3602_s3 + $0x330] sm:$0xff] }
 0x17f   :  { %554 = vst.msk [vmem:[#allocation3 + $0x8] sm:$0x3] %vm521_vm2, %v552_v41  ;;  %v841_v41 = vld [vmem:[%s3602_s3 + $0x3e8] sm:$0xff] }
 0x180   :  { %1433 = vmatpush.msra.mxu0 %v908_v8  ;;  %v834_v8 = vld [vmem:[%s3602_s3 + $0x3b0] sm:$0xff] }
 0x182   :  { %1498 = vmatpush.msrb.mxu0 %v987_v10  ;;  %v850_v10 = vld [vmem:[%s3602_s3 + $0x430] sm:$0xff] }
 0x184   :  { %1499 = vmatpush.msrb.mxu0 %v986_v16  ;;  %v849_v16 = vld [vmem:[%s3602_s3 + $0x428] sm:$0xff] }
 0x186   :  { %v560_v56 = vpop.permute.xlu2 %559  ;;  %v519_v57 = vpop.permute.xlu0 %518  ;;  %1500 = vmatpush.msrb.mxu0 %v985_v17  ;;  %v816_v17 = vld [vmem:[%s3602_s3 + $0x320] sm:$0xff] }
 0x187   :  { %562 = vst.msk [vmem:[#allocation3 + $0xa] sm:$0x3] %vm521_vm2, %v560_v56  ;;  %v854_v56 = vld [vmem:[%s3602_s3 + $0x450] sm:$0xff] }
 0x188   :  { %522 = vst.msk [vmem:[#allocation3] sm:$0x3] %vm521_vm2, %v519_v57  ;;  %1501 = vmatpush.msrb.mxu0 %v984_v15  ;;  %v821_v57 = vld [vmem:[%s3602_s3 + $0x348] sm:$0xff]  ;;  %v832_v15 = vld [vmem:[%s3602_s3 + $0x3a0] sm:$0xff] }
 0x18a   :  { %1502 = vmatpush.msrb.mxu0 %v983_v18  ;;  %v848_v18 = vld [vmem:[%s3602_s3 + $0x420] sm:$0xff] }
 0x18c   :  { %1503 = vmatpush.msrb.mxu0 %v982_v22  ;;  %v831_v22 = vld [vmem:[%s3602_s3 + $0x398] sm:$0xff] }
 0x18e   :  { %v584_v2 = vpop.permute.xlu2 %583  ;;  %v536_v3 = vpop.permute.xlu1 %535  ;;  %1504 = vmatpush.msrb.mxu0 %v981_v24  ;;  %v847_v24 = vld [vmem:[%s3602_s3 + $0x418] sm:$0xff] }
 0x18f   :  { %586 = vst.msk [vmem:[#allocation3 + $0x10] sm:$0x3] %vm521_vm2, %v584_v2  ;;  %v528_v4 = vpop.permute.xlu0 %527  ;;  %v819_v2 = vld [vmem:[%s3602_s3 + $0x338] sm:$0xff] }
 0x190   :  { %538 = vst.msk [vmem:[#allocation3 + $0x4] sm:$0x3] %vm521_vm2, %v536_v3  ;;  %1505 = vmatpush.msrb.mxu0 %v980_v25  ;;  %v972_v3 = vld [vmem:[%s3602_s3 + $0x800] sm:$0xff]  ;;  %v814_v25 = vld [vmem:[%s3602_s3 + $0x310] sm:$0xff] }
 0x191   :  { %530 = vst.msk [vmem:[#allocation3 + $0x2] sm:$0x3] %vm521_vm2, %v528_v4  ;;  %v835_v4 = vld [vmem:[%s3602_s3 + $0x3b8] sm:$0xff] }
 0x192   :  { %1506 = vmatpush.msrb.mxu0 %v979_v28  ;;  %v830_v28 = vld [vmem:[%s3602_s3 + $0x390] sm:$0xff] }
 0x194   :  { %1507 = vmatpush.msrb.mxu0 %v978_v27  ;;  %v812_v27 = vld [vmem:[%s3602_s3 + $0x300] sm:$0xff] }
 0x196   :  { %v608_v12 = vpop.permute.xlu2 %607  ;;  %v544_v14 = vpop.permute.xlu1 %543  ;;  %1508 = vmatpush.msrb.mxu0 %v977_v40  ;;  %v907_v40 = vld [vmem:[%s3602_s3 + $0x5f8] sm:$0xff] }
 0x197   :  { %610 = vst.msk [vmem:[#allocation3 + $0x16] sm:$0x3] %vm521_vm2, %v608_v12  ;;  %v817_v12 = vld [vmem:[%s3602_s3 + $0x328] sm:$0xff] }
 0x198   :  { %546 = vst.msk [vmem:[#allocation3 + $0x6] sm:$0x3] %vm521_vm2, %v544_v14  ;;  %1509 = vmatpush.msrb.mxu0 %v976_v43  ;;  %v833_v14 = vld [vmem:[%s3602_s3 + $0x3a8] sm:$0xff]  ;;  %v906_v43 = vld [vmem:[%s3602_s3 + $0x5f0] sm:$0xff] }
 0x19a   :  { %1510 = vmatpush.msrb.mxu0 %v975_v54 }
 0x19c   :  { %1511 = vmatpush.msrb.mxu0 %v974_v58  ;;  %v902_v58 = vld [vmem:[%s3602_s3 + $0x5d0] sm:$0xff] }
 0x19e   :  { %v576_v20 = vpop.permute.xlu1 %575  ;;  %1512 = vmatpush.msrb.mxu0 %v973_v62  ;;  %v901_v62 = vld [vmem:[%s3602_s3 + $0x5c8] sm:$0xff] }
 0x19f   :  { %v709_v21 = vld [vmem:[#allocation3] sm:$0xff]  ;;  %578 = vst.msk [vmem:[#allocation3 + $0xe] sm:$0x3] %vm521_vm2, %v576_v20  ;;  %v568_v7 = vpop.permute.xlu0 %567 }
 0x1a0   :  { %1119 = vst [vmem:[#allocation1] ss:$4 sm:$0xff] %v709_v21  ;;  %1513 = vmatpush.msrb.mxu0 %v972_v3 }
 0x1a1   :  { %570 = vst.msk [vmem:[#allocation3 + $0xc] sm:$0x3] %vm521_vm2, %v568_v7  ;;  %v815_v7 = vld [vmem:[%s3602_s3 + $0x318] sm:$0xff] }
 0x1a6   :  { %v632_v30 = vpop.permute.xlu2 %631 }
 0x1a7   :  { %634 = vst.msk [vmem:[#allocation3 + $0x1c] sm:$0x3] %vm521_vm2, %v632_v30  ;;  %v592_v32 = vpop.permute.xlu0 %591  ;;  %v1122_v33 = vld.sshfl [vmem:[#allocation1] sm:$0xff pattern:$0x73625140]  ;;  %v813_v30 = vld [vmem:[%s3602_s3 + $0x308] sm:$0xff] }
 0x1a8   :  { %v710_v35 = vld [vmem:[#allocation3 + $0x8] sm:$0xff]  ;;  %594 = vst.msk [vmem:[#allocation3 + $0x12] sm:$0x3] %vm521_vm2, %v592_v32  ;;  %1194 = vmatmul.f32.vlgmr.msrb.gmra.mxu1 %v1122_v33  ;;  %v1123_v36 = vld.sshfl [vmem:[#allocation1 + $0x8] sm:$0xff pattern:$0x73625140] }
 0x1a9   :  { %1121 = vst [vmem:[#allocation1 + $0x20] ss:$4 sm:$0xff] %v710_v35  ;;  %1214 = vmatmul.f32.vlgmr.msrb.gmra.mxu2 %v1123_v36  ;;  %v1124_v37 = vld.sshfl [vmem:[#allocation1 + $0x10] sm:$0xff pattern:$0x73625140]  ;;  %1298 = vmatpush.msrb.mxu1 %v827_v29  ;;  %v828_v32 = vld [vmem:[%s3602_s3 + $0x380] sm:$0xff] }
 0x1aa   :  { %1234 = vmatmul.f32.vlgmr.msrb.gmra.mxu3 %v1124_v37  ;;  %1318 = vmatpush.msrb.mxu2 %v843_v19  ;;  %v1125_v49 = vld.sshfl [vmem:[#allocation1 + $0x18] sm:$0xff pattern:$0x73625140]  ;;  %v846_v29 = vld [vmem:[%s3602_s3 + $0x410] sm:$0xff]  ;;  %v829_v19 = vld [vmem:[%s3602_s3 + $0x388] sm:$0xff] }
 0x1ab   :  { %1338 = vmatpush.msrb.mxu3 %v859_v31  ;;  %1299 = vmatpush.msrb.mxu1 %v826_v34  ;;  %v845_v31 = vld [vmem:[%s3602_s3 + $0x408] sm:$0xff]  ;;  %v844_v33 = vld [vmem:[%s3602_s3 + $0x400] sm:$0xff]  ;;  %v875_v37 = vld [vmem:[%s3602_s3 + $0x4f8] sm:$0xff] }
 0x1ac   :  { %1319 = vmatpush.msrb.mxu2 %v842_v38 }
 0x1ad   :  { %1339 = vmatpush.msrb.mxu3 %v858_v9  ;;  %1300 = vmatpush.msrb.mxu1 %v825_v39  ;;  %v891_v39 = vld [vmem:[%s3602_s3 + $0x578] sm:$0xff] }
 0x1ae   :  { %1320 = vmatpush.msrb.mxu2 %v841_v41  ;;  %v656_v46 = vpop.permute.xlu2 %655  ;;  %v600_v47 = vpop.permute.xlu1 %599 }
 0x1af   :  { %1340 = vmatpush.msrb.mxu3 %v857_v42  ;;  %1301 = vmatpush.msrb.mxu1 %v824_v23  ;;  %658 = vst.msk [vmem:[#allocation3 + $0x22] sm:$0x3] %vm521_vm2, %v656_v46  ;;  %v874_v42 = vld [vmem:[%s3602_s3 + $0x4f0] sm:$0xff]  ;;  %v905_v46 = vld [vmem:[%s3602_s3 + $0x5e8] sm:$0xff] }
 0x1b0   :  { %1321 = vmatpush.msrb.mxu2 %v840_v44  ;;  %602 = vst.msk [vmem:[#allocation3 + $0x14] sm:$0x3] %vm521_vm2, %v600_v47  ;;  %1254 = vmatmul.f32.vlgmr.msra.gmra.mxu1 %v1125_v49  ;;  %v1126_v50 = vld.sshfl [vmem:[#allocation1 + $0x20] sm:$0xff pattern:$0x73625140]  ;;  %v890_v23 = vld [vmem:[%s3602_s3 + $0x570] sm:$0xff] }
 0x1b1   :  { %1341 = vmatpush.msrb.mxu3 %v856_v45  ;;  %1274 = vmatmul.f32.vlgmr.msra.gmra.mxu2 %v1126_v50  ;;  %v1127_v52 = vld.sshfl [vmem:[#allocation1 + $0x28] sm:$0xff pattern:$0x73625140]  ;;  %v1128_v36 = vld.sshfl [vmem:[#allocation1 + $0x30] sm:$0xff pattern:$0x73625140] }
 0x1b2   :  { %1294 = vmatmul.f32.vlgmr.msra.gmra.mxu3 %v1127_v52  ;;  %1302 = vmatpush.msrb.mxu1 %v823_v48  ;;  %v1129_v9 = vld.sshfl [vmem:[#allocation1 + $0x38] sm:$0xff pattern:$0x73625140]  ;;  %v873_v44 = vld [vmem:[%s3602_s3 + $0x4e8] sm:$0xff]  ;;  %v872_v47 = vld [vmem:[%s3602_s3 + $0x4e0] sm:$0xff] }
 0x1b3   :  { %1322 = vmatpush.msrb.mxu2 %v839_v11  ;;  %1342 = vmatpush.msrb.mxu3 %v855_v51  ;;  %v889_v45 = vld [vmem:[%s3602_s3 + $0x568] sm:$0xff]  ;;  %v888_v11 = vld [vmem:[%s3602_s3 + $0x560] sm:$0xff]  ;;  %v871_v51 = vld [vmem:[%s3602_s3 + $0x4d8] sm:$0xff] }
 0x1b4   :  { %1303 = vmatpush.msrb.mxu1 %v822_v53  ;;  %v904_v50 = vld [vmem:[%s3602_s3 + $0x5e0] sm:$0xff]  ;;  %v887_v52 = vld [vmem:[%s3602_s3 + $0x558] sm:$0xff] }
 0x1b5   :  { %1323 = vmatpush.msrb.mxu2 %v838_v55  ;;  %1343 = vmatpush.msrb.mxu3 %v854_v56  ;;  %v903_v53 = vld [vmem:[%s3602_s3 + $0x5d8] sm:$0xff]  ;;  %v870_v55 = vld [vmem:[%s3602_s3 + $0x4d0] sm:$0xff] }
 0x1b6   :  { %1304 = vmatpush.msrb.mxu1 %v821_v57  ;;  %v624_v0 = vpop.permute.xlu1 %623  ;;  %v616_v1 = vpop.permute.xlu0 %615  ;;  %v1051_v56 = vld [vmem:[%s3602_s3 + $0xa78] sm:$0xff]  ;;  %v886_v57 = vld [vmem:[%s3602_s3 + $0x550] sm:$0xff] }
 0x1b7   :  { %v711_v26 = vld [vmem:[#allocation3 + $0x10] sm:$0xff]  ;;  %1324 = vmatpush.msrb.mxu2 %v837_v59  ;;  %1344 = vmatpush.msrb.mxu3 %v853_v60  ;;  %626 = vst.msk [vmem:[#allocation3 + $0x1a] sm:$0x3] %vm521_vm2, %v624_v0  ;;  %v869_v59 = vld [vmem:[%s3602_s3 + $0x4c8] sm:$0xff] }
 0x1b8   :  { %1130 = vst [vmem:[#allocation1] ss:$4 sm:$0xff] %v711_v26  ;;  %1305 = vmatpush.msrb.mxu1 %v820_v61  ;;  %v885_v60 = vld [vmem:[%s3602_s3 + $0x548] sm:$0xff]  ;;  %v1050_v61 = vld [vmem:[%s3602_s3 + $0xa70] sm:$0xff] }
 0x1b9   :  { %1325 = vmatpush.msrb.mxu2 %v836_v63  ;;  %1345 = vmatpush.msrb.mxu3 %v852_v13  ;;  %618 = vst.msk [vmem:[#allocation3 + $0x18] sm:$0x3] %vm521_vm2, %v616_v1  ;;  %v868_v63 = vld [vmem:[%s3602_s3 + $0x4c0] sm:$0xff]  ;;  %v1049_v26 = vld [vmem:[%s3602_s3 + $0xa68] sm:$0xff] }
 0x1ba   :  { %1306 = vmatpush.msrb.mxu1 %v819_v2  ;;  %v884_v13 = vld [vmem:[%s3602_s3 + $0x540] sm:$0xff] }
 0x1bb   :  { %1326 = vmatpush.msrb.mxu2 %v835_v4  ;;  %1346 = vmatpush.msrb.mxu3 %v851_v5  ;;  %v900_v1 = vld [vmem:[%s3602_s3 + $0x5c0] sm:$0xff] }
 0x1bc   :  { %1307 = vmatpush.msrb.mxu1 %v818_v6  ;;  %v1048_v4 = vld [vmem:[%s3602_s3 + $0xa60] sm:$0xff] }
 0x1bd   :  { %1327 = vmatpush.msrb.mxu2 %v834_v8  ;;  %1347 = vmatpush.msrb.mxu3 %v850_v10  ;;  %v867_v8 = vld [vmem:[%s3602_s3 + $0x4b8] sm:$0xff] }
 0x1be   :  { %1308 = vmatpush.msrb.mxu1 %v817_v12  ;;  %v680_v20 = vpop.permute.xlu2 %679  ;;  %v640_v21 = vpop.permute.xlu0 %639  ;;  %v883_v10 = vld [vmem:[%s3602_s3 + $0x538] sm:$0xff] }
 0x1bf   :  { %1328 = vmatpush.msrb.mxu2 %v833_v14  ;;  %1348 = vmatpush.msrb.mxu3 %v849_v16  ;;  %682 = vst.msk [vmem:[#allocation3 + $0x28] sm:$0x3] %vm521_vm2, %v680_v20  ;;  %v1132_v41 = vld.sshfl [vmem:[#allocation1] sm:$0xff pattern:$0x73625140]  ;;  %v899_v12 = vld [vmem:[%s3602_s3 + $0x5b8] sm:$0xff] }
 0x1c0   :  { %1309 = vmatpush.msrb.mxu1 %v816_v17  ;;  %642 = vst.msk [vmem:[#allocation3 + $0x1e] sm:$0x3] %vm521_vm2, %v640_v21  ;;  %v2939_v0 = vld.sshfl [vmem:[#allocation1 + $0x8] sm:$0xff pattern:$0x73625140]  ;;  %v866_v14 = vld [vmem:[%s3602_s3 + $0x4b0] sm:$0xff] }
 0x1c1   :  { %1329 = vmatpush.msrb.mxu2 %v832_v15  ;;  %1349 = vmatpush.msrb.mxu3 %v848_v18  ;;  %v2947_v3 = vld.sshfl [vmem:[#allocation1 + $0x10] sm:$0xff pattern:$0x73625140]  ;;  %v2953_v5 = vld.sshfl [vmem:[#allocation1 + $0x18] sm:$0xff pattern:$0x73625140] }
 0x1c2   :  { %1310 = vmatpush.msrb.mxu1 %v815_v7  ;;  %v1047_v16 = vld [vmem:[%s3602_s3 + $0xa58] sm:$0xff]  ;;  %v882_v17 = vld [vmem:[%s3602_s3 + $0x530] sm:$0xff]  ;;  %v865_v18 = vld [vmem:[%s3602_s3 + $0x4a8] sm:$0xff] }
 0x1c3   :  { %1330 = vmatpush.msrb.mxu2 %v831_v22  ;;  %1350 = vmatpush.msrb.mxu3 %v847_v24  ;;  %v898_v15 = vld [vmem:[%s3602_s3 + $0x5b0] sm:$0xff]  ;;  %v881_v21 = vld [vmem:[%s3602_s3 + $0x528] sm:$0xff]  ;;  %v864_v22 = vld [vmem:[%s3602_s3 + $0x4a0] sm:$0xff] }
 0x1c4   :  { %1311 = vmatpush.msrb.mxu1 %v814_v25  ;;  %v1046_v20 = vld [vmem:[%s3602_s3 + $0xa50] sm:$0xff]  ;;  %v897_v7 = vld [vmem:[%s3602_s3 + $0x5a8] sm:$0xff]  ;;  %v880_v24 = vld [vmem:[%s3602_s3 + $0x520] sm:$0xff] }
 0x1c5   :  { %1331 = vmatpush.msrb.mxu2 %v830_v28  ;;  %1351 = vmatpush.msrb.mxu3 %v846_v29  ;;  %v1045_v25 = vld [vmem:[%s3602_s3 + $0xa48] sm:$0xff]  ;;  %v896_v29 = vld [vmem:[%s3602_s3 + $0x5a0] sm:$0xff] }
 0x1c6   :  { %1312 = vmatpush.msrb.mxu1 %v813_v30  ;;  %v704_v34 = vpop.permute.xlu2 %703  ;;  %v648_v35 = vpop.permute.xlu1 %647  ;;  %v863_v30 = vld [vmem:[%s3602_s3 + $0x498] sm:$0xff] }
 0x1c7   :  { %1332 = vmatpush.msrb.mxu2 %v829_v19  ;;  %1352 = vmatpush.msrb.mxu3 %v845_v31  ;;  %706 = vst.msk [vmem:[#allocation3 + $0x2e] sm:$0x3] %vm521_vm2, %v704_v34  ;;  %v712_v38 = vld [vmem:[#allocation3 + $0x18] sm:$0xff]  ;;  %v879_v19 = vld [vmem:[%s3602_s3 + $0x518] sm:$0xff] }
 0x1c8   :  { %1313 = vmatpush.msrb.mxu1 %v812_v27  ;;  %650 = vst.msk [vmem:[#allocation3 + $0x20] sm:$0x3] %vm521_vm2, %v648_v35  ;;  %v895_v31 = vld [vmem:[%s3602_s3 + $0x598] sm:$0xff]  ;;  %v1044_v27 = vld [vmem:[%s3602_s3 + $0xa40] sm:$0xff] }
 0x1c9   :  { %1333 = vmatpush.msrb.mxu2 %v828_v32  ;;  %1353 = vmatpush.msrb.mxu3 %v844_v33  ;;  %1131 = vst [vmem:[#allocation1 + $0x20] ss:$4 sm:$0xff] %v712_v38  ;;  %v862_v32 = vld [vmem:[%s3602_s3 + $0x490] sm:$0xff]  ;;  %v715_v33 = vld [vmem:[#allocation3 + $0x30] sm:$0x3] }
 0x1ca   :  { %1314 = vmatmul.f32.vlgmr.msrb.gmra.mxu1 %v1128_v36  ;;  %1334 = vmatmul.f32.vlgmr.msrb.gmra.mxu2 %v1129_v9  ;;  %v878_v36 = vld [vmem:[%s3602_s3 + $0x510] sm:$0xff]  ;;  %v1043_v9 = vld [vmem:[%s3602_s3 + $0xa38] sm:$0xff] }
 0x1cb   :  { %1354 = vmatmul.f32.vlgmr.msrb.gmra.mxu3 %v1132_v41  ;;  %1358 = vmatpush.msra.mxu1 %v875_v37  ;;  %v894_v37 = vld [vmem:[%s3602_s3 + $0x590] sm:$0xff]  ;;  %v877_v41 = vld [vmem:[%s3602_s3 + $0x508] sm:$0xff] }
 0x1cc   :  { %1378 = vmatpush.msra.mxu2 %v891_v39  ;;  %1398 = vmatpush.msra.mxu3 %v907_v40  ;;  %v861_v39 = vld [vmem:[%s3602_s3 + $0x488] sm:$0xff] }
 0x1cd   :  { %1359 = vmatpush.msra.mxu1 %v874_v42  ;;  %v893_v42 = vld [vmem:[%s3602_s3 + $0x588] sm:$0xff] }
 0x1ce   :  { %1379 = vmatpush.msra.mxu2 %v890_v23  ;;  %1399 = vmatpush.msra.mxu3 %v906_v43  ;;  %v672_v48 = vpop.permute.xlu1 %671  ;;  %v664_v49 = vpop.permute.xlu0 %663  ;;  %v1042_v23 = vld [vmem:[%s3602_s3 + $0xa30] sm:$0xff] }
 0x1cf   :  { %1360 = vmatpush.msra.mxu1 %v873_v44  ;;  %674 = vst.msk [vmem:[#allocation3 + $0x26] sm:$0x3] %vm521_vm2, %v672_v48  ;;  %v876_v48 = vld [vmem:[%s3602_s3 + $0x500] sm:$0xff] }
 0x1d0   :  { %1380 = vmatpush.msra.mxu2 %v889_v45  ;;  %1400 = vmatpush.msra.mxu3 %v905_v46  ;;  %666 = vst.msk [vmem:[#allocation3 + $0x24] sm:$0x3] %vm521_vm2, %v664_v49  ;;  %v1136_v54 = vld.sshfl [vmem:[#allocation1 + $0x20] sm:$0xff pattern:$0x73625140] }
 0x1d1   :  { %1361 = vmatpush.msra.mxu1 %v872_v47  ;;  %1434 = vmatmul.f32.vlgmr.msra.gmra.mxu0 %v1136_v54  ;;  %v3043_v43 = vld.sshfl [vmem:[#allocation1 + $0x28] sm:$0xff pattern:$0x73625140]  ;;  %v3045_v44 = vld.sshfl [vmem:[#allocation1 + $0x30] sm:$0xff pattern:$0x73625140] }
 0x1d2   :  { %1381 = vmatpush.msra.mxu2 %v888_v11  ;;  %1401 = vmatpush.msra.mxu3 %v904_v50  ;;  %v3047_v45 = vld.sshfl [vmem:[#allocation1 + $0x38] sm:$0xff pattern:$0x73625140]  ;;  %v860_v47 = vld [vmem:[%s3602_s3 + $0x480] sm:$0xff]  ;;  %v1041_v11 = vld [vmem:[%s3602_s3 + $0xa28] sm:$0xff] }
 0x1d3   :  { %1362 = vmatpush.msra.mxu1 %v871_v51  ;;  %1578 = vmatpush.msra.mxu0 %v1051_v56  ;;  %v892_v49 = vld [vmem:[%s3602_s3 + $0x580] sm:$0xff]  ;;  %v939_v50 = vld [vmem:[%s3602_s3 + $0x6f8] sm:$0xff]  ;;  %v938_v54 = vld [vmem:[%s3602_s3 + $0x6f0] sm:$0xff] }
 0x1d4   :  { %1382 = vmatpush.msra.mxu2 %v887_v52  ;;  %1402 = vmatpush.msra.mxu3 %v903_v53  ;;  %v955_v51 = vld [vmem:[%s3602_s3 + $0x778] sm:$0xff]  ;;  %v1040_v53 = vld [vmem:[%s3602_s3 + $0xa20] sm:$0xff]  ;;  %v970_v56 = vld [vmem:[%s3602_s3 + $0x7f0] sm:$0xff] }
 0x1d5   :  { %1363 = vmatpush.msra.mxu1 %v870_v55  ;;  %1579 = vmatpush.msra.mxu0 %v1050_v61  ;;  %v971_v52 = vld [vmem:[%s3602_s3 + $0x7f8] sm:$0xff]  ;;  %v954_v55 = vld [vmem:[%s3602_s3 + $0x770] sm:$0xff] }
 0x1d6   :  { %1383 = vmatpush.msra.mxu2 %v886_v57  ;;  %1403 = vmatpush.msra.mxu3 %v902_v58  ;;  %v688_v2 = vpop.permute.xlu0 %687  ;;  %v1039_v57 = vld [vmem:[%s3602_s3 + $0xa18] sm:$0xff]  ;;  %v937_v58 = vld [vmem:[%s3602_s3 + $0x6e8] sm:$0xff]  ;;  %v1038_v61 = vld [vmem:[%s3602_s3 + $0xa10] sm:$0xff] }
 0x1d7   :  { %1364 = vmatpush.msra.mxu1 %v869_v59  ;;  %690 = vst.msk [vmem:[#allocation3 + $0x2a] sm:$0x3] %vm521_vm2, %v688_v2  ;;  %v713_v6 = vld [vmem:[#allocation3 + $0x20] sm:$0xff]  ;;  %1580 = vmatpush.msra.mxu0 %v1049_v26  ;;  %v953_v59 = vld [vmem:[%s3602_s3 + $0x768] sm:$0xff]  ;;  %v951_v26 = vld [vmem:[%s3602_s3 + $0x758] sm:$0xff] }
 0x1d8   :  { %1384 = vmatpush.msra.mxu2 %v885_v60  ;;  %1404 = vmatpush.msra.mxu3 %v901_v62  ;;  %1140 = vst [vmem:[#allocation1] ss:$4 sm:$0xff] %v713_v6  ;;  %v969_v60 = vld [vmem:[%s3602_s3 + $0x7e8] sm:$0xff]  ;;  %v936_v62 = vld [vmem:[%s3602_s3 + $0x6e0] sm:$0xff]  ;;  %v967_v2 = vld [vmem:[%s3602_s3 + $0x7d8] sm:$0xff] }
 0x1d9   :  { %1365 = vmatpush.msra.mxu1 %v868_v63  ;;  %1581 = vmatpush.msra.mxu0 %v1048_v4  ;;  %v952_v63 = vld [vmem:[%s3602_s3 + $0x760] sm:$0xff]  ;;  %v934_v4 = vld [vmem:[%s3602_s3 + $0x6d0] sm:$0xff] }
 0x1da   :  { %1385 = vmatpush.msra.mxu2 %v884_v13  ;;  %1405 = vmatpush.msra.mxu3 %v900_v1  ;;  %v968_v13 = vld [vmem:[%s3602_s3 + $0x7e0] sm:$0xff]  ;;  %v935_v1 = vld [vmem:[%s3602_s3 + $0x6d8] sm:$0xff]  ;;  %v966_v6 = vld [vmem:[%s3602_s3 + $0x7d0] sm:$0xff] }
 0x1db   :  { %1366 = vmatpush.msra.mxu1 %v867_v8  ;;  %1582 = vmatpush.msra.mxu0 %v1047_v16  ;;  %v932_v16 = vld [vmem:[%s3602_s3 + $0x6c0] sm:$0xff] }
 0x1dc   :  { %1386 = vmatpush.msra.mxu2 %v883_v10  ;;  %1406 = vmatpush.msra.mxu3 %v899_v12  ;;  %v933_v10 = vld [vmem:[%s3602_s3 + $0x6c8] sm:$0xff] }
 0x1dd   :  { %1367 = vmatpush.msra.mxu1 %v866_v14  ;;  %1583 = vmatpush.msra.mxu0 %v1046_v20  ;;  %v949_v12 = vld [vmem:[%s3602_s3 + $0x748] sm:$0xff]  ;;  %v947_v20 = vld [vmem:[%s3602_s3 + $0x738] sm:$0xff] }
 0x1de   :  { %1387 = vmatpush.msra.mxu2 %v882_v17  ;;  %1407 = vmatpush.msra.mxu3 %v898_v15  ;;  %v696_v28 = vpop.permute.xlu1 %695  ;;  %v965_v14 = vld [vmem:[%s3602_s3 + $0x7c8] sm:$0xff]  ;;  %v948_v17 = vld [vmem:[%s3602_s3 + $0x740] sm:$0xff] }
 0x1df   :  { %1368 = vmatpush.msra.mxu1 %v865_v18  ;;  %698 = vst.msk [vmem:[#allocation3 + $0x2c] sm:$0x3] %vm521_vm2, %v696_v28  ;;  %1584 = vmatpush.msra.mxu0 %v1045_v25  ;;  %v1142_v34 = vld.sshfl [vmem:[#allocation1] sm:$0xff pattern:$0x73625140]  ;;  %v931_v18 = vld [vmem:[%s3602_s3 + $0x6b8] sm:$0xff] }
 0x1e0   :  { %1388 = vmatpush.msra.mxu2 %v881_v21  ;;  %1408 = vmatpush.msra.mxu3 %v897_v7  ;;  %v3016_v35 = vld.sshfl [vmem:[#allocation1 + $0x8] sm:$0xff pattern:$0x73625140]  ;;  %v3024_v38 = vld.sshfl [vmem:[#allocation1 + $0x10] sm:$0xff pattern:$0x73625140] }
 0x1e1   :  { %1369 = vmatpush.msra.mxu1 %v864_v22  ;;  %1585 = vmatpush.msra.mxu0 %v1044_v27  ;;  %v3032_v40 = vld.sshfl [vmem:[#allocation1 + $0x18] sm:$0xff pattern:$0x73625140]  ;;  %v964_v15 = vld [vmem:[%s3602_s3 + $0x7c0] sm:$0xff]  ;;  %v930_v7 = vld [vmem:[%s3602_s3 + $0x6b0] sm:$0xff] }
 0x1e2   :  { %1389 = vmatpush.msra.mxu2 %v880_v24  ;;  %1409 = vmatpush.msra.mxu3 %v896_v29  ;;  %1150 = vst [vmem:[#allocation1] ss:$4 sm:$0xff] %v715_v33  ;;  %v963_v21 = vld [vmem:[%s3602_s3 + $0x7b8] sm:$0xff]  ;;  %v946_v22 = vld [vmem:[%s3602_s3 + $0x730] sm:$0xff]  ;;  %v929_v25 = vld [vmem:[%s3602_s3 + $0x6a8] sm:$0xff] }
 0x1e3   :  { %1370 = vmatpush.msra.mxu1 %v863_v30  ;;  %1514 = vmatmul.f32.vlgmr.msrb.gmra.mxu0 %v1142_v34  ;;  %v962_v24 = vld [vmem:[%s3602_s3 + $0x7b0] sm:$0xff]  ;;  %v945_v28 = vld [vmem:[%s3602_s3 + $0x728] sm:$0xff]  ;;  %v928_v30 = vld [vmem:[%s3602_s3 + $0x6a0] sm:$0xff] }
 0x1e4   :  { %1390 = vmatpush.msra.mxu2 %v879_v19  ;;  %1410 = vmatpush.msra.mxu3 %v895_v31  ;;  %v961_v29 = vld [vmem:[%s3602_s3 + $0x7a8] sm:$0xff]  ;;  %v944_v19 = vld [vmem:[%s3602_s3 + $0x720] sm:$0xff]  ;;  %v927_v27 = vld [vmem:[%s3602_s3 + $0x698] sm:$0xff] }
 0x1e5   :  { %1371 = vmatpush.msra.mxu1 %v862_v32  ;;  %1586 = vmatpush.msra.mxu0 %v1043_v9  ;;  %v960_v31 = vld [vmem:[%s3602_s3 + $0x7a0] sm:$0xff]  ;;  %v943_v32 = vld [vmem:[%s3602_s3 + $0x718] sm:$0xff]  ;;  %v926_v34 = vld [vmem:[%s3602_s3 + $0x690] sm:$0xff] }
 0x1e6   :  { %v714_v46 = vld [vmem:[#allocation3 + $0x28] sm:$0xff]  ;;  %1391 = vmatpush.msra.mxu2 %v878_v36  ;;  %1411 = vmatpush.msra.mxu3 %v894_v37  ;;  %v942_v36 = vld [vmem:[%s3602_s3 + $0x710] sm:$0xff]  ;;  %v925_v9 = vld [vmem:[%s3602_s3 + $0x688] sm:$0xff] }
 0x1e7   :  { %1141 = vst [vmem:[#allocation1 + $0x20] ss:$4 sm:$0xff] %v714_v46  ;;  %1372 = vmatpush.msra.mxu1 %v861_v39  ;;  %1587 = vmatpush.msra.mxu0 %v1042_v23  ;;  %v959_v33 = vld [vmem:[%s3602_s3 + $0x798] sm:$0xff]  ;;  %v958_v37 = vld [vmem:[%s3602_s3 + $0x790] sm:$0xff]  ;;  %v941_v39 = vld [vmem:[%s3602_s3 + $0x708] sm:$0xff] }
 0x1e8   :  { %1392 = vmatpush.msra.mxu2 %v877_v41  ;;  %1412 = vmatpush.msra.mxu3 %v893_v42  ;;  %v957_v41 = vld [vmem:[%s3602_s3 + $0x788] sm:$0xff]  ;;  %v924_v42 = vld [vmem:[%s3602_s3 + $0x680] sm:$0xff] }
 0x1e9   :  { %1373 = vmatpush.msra.mxu1 %v860_v47  ;;  %1588 = vmatpush.msra.mxu0 %v1041_v11  ;;  %v940_v23 = vld [vmem:[%s3602_s3 + $0x700] sm:$0xff]  ;;  %v1003_v47 = vld [vmem:[%s3602_s3 + $0x8f8] sm:$0xff]  ;;  %v1002_v11 = vld [vmem:[%s3602_s3 + $0x8f0] sm:$0xff] }
 0x1ea   :  { %1393 = vmatpush.msra.mxu2 %v876_v48  ;;  %1413 = vmatpush.msra.mxu3 %v892_v49  ;;  %v956_v46 = vld [vmem:[%s3602_s3 + $0x780] sm:$0xff]  ;;  %v1019_v48 = vld [vmem:[%s3602_s3 + $0x978] sm:$0xff] }
 0x1eb   :  { %1374 = vmatmul.f32.vlgmr.msra.gmra.mxu1 %v2939_v0  ;;  %1394 = vmatmul.f32.vlgmr.msra.gmra.mxu2 %v2947_v3  ;;  %v1037_v0 = vld [vmem:[%s3602_s3 + $0xa08] sm:$0xff]  ;;  %v1036_v3 = vld [vmem:[%s3602_s3 + $0xa00] sm:$0xff]  ;;  %v1035_v49 = vld [vmem:[%s3602_s3 + $0x9f8] sm:$0xff] }
 0x1ec   :  { %1414 = vmatmul.f32.vlgmr.msra.gmra.mxu3 %v2953_v5  ;;  %1438 = vmatpush.msrb.mxu1 %v939_v50  ;;  %v950_v5 = vld [vmem:[%s3602_s3 + $0x750] sm:$0xff] }
 0x1ed   :  { %1458 = vmatpush.msrb.mxu2 %v955_v51  ;;  %1478 = vmatpush.msrb.mxu3 %v971_v52  ;;  %v1018_v50 = vld [vmem:[%s3602_s3 + $0x970] sm:$0xff]  ;;  %v1033_v51 = vld [vmem:[%s3602_s3 + $0x9e8] sm:$0xff]  ;;  %v1000_v52 = vld [vmem:[%s3602_s3 + $0x8e0] sm:$0xff] }
 0x1ee   :  { %1589 = vmatpush.msra.mxu0 %v1040_v53  ;;  %1439 = vmatpush.msrb.mxu1 %v938_v54  ;;  %v1146_v8 = vld.sshfl [vmem:[#allocation1 + $0x20] sm:$0xff pattern:$0x73625140] }
 0x1ef   :  { %1459 = vmatpush.msrb.mxu2 %v954_v55  ;;  %1479 = vmatpush.msrb.mxu3 %v970_v56  ;;  %v1016_v53 = vld [vmem:[%s3602_s3 + $0x960] sm:$0xff]  ;;  %v999_v55 = vld [vmem:[%s3602_s3 + $0x8d8] sm:$0xff] }
 0x1f0   :  { %1590 = vmatpush.msra.mxu0 %v1039_v57  ;;  %1440 = vmatpush.msrb.mxu1 %v937_v58  ;;  %v1032_v54 = vld [vmem:[%s3602_s3 + $0x9e0] sm:$0xff]  ;;  %v1015_v56 = vld [vmem:[%s3602_s3 + $0x958] sm:$0xff]  ;;  %v998_v58 = vld [vmem:[%s3602_s3 + $0x8d0] sm:$0xff] }
 0x1f1   :  { %1460 = vmatpush.msrb.mxu2 %v953_v59  ;;  %1480 = vmatpush.msrb.mxu3 %v969_v60  ;;  %v1031_v57 = vld [vmem:[%s3602_s3 + $0x9d8] sm:$0xff]  ;;  %v1014_v59 = vld [vmem:[%s3602_s3 + $0x950] sm:$0xff] }
 0x1f2   :  { %1591 = vmatpush.msra.mxu0 %v1038_v61  ;;  %1441 = vmatpush.msrb.mxu1 %v936_v62  ;;  %v1030_v60 = vld [vmem:[%s3602_s3 + $0x9d0] sm:$0xff]  ;;  %v997_v61 = vld [vmem:[%s3602_s3 + $0x8c8] sm:$0xff] }
 0x1f3   :  { %1461 = vmatpush.msrb.mxu2 %v952_v63  ;;  %1481 = vmatpush.msrb.mxu3 %v968_v13  ;;  %v1013_v62 = vld [vmem:[%s3602_s3 + $0x948] sm:$0xff]  ;;  %v996_v13 = vld [vmem:[%s3602_s3 + $0x8c0] sm:$0xff] }
 0x1f4   :  { %1592 = vmatpush.msra.mxu0 %v1037_v0  ;;  %1442 = vmatpush.msrb.mxu1 %v935_v1  ;;  %v1029_v63 = vld [vmem:[%s3602_s3 + $0x9c8] sm:$0xff]  ;;  %v1012_v0 = vld [vmem:[%s3602_s3 + $0x940] sm:$0xff] }
 0x1f5   :  { %1462 = vmatpush.msrb.mxu2 %v951_v26  ;;  %1482 = vmatpush.msrb.mxu3 %v967_v2  ;;  %v1028_v1 = vld [vmem:[%s3602_s3 + $0x9c0] sm:$0xff]  ;;  %v995_v26 = vld [vmem:[%s3602_s3 + $0x8b8] sm:$0xff] }
 0x1f6   :  { %1593 = vmatpush.msra.mxu0 %v1036_v3  ;;  %1443 = vmatpush.msrb.mxu1 %v934_v4  ;;  %v1011_v2 = vld [vmem:[%s3602_s3 + $0x938] sm:$0xff]  ;;  %v994_v4 = vld [vmem:[%s3602_s3 + $0x8b0] sm:$0xff] }
 0x1f7   :  { %1463 = vmatpush.msrb.mxu2 %v950_v5  ;;  %1483 = vmatpush.msrb.mxu3 %v966_v6  ;;  %v1027_v3 = vld [vmem:[%s3602_s3 + $0x9b8] sm:$0xff]  ;;  %v1010_v5 = vld [vmem:[%s3602_s3 + $0x930] sm:$0xff] }
 0x1f8   :  { %1594 = vmatmul.f32.vlgmr.msra.gmra.mxu0 %v1146_v8  ;;  %1444 = vmatpush.msrb.mxu1 %v933_v10  ;;  %v1026_v6 = vld [vmem:[%s3602_s3 + $0x9b0] sm:$0xff]  ;;  %v993_v8 = vld [vmem:[%s3602_s3 + $0x8a8] sm:$0xff] }
 0x1f9   :  { %1464 = vmatpush.msrb.mxu2 %v949_v12  ;;  %1484 = vmatpush.msrb.mxu3 %v965_v14  ;;  %v1009_v10 = vld [vmem:[%s3602_s3 + $0x928] sm:$0xff]  ;;  %v992_v14 = vld [vmem:[%s3602_s3 + $0x8a0] sm:$0xff] }
 0x1fa   :  { %1445 = vmatpush.msrb.mxu1 %v932_v16  ;;  %v1025_v12 = vld [vmem:[%s3602_s3 + $0x9a8] sm:$0xff]  ;;  %v1008_v16 = vld [vmem:[%s3602_s3 + $0x920] sm:$0xff] }
 0x1fb   :  { %1465 = vmatpush.msrb.mxu2 %v948_v17  ;;  %1485 = vmatpush.msrb.mxu3 %v964_v15  ;;  %v1024_v17 = vld [vmem:[%s3602_s3 + $0x9a0] sm:$0xff]  ;;  %v991_v15 = vld [vmem:[%s3602_s3 + $0x898] sm:$0xff] }
 0x1fc   :  { %1446 = vmatpush.msrb.mxu1 %v931_v18  ;;  %v1007_v18 = vld [vmem:[%s3602_s3 + $0x918] sm:$0xff] }
 0x1fd   :  { %1466 = vmatpush.msrb.mxu2 %v947_v20  ;;  %1486 = vmatpush.msrb.mxu3 %v963_v21  ;;  %v1023_v20 = vld [vmem:[%s3602_s3 + $0x998] sm:$0xff]  ;;  %v990_v21 = vld [vmem:[%s3602_s3 + $0x890] sm:$0xff] }
 0x1fe   :  { %1447 = vmatpush.msrb.mxu1 %v930_v7  ;;  %v1006_v7 = vld [vmem:[%s3602_s3 + $0x910] sm:$0xff] }
 0x1ff   :  { %1467 = vmatpush.msrb.mxu2 %v946_v22  ;;  %1487 = vmatpush.msrb.mxu3 %v962_v24  ;;  %v1022_v22 = vld [vmem:[%s3602_s3 + $0x990] sm:$0xff]  ;;  %v989_v24 = vld [vmem:[%s3602_s3 + $0x888] sm:$0xff] }
 0x200   :  { %1448 = vmatpush.msrb.mxu1 %v929_v25  ;;  %v1005_v25 = vld [vmem:[%s3602_s3 + $0x908] sm:$0xff] }
 0x201   :  { %1468 = vmatpush.msrb.mxu2 %v945_v28  ;;  %1488 = vmatpush.msrb.mxu3 %v961_v29  ;;  %v1021_v28 = vld [vmem:[%s3602_s3 + $0x988] sm:$0xff]  ;;  %v988_v29 = vld [vmem:[%s3602_s3 + $0x880] sm:$0xff] }
 0x202   :  { %1449 = vmatpush.msrb.mxu1 %v928_v30  ;;  %v1004_v30 = vld [vmem:[%s3602_s3 + $0x900] sm:$0xff] }
 0x203   :  { %1469 = vmatpush.msrb.mxu2 %v944_v19  ;;  %1489 = vmatpush.msrb.mxu3 %v960_v31  ;;  %v1020_v19 = vld [vmem:[%s3602_s3 + $0x980] sm:$0xff]  ;;  %v1067_v31 = vld [vmem:[%s3602_s3 + $0xaf8] sm:$0xff] }
 0x204   :  { %1450 = vmatpush.msrb.mxu1 %v927_v27  ;;  %v1083_v27 = vld [vmem:[%s3602_s3 + $0xb78] sm:$0xff] }
 0x205   :  { %1470 = vmatpush.msrb.mxu2 %v943_v32  ;;  %1490 = vmatpush.msrb.mxu3 %v959_v33  ;;  %v1099_v32 = vld [vmem:[%s3602_s3 + $0xbf8] sm:$0xff]  ;;  %v1066_v33 = vld [vmem:[%s3602_s3 + $0xaf0] sm:$0xff] }
 0x206   :  { %1451 = vmatpush.msrb.mxu1 %v926_v34  ;;  %v1082_v34 = vld [vmem:[%s3602_s3 + $0xb70] sm:$0xff] }
 0x207   :  { %1471 = vmatpush.msrb.mxu2 %v942_v36  ;;  %1491 = vmatpush.msrb.mxu3 %v958_v37  ;;  %v1097_v36 = vld [vmem:[%s3602_s3 + $0xbe8] sm:$0xff]  ;;  %v1064_v37 = vld [vmem:[%s3602_s3 + $0xae0] sm:$0xff] }
 0x208   :  { %1452 = vmatpush.msrb.mxu1 %v925_v9  ;;  %v1080_v9 = vld [vmem:[%s3602_s3 + $0xb60] sm:$0xff] }
 0x209   :  { %1472 = vmatpush.msrb.mxu2 %v941_v39  ;;  %1492 = vmatpush.msrb.mxu3 %v957_v41  ;;  %v1096_v39 = vld [vmem:[%s3602_s3 + $0xbe0] sm:$0xff]  ;;  %v1063_v41 = vld [vmem:[%s3602_s3 + $0xad8] sm:$0xff] }
 0x20a   :  { %1453 = vmatpush.msrb.mxu1 %v924_v42  ;;  %v1079_v42 = vld [vmem:[%s3602_s3 + $0xb58] sm:$0xff] }
 0x20b   :  { %1473 = vmatpush.msrb.mxu2 %v940_v23  ;;  %1493 = vmatpush.msrb.mxu3 %v956_v46  ;;  %v1095_v23 = vld [vmem:[%s3602_s3 + $0xbd8] sm:$0xff]  ;;  %v1062_v46 = vld [vmem:[%s3602_s3 + $0xad0] sm:$0xff] }
 0x20c   :  { %1454 = vmatmul.f32.vlgmr.msrb.gmra.mxu1 %v3043_v43  ;;  %1474 = vmatmul.f32.vlgmr.msrb.gmra.mxu2 %v3045_v44  ;;  %v1034_v43 = vld [vmem:[%s3602_s3 + $0x9f0] sm:$0xff]  ;;  %v1001_v44 = vld [vmem:[%s3602_s3 + $0x8e8] sm:$0xff] }
 0x20d   :  { %1494 = vmatmul.f32.vlgmr.msrb.gmra.mxu3 %v3047_v45  ;;  %1518 = vmatpush.msra.mxu1 %v1003_v47  ;;  %v1017_v45 = vld [vmem:[%s3602_s3 + $0x968] sm:$0xff]  ;;  %v1078_v47 = vld [vmem:[%s3602_s3 + $0xb50] sm:$0xff] }
 0x20e   :  { %1538 = vmatpush.msra.mxu2 %v1019_v48  ;;  %1558 = vmatpush.msra.mxu3 %v1035_v49  ;;  %v1094_v48 = vld [vmem:[%s3602_s3 + $0xbd0] sm:$0xff]  ;;  %v1061_v49 = vld [vmem:[%s3602_s3 + $0xac8] sm:$0xff] }
 0x20f   :  { %1519 = vmatpush.msra.mxu1 %v1002_v11  ;;  %v1077_v11 = vld [vmem:[%s3602_s3 + $0xb48] sm:$0xff] }
 0x210   :  { %1539 = vmatpush.msra.mxu2 %v1018_v50  ;;  %1559 = vmatpush.msra.mxu3 %v1034_v43  ;;  %v1093_v50 = vld [vmem:[%s3602_s3 + $0xbc8] sm:$0xff]  ;;  %v1060_v43 = vld [vmem:[%s3602_s3 + $0xac0] sm:$0xff] }
 0x211   :  { %1520 = vmatpush.msra.mxu1 %v1001_v44  ;;  %v1076_v44 = vld [vmem:[%s3602_s3 + $0xb40] sm:$0xff] }
 0x212   :  { %1540 = vmatpush.msra.mxu2 %v1017_v45  ;;  %1560 = vmatpush.msra.mxu3 %v1033_v51  ;;  %v1092_v45 = vld [vmem:[%s3602_s3 + $0xbc0] sm:$0xff]  ;;  %v1059_v51 = vld [vmem:[%s3602_s3 + $0xab8] sm:$0xff] }
 0x213   :  { %1521 = vmatpush.msra.mxu1 %v1000_v52  ;;  %v1075_v52 = vld [vmem:[%s3602_s3 + $0xb38] sm:$0xff] }
 0x214   :  { %1541 = vmatpush.msra.mxu2 %v1016_v53  ;;  %1561 = vmatpush.msra.mxu3 %v1032_v54  ;;  %v1091_v53 = vld [vmem:[%s3602_s3 + $0xbb8] sm:$0xff]  ;;  %v1058_v54 = vld [vmem:[%s3602_s3 + $0xab0] sm:$0xff] }
 0x215   :  { %1522 = vmatpush.msra.mxu1 %v999_v55  ;;  %v1074_v55 = vld [vmem:[%s3602_s3 + $0xb30] sm:$0xff] }
 0x216   :  { %1542 = vmatpush.msra.mxu2 %v1015_v56  ;;  %1562 = vmatpush.msra.mxu3 %v1031_v57  ;;  %v1090_v56 = vld [vmem:[%s3602_s3 + $0xbb0] sm:$0xff]  ;;  %v1057_v57 = vld [vmem:[%s3602_s3 + $0xaa8] sm:$0xff] }
 0x217   :  { %1523 = vmatpush.msra.mxu1 %v998_v58  ;;  %v1073_v58 = vld [vmem:[%s3602_s3 + $0xb28] sm:$0xff] }
 0x218   :  { %1543 = vmatpush.msra.mxu2 %v1014_v59  ;;  %1563 = vmatpush.msra.mxu3 %v1030_v60  ;;  %v1089_v59 = vld [vmem:[%s3602_s3 + $0xba8] sm:$0xff]  ;;  %v1056_v60 = vld [vmem:[%s3602_s3 + $0xaa0] sm:$0xff] }
 0x219   :  { %1524 = vmatpush.msra.mxu1 %v997_v61  ;;  %v1072_v61 = vld [vmem:[%s3602_s3 + $0xb20] sm:$0xff] }
 0x21a   :  { %1544 = vmatpush.msra.mxu2 %v1013_v62  ;;  %1564 = vmatpush.msra.mxu3 %v1029_v63  ;;  %v1088_v62 = vld [vmem:[%s3602_s3 + $0xba0] sm:$0xff]  ;;  %v1055_v63 = vld [vmem:[%s3602_s3 + $0xa98] sm:$0xff] }
 0x21b   :  { %1525 = vmatpush.msra.mxu1 %v996_v13  ;;  %v1071_v13 = vld [vmem:[%s3602_s3 + $0xb18] sm:$0xff] }
 0x21c   :  { %1545 = vmatpush.msra.mxu2 %v1012_v0  ;;  %1565 = vmatpush.msra.mxu3 %v1028_v1  ;;  %v1087_v0 = vld [vmem:[%s3602_s3 + $0xb98] sm:$0xff]  ;;  %v1054_v1 = vld [vmem:[%s3602_s3 + $0xa90] sm:$0xff] }
 0x21d   :  { %1526 = vmatpush.msra.mxu1 %v995_v26  ;;  %v1070_v26 = vld [vmem:[%s3602_s3 + $0xb10] sm:$0xff] }
 0x21e   :  { %1546 = vmatpush.msra.mxu2 %v1011_v2  ;;  %1566 = vmatpush.msra.mxu3 %v1027_v3  ;;  %v1086_v2 = vld [vmem:[%s3602_s3 + $0xb90] sm:$0xff]  ;;  %v1053_v3 = vld [vmem:[%s3602_s3 + $0xa88] sm:$0xff] }
 0x21f   :  { %1527 = vmatpush.msra.mxu1 %v994_v4  ;;  %v1069_v4 = vld [vmem:[%s3602_s3 + $0xb08] sm:$0xff] }
 0x220   :  { %1547 = vmatpush.msra.mxu2 %v1010_v5  ;;  %1567 = vmatpush.msra.mxu3 %v1026_v6  ;;  %v1085_v5 = vld [vmem:[%s3602_s3 + $0xb88] sm:$0xff]  ;;  %v1052_v6 = vld [vmem:[%s3602_s3 + $0xa80] sm:$0xff] }
 0x221   :  { %1528 = vmatpush.msra.mxu1 %v993_v8  ;;  %v1068_v8 = vld [vmem:[%s3602_s3 + $0xb00] sm:$0xff] }
 0x222   :  { %1548 = vmatpush.msra.mxu2 %v1009_v10  ;;  %1568 = vmatpush.msra.mxu3 %v1025_v12  ;;  %v1084_v10 = vld [vmem:[%s3602_s3 + $0xb80] sm:$0xff]  ;;  %v1147_v12 = vld.sshfl [vmem:[#allocation1 + $0x28] sm:$0xff pattern:$0x73625140] }
 0x223   :  { %1529 = vmatpush.msra.mxu1 %v992_v14  ;;  %v1107_v14 = vld [vmem:[%s3602_s3 + $0xc38] sm:$0xff] }
 0x224   :  { %1549 = vmatpush.msra.mxu2 %v1008_v16  ;;  %1569 = vmatpush.msra.mxu3 %v1024_v17  ;;  %v1148_v16 = vld.sshfl [vmem:[#allocation1 + $0x30] sm:$0xff pattern:$0x73625140]  ;;  %v1149_v17 = vld.sshfl [vmem:[#allocation1 + $0x38] sm:$0xff pattern:$0x73625140] }
 0x225   :  { %1530 = vmatpush.msra.mxu1 %v991_v15  ;;  %v1106_v15 = vld [vmem:[%s3602_s3 + $0xc30] sm:$0xff] }
 0x226   :  { %1550 = vmatpush.msra.mxu2 %v1007_v18  ;;  %1570 = vmatpush.msra.mxu3 %v1023_v20  ;;  %v1105_v18 = vld [vmem:[%s3602_s3 + $0xc28] sm:$0xff]  ;;  %v1104_v20 = vld [vmem:[%s3602_s3 + $0xc20] sm:$0xff] }
 0x227   :  { %1531 = vmatpush.msra.mxu1 %v990_v21  ;;  %v1103_v21 = vld [vmem:[%s3602_s3 + $0xc18] sm:$0xff] }
 0x228   :  { %1551 = vmatpush.msra.mxu2 %v1006_v7  ;;  %1571 = vmatpush.msra.mxu3 %v1022_v22  ;;  %v1102_v7 = vld [vmem:[%s3602_s3 + $0xc10] sm:$0xff]  ;;  %v1101_v22 = vld [vmem:[%s3602_s3 + $0xc08] sm:$0xff] }
 0x229   :  { %1532 = vmatpush.msra.mxu1 %v989_v24  ;;  %v1100_v24 = vld [vmem:[%s3602_s3 + $0xc00] sm:$0xff] }
 0x22a   :  { %1552 = vmatpush.msra.mxu2 %v1005_v25  ;;  %1572 = vmatpush.msra.mxu3 %v1021_v28  ;;  %v1151_v25 = vld.sshfl [vmem:[#allocation1] sm:$0xff pattern:$0x73625140] }
 0x22b   :  { %1533 = vmatpush.msra.mxu1 %v988_v29  ;;  %v1740_v28 = vld [vmem:[%s3603_s4] ss:$0 sm:$0xff]  ;;  %v1195_v29 = vpop.f32.mrf.mxu1 }
 0x22c   :  { %1553 = vmatpush.msra.mxu2 %v1004_v30  ;;  %1573 = vmatpush.msra.mxu3 %v1020_v19  ;;  %v1694_v30 = vld [vmem:[%s3605_s5 + $0x78] sm:$0xff]  ;;  %v1693_v19 = vld [vmem:[%s3605_s5 + $0x70] sm:$0xff] }
 0x22d   :  { %1534 = vmatmul.f32.vlgmr.msra.gmra.mxu1 %v3016_v35  ;;  %1554 = vmatmul.f32.vlgmr.msra.gmra.mxu2 %v3024_v38  ;;  %v1098_v35 = vld [vmem:[%s3602_s3 + $0xbf0] sm:$0xff]  ;;  %v1065_v38 = vld [vmem:[%s3602_s3 + $0xae8] sm:$0xff] }
 0x22e   :  { %1574 = vmatmul.f32.vlgmr.msra.gmra.mxu3 %v3032_v40  ;;  %1598 = vmatpush.msrb.mxu1 %v1067_v31  ;;  %v1081_v40 = vld [vmem:[%s3602_s3 + $0xb68] sm:$0xff]  ;;  %v1215_v31 = vpop.f32.mrf.mxu2 }
 0x22f   :  { %1618 = vmatpush.msrb.mxu2 %v1083_v27  ;;  %1638 = vmatpush.msrb.mxu3 %v1099_v32  ;;  %v1692_v27 = vld [vmem:[%s3605_s5 + $0x68] sm:$0xff]  ;;  %v1196_v32 = vadd.f32 %v1740_v28, %v1195_v29 }
 0x230   :  { %1599 = vmatpush.msrb.mxu1 %v1066_v33  ;;  %1699 = vmatpush.msrb.mxu0 %v1694_v30  ;;  %v1691_v33 = vld [vmem:[%s3605_s5 + $0x60] sm:$0xff] }
 0x231   :  { %1619 = vmatpush.msrb.mxu2 %v1082_v34  ;;  %1639 = vmatpush.msrb.mxu3 %v1098_v35  ;;  %v1216_v34 = vadd.f32 %v1215_v31, %v1196_v32  ;;  %v1690_v35 = vld [vmem:[%s3605_s5 + $0x58] sm:$0xff]  ;;  %v1741_v31 = vld [vmem:[%s3604_s6] ss:$0 sm:$0xff] }
 0x232   :  { %1600 = vmatpush.msrb.mxu1 %v1065_v38  ;;  %1700 = vmatpush.msrb.mxu0 %v1693_v19  ;;  %v1235_v38 = vpop.f32.mrf.mxu3 }
 0x233   :  { %1620 = vmatpush.msrb.mxu2 %v1081_v40  ;;  %1640 = vmatpush.msrb.mxu3 %v1097_v36  ;;  %v1689_v40 = vld [vmem:[%s3605_s5 + $0x50] sm:$0xff]  ;;  %v1236_v36 = vadd.f32 %v1235_v38, %v1216_v34 }
 0x234   :  { %1601 = vmatpush.msrb.mxu1 %v1064_v37  ;;  %1701 = vmatpush.msrb.mxu0 %v1692_v27  ;;  %v1255_v37 = vpop.f32.mrf.mxu1 }
 0x235   :  { %1621 = vmatpush.msrb.mxu2 %v1080_v9  ;;  %1641 = vmatpush.msrb.mxu3 %v1096_v39  ;;  %v1256_v39 = vadd.f32 %v1255_v37, %v1236_v36 }
 0x236   :  { %1602 = vmatpush.msrb.mxu1 %v1063_v41  ;;  %1702 = vmatpush.msrb.mxu0 %v1691_v33  ;;  %v1275_v9 = vpop.f32.mrf.mxu2 }
 0x237   :  { %1622 = vmatpush.msrb.mxu2 %v1079_v42  ;;  %1642 = vmatpush.msrb.mxu3 %v1095_v23  ;;  %v1276_v41 = vadd.f32 %v1275_v9, %v1256_v39 }
 0x238   :  { %1603 = vmatpush.msrb.mxu1 %v1062_v46  ;;  %1703 = vmatpush.msrb.mxu0 %v1690_v35 }
 0x239   :  { %1623 = vmatpush.msrb.mxu2 %v1078_v47  ;;  %1643 = vmatpush.msrb.mxu3 %v1094_v48 }
 0x23a   :  { %1604 = vmatpush.msrb.mxu1 %v1061_v49  ;;  %1704 = vmatpush.msrb.mxu0 %v1689_v40  ;;  %v1295_v42 = vpop.f32.mrf.mxu3 }
 0x23b   :  { %1624 = vmatpush.msrb.mxu2 %v1077_v11  ;;  %1644 = vmatpush.msrb.mxu3 %v1093_v50  ;;  %v1296_v46 = vadd.f32 %v1295_v42, %v1276_v41  ;;  %v1688_v11 = vld [vmem:[%s3605_s5 + $0x48] sm:$0xff]  ;;  %v1687_v50 = vld [vmem:[%s3605_s5 + $0x40] sm:$0xff] }
 0x23c   :  { %1605 = vmatpush.msrb.mxu1 %v1060_v43  ;;  %1705 = vmatpush.msrb.mxu0 %v1688_v11 }
 0x23d   :  { %1625 = vmatpush.msrb.mxu2 %v1076_v44  ;;  %1645 = vmatpush.msrb.mxu3 %v1092_v45  ;;  %v1686_v45 = vld [vmem:[%s3605_s5 + $0x38] sm:$0xff] }
 0x23e   :  { %1606 = vmatpush.msrb.mxu1 %v1059_v51  ;;  %1706 = vmatpush.msrb.mxu0 %v1687_v50 }
 0x23f   :  { %1626 = vmatpush.msrb.mxu2 %v1075_v52  ;;  %1646 = vmatpush.msrb.mxu3 %v1091_v53 }
 0x240   :  { %1607 = vmatpush.msrb.mxu1 %v1058_v54  ;;  %1707 = vmatpush.msrb.mxu0 %v1686_v45 }
 0x241   :  { %1627 = vmatpush.msrb.mxu2 %v1074_v55  ;;  %1647 = vmatpush.msrb.mxu3 %v1090_v56  ;;  %v1685_v55 = vld [vmem:[%s3605_s5 + $0x30] sm:$0xff]  ;;  %v1684_v56 = vld [vmem:[%s3605_s5 + $0x28] sm:$0xff] }
 0x242   :  { %1608 = vmatpush.msrb.mxu1 %v1057_v57  ;;  %1708 = vmatpush.msrb.mxu0 %v1685_v55  ;;  %v1683_v57 = vld [vmem:[%s3605_s5 + $0x20] sm:$0xff] }
 0x243   :  { %1628 = vmatpush.msrb.mxu2 %v1073_v58  ;;  %1648 = vmatpush.msrb.mxu3 %v1089_v59 }
 0x244   :  { %1609 = vmatpush.msrb.mxu1 %v1056_v60  ;;  %1709 = vmatpush.msrb.mxu0 %v1684_v56  ;;  %v1682_v60 = vld [vmem:[%s3605_s5 + $0x18] sm:$0xff] }
 0x245   :  { %1629 = vmatpush.msrb.mxu2 %v1072_v61  ;;  %1649 = vmatpush.msrb.mxu3 %v1088_v62 }
 0x246   :  { %1610 = vmatpush.msrb.mxu1 %v1055_v63  ;;  %1710 = vmatpush.msrb.mxu0 %v1683_v57 }
 0x247   :  { %1630 = vmatpush.msrb.mxu2 %v1071_v13  ;;  %1650 = vmatpush.msrb.mxu3 %v1087_v0  ;;  %v1315_v23 = vpop.f32.mrf.mxu1  ;;  %v1681_v13 = vld [vmem:[%s3605_s5 + $0x10] sm:$0xff] }
 0x248   :  { %1611 = vmatpush.msrb.mxu1 %v1054_v1  ;;  %v1316_v48 = vadd.f32 %v1315_v23, %v1296_v46  ;;  %1711 = vmatpush.msrb.mxu0 %v1682_v60 }
 0x249   :  { %1631 = vmatpush.msrb.mxu2 %v1070_v26  ;;  %1651 = vmatpush.msrb.mxu3 %v1086_v2  ;;  %v1680_v26 = vld [vmem:[%s3605_s5 + $0x8] sm:$0xff] }
 0x24a   :  { %1612 = vmatpush.msrb.mxu1 %v1053_v3  ;;  %1712 = vmatpush.msrb.mxu0 %v1681_v13  ;;  %v1679_v3 = vld [vmem:[%s3605_s5] sm:$0xff] }
 0x24b   :  { %1632 = vmatpush.msrb.mxu2 %v1069_v4  ;;  %1652 = vmatpush.msrb.mxu3 %v1085_v5 }
 0x24c   :  { %1613 = vmatpush.msrb.mxu1 %v1052_v6  ;;  %1713 = vmatpush.msrb.mxu0 %v1680_v26 }
 0x24d   :  { %1633 = vmatpush.msrb.mxu2 %v1068_v8  ;;  %1653 = vmatpush.msrb.mxu3 %v1084_v10  ;;  %v1335_v47 = vpop.f32.mrf.mxu2 }
 0x24e   :  { %1614 = vmatmul.f32.vlgmr.msrb.gmra.mxu1 %v1147_v12  ;;  %1634 = vmatmul.f32.vlgmr.msrb.gmra.mxu2 %v1148_v16  ;;  %v1336_v49 = vadd.f32 %v1335_v47, %v1316_v48  ;;  %v1355_v43 = vpop.f32.mrf.mxu3  ;;  %v1435_v61 = vpop.f32.mrf.mxu0 }
 0x24f   :  { %1654 = vmatmul.f32.vlgmr.msrb.gmra.mxu3 %v1149_v17  ;;  %1666 = vmatpush.msra.mxu1 %v1107_v14 }
 0x250   :  { %v1356_v51 = vadd.f32 %v1355_v43, %v1336_v49  ;;  %1714 = vmatpush.msrb.mxu0 %v1679_v3 }
 0x251   :  { %1667 = vmatpush.msra.mxu1 %v1106_v15 }
 0x253   :  { %1668 = vmatpush.msra.mxu1 %v1105_v18 }
 0x255   :  { %1669 = vmatpush.msra.mxu1 %v1104_v20 }
 0x257   :  { %1670 = vmatpush.msra.mxu1 %v1103_v21 }
 0x259   :  { %1671 = vmatpush.msra.mxu1 %v1102_v7 }
 0x25b   :  { %1672 = vmatpush.msra.mxu1 %v1101_v22 }
 0x25d   :  { %1673 = vmatpush.msra.mxu1 %v1100_v24 }
 0x25e   :  { %1737 = vmatmul.msk.f32.vlgmr.msra.gmra.mxu1 %vm167_vm0, %v1151_v25 }
 0x260   :  { %v1515_v6 = vpop.f32.mrf.mxu0 }
 0x268   :  { %v1375_v44 = vpop.f32.mrf.mxu1 }
 0x269   :  { %v1376_v53 = vadd.f32 %v1375_v44, %v1356_v51 }
 0x26e   :  { %v1395_v52 = vpop.f32.mrf.mxu2 }
 0x26f   :  { %v1396_v54 = vadd.f32 %v1395_v52, %v1376_v53  ;;  %v1415_v58 = vpop.f32.mrf.mxu3 }
 0x271   :  { %v1416_v59 = vadd.f32 %v1415_v58, %v1396_v54 }
 0x273   :  { %v1436_v63 = vadd.f32 %v1435_v61, %v1416_v59 }
 0x275   :  { %v1595_v18 = vpop.f32.mrf.mxu0 }
 0x289   :  { %v1455_v62 = vpop.f32.mrf.mxu1 }
 0x28a   :  { %v1456_v1 = vadd.f32 %v1455_v62, %v1436_v63 }
 0x28f   :  { %v1475_v0 = vpop.f32.mrf.mxu2 }
 0x290   :  { %v1476_v2 = vadd.f32 %v1475_v0, %v1456_v1  ;;  %v1495_v4 = vpop.f32.mrf.mxu3 }
 0x292   :  { %v1496_v5 = vadd.f32 %v1495_v4, %v1476_v2 }
 0x294   :  { %v1516_v10 = vadd.f32 %v1515_v6, %v1496_v5 }
 0x2aa   :  { %v1535_v8 = vpop.f32.mrf.mxu1 }
 0x2ab   :  { %v1536_v14 = vadd.f32 %v1535_v8, %v1516_v10 }
 0x2b0   :  { %v1555_v12 = vpop.f32.mrf.mxu2 }
 0x2b1   :  { %v1556_v16 = vadd.f32 %v1555_v12, %v1536_v14  ;;  %v1575_v17 = vpop.f32.mrf.mxu3 }
 0x2b3   :  { %v1576_v15 = vadd.f32 %v1575_v17, %v1556_v16 }
 0x2b5   :  { %v1596_v21 = vadd.f32 %v1595_v18, %v1576_v15 }
 0x2cb   :  { %v1615_v20 = vpop.f32.mrf.mxu1 }
 0x2cc   :  { %v1616_v22 = vadd.f32 %v1615_v20, %v1596_v21 }
 0x2d1   :  { %v1635_v7 = vpop.f32.mrf.mxu2 }
 0x2d2   :  { %v1636_v24 = vadd.f32 %v1635_v7, %v1616_v22  ;;  %v1655_v25 = vpop.f32.mrf.mxu3 }
 0x2d4   :  { %v1656_v28 = vadd.f32 %v1655_v25, %v1636_v24 }
 0x2db   :  { %v1675_v29 = vpop.f32.mrf.mxu1 }
 0x2dc   :  { %v1676_v30 = vadd.f32 %v1675_v29, %v1656_v28 }
 0x2de   :  { %v1678_v19 = vmax.f32 %v1676_v30, 0.0 }
 0x2e0   :  { %1715 = vmatmul.f32.vlgmr.msrb.gmra.mxu0 %v1678_v19 }
 0x35d   :  { %v1716_v27 = vpop.f32.mrf.mxu0 }
 0x35e   :  { %v1717_v32 = vadd.f32 %v1741_v31, %v1716_v27 }
 0x360   :  { %1719 = vst [vmem:[%s3606_s7] sm:$0x3] %v1717_v32 }

</bundles_post_ra>
